<compile_context>
chip_gen: v7x
topology: tpu7x:2x2x1
jax: 0.10.0
libtpu: 0.0.40
codegen_flags: <defaults>
</compile_context>

<pallas_src>
import jax
import jax.numpy as jnp
from jax.experimental import pallas as pl
from jax.experimental.pallas import tpu as pltpu


_VMEM_LIMIT = 32 * 1024 * 1024    # explicit scoped-VMEM request (< physical on all gens)
_VMEM_BUDGET = 24 * 1024 * 1024   # what one layer's pipeline buffers may use


# --------------------------------------------------------------------------- #
# Pallas kernels
# --------------------------------------------------------------------------- #
def make_fused_conv_bn_relu_kernel(inv_m, eps):
    """Fused im2col-conv + train-mode BatchNorm + ReLU.

    Grid = (2, ni): pass axis p outer, row-tile axis i inner.
      p == 0: y = A_tile @ W on the MXU (bf16 in, f32 acc), stored into a
              whole-layer f32 VMEM scratch; per-channel sum / sum-of-squares
              accumulated into VMEM scratch.
      p == 1: fold BN into scale/shift from the completed stats, apply + ReLU,
              write the bf16 activation tile.  f32 y never touches HBM.
    """
    def kernel(a_ref, w_ref, g_ref, b_ref, o_ref, y_scr, s_scr, q_scr):
        p = pl.program_id(0)
        i = pl.program_id(1)
        tm = a_ref.shape[0]
        row0 = pl.multiple_of(i * tm, tm)

        @pl.when(p == 0)
        def _matmul_and_stats():
            @pl.when(i == 0)
            def _init():
                s_scr[...] = jnp.zeros_like(s_scr)
                q_scr[...] = jnp.zeros_like(q_scr)

            y = jnp.dot(a_ref[...], w_ref[...],
                        preferred_element_type=jnp.float32)
            y_scr[pl.ds(row0, tm), :] = y
            s_scr[...] += jnp.sum(y, axis=0, keepdims=True)
            q_scr[...] += jnp.sum(y * y, axis=0, keepdims=True)

        @pl.when(p == 1)
        def _bn_relu_writeback():
            mean = s_scr[...] * inv_m
            # Single-pass variance; clamp >= 0 against cancellation.
            var = jnp.maximum(q_scr[...] * inv_m - mean * mean, 0.0)
            scale = g_ref[...] * jax.lax.rsqrt(var + eps)
            shift = b_ref[...] - mean * scale
            y = y_scr[pl.ds(row0, tm), :]
            o_ref[...] = jnp.maximum(y * scale + shift, 0.0).astype(o_ref.dtype)

    return kernel


def conv_kernel(a_ref, w_ref, o_ref):
    """Plain im2col conv (final layer, no BN/ReLU): one MXU matmul per tile."""
    o_ref[...] = jnp.dot(a_ref[...], w_ref[...],
                         preferred_element_type=jnp.float32).astype(o_ref.dtype)


# --------------------------------------------------------------------------- #
# Wrappers
# --------------------------------------------------------------------------- #
def _round_up(x, m):
    return (x + m - 1) // m * m


def _choose_tm(M, Kp, Cp, keep_y_in_vmem):
    """Largest row tile (multiple of 16, <= 512) whose pipeline buffers fit
    the per-layer VMEM budget.  Padded rows are free (they are zeros)."""
    cap = min(512, _round_up(M, 16))
    for tm in (512, 256, 128, 64, 32, 16):
        if tm > cap:
            continue
        mp = _round_up(M, tm)
        need = (2 * tm * Kp * 2                      # double-buffered bf16 A tiles
                + 2 * Kp * Cp * 2                    # resident bf16 weight (x2, conservative)
                + 2 * tm * Cp * 4                    # double-buffered output tiles
                + (mp * Cp * 4 if keep_y_in_vmem else 0)   # whole-layer f32 y scratch
                + 8 * Cp * 4)                        # stats scratch + slack
        if need <= _VMEM_BUDGET:
            return tm
    # TODO(synk): for much larger batches the whole-layer f32 y scratch stops
    # fitting VMEM; that regime needs a streamed (two-kernel) BN path.
    return 16


def im2col_nhwc(x, kh, kw, stride, pad):
    """x: (B, H, W, C) -> patch matrix (B*Ho*Wo, kh*kw*C) in x.dtype.
    Column order (kh, kw, c) matches _weight_matrix below."""
    B, H, W, C = x.shape
    Ho = (H + 2 * pad - kh) // stride + 1
    Wo = (W + 2 * pad - kw) // stride + 1
    xp = jnp.pad(x, ((0, 0), (pad, pad), (pad, pad), (0, 0)))
    cols = [xp[:, ih:ih + stride * Ho:stride, iw:iw + stride * Wo:stride, :]
            for ih in range(kh) for iw in range(kw)]
    patches = jnp.stack(cols, axis=3)                 # (B, Ho, Wo, kh*kw, C)
    return patches.reshape(B * Ho * Wo, kh * kw * C), Ho, Wo


def _weight_matrix(w):
    """PyTorch (Cout, Cin, KH, KW) -> (KH*KW*Cin, Cout); row order matches the
    channels-last im2col columns."""
    Cout, Cin, KH, KW = w.shape
    return w.transpose(2, 3, 1, 0).reshape(KH * KW * Cin, Cout)


def _prep(x_nhwc, w, stride, pad, keep_y_in_vmem):
    """Build padded bf16 operands for one conv layer."""
    Cout, Cin, KH, KW = w.shape
    a, Ho, Wo = im2col_nhwc(x_nhwc.astype(jnp.bfloat16), KH, KW, stride, pad)
    M, K = a.shape
    Kp, Cp = _round_up(K, 128), _round_up(Cout, 128)
    tm = _choose_tm(M, Kp, Cp, keep_y_in_vmem)
    Mp = _round_up(M, tm)
    a_p = jnp.pad(a, ((0, Mp - M), (0, Kp - K)))
    w_p = jnp.pad(_weight_matrix(w).astype(jnp.bfloat16),
                  ((0, Kp - K), (0, Cp - Cout)))
    return a_p, w_p, (M, Mp, Kp, Cp, tm, Ho, Wo)


def conv_bn_relu_layer(x_nhwc, w, gamma, beta, stride, pad, eps=1e-5):
    """Conv2d(bias=False) + BatchNorm2d(train stats) + ReLU, fused in one
    pallas_call.  NHWC bf16/f32 in -> NHWC bf16 out."""
    B = x_nhwc.shape[0]
    Cout = w.shape[0]
    a_p, w_p, (M, Mp, Kp, Cp, tm, Ho, Wo) = _prep(x_nhwc, w, stride, pad, True)
    ni = Mp // tm
    g_p = jnp.pad(gamma.astype(jnp.float32), (0, Cp - Cout)).reshape(1, Cp)
    b_p = jnp.pad(beta.astype(jnp.float32), (0, Cp - Cout)).reshape(1, Cp)

    out = pl.pallas_call(
        make_fused_conv_bn_relu_kernel(1.0 / M, eps),
        out_shape=jax.ShapeDtypeStruct((Mp, Cp), jnp.bfloat16),
        grid_spec=pltpu.PrefetchScalarGridSpec(
            num_scalar_prefetch=0,
            grid=(2, ni),                                   # pass axis outermost
            in_specs=[
                # A tiles: block i during the matmul pass; pinned to block 0
                # during the apply pass so at most one redundant fetch occurs.
                pl.BlockSpec((tm, Kp), lambda p, i: (i * (1 - p), 0)),
                pl.BlockSpec((Kp, Cp), lambda p, i: (0, 0)),   # resident weight
                pl.BlockSpec((1, Cp), lambda p, i: (0, 0)),    # gamma
                pl.BlockSpec((1, Cp), lambda p, i: (0, 0)),    # beta
            ],
            # Written only in the apply pass; index stays 0 through pass 0, so
            # there is no garbage write-back and no output-block revisit.
            out_specs=pl.BlockSpec((tm, Cp), lambda p, i: (i * p, 0)),
            scratch_shapes=[
                pltpu.VMEM((Mp, Cp), jnp.float32),   # whole-layer f32 conv out
                pltpu.VMEM((1, Cp), jnp.float32),    # per-channel sum
                pltpu.VMEM((1, Cp), jnp.float32),    # per-channel sum of squares
            ]),
        compiler_params=pltpu.CompilerParams(
            dimension_semantics=("arbitrary", "arbitrary"),
            vmem_limit_bytes=_VMEM_LIMIT),
    )(a_p, w_p, g_p, b_p)

    if Mp != M or Cp != Cout:        # slice only when padding was added
        out = out[:M, :Cout]
    return out.reshape(B, Ho, Wo, Cout)


def conv_layer(x_nhwc, w, stride, pad):
    """Final Conv2d(bias=False), no BN/ReLU.  NHWC in -> NHWC f32 out."""
    B = x_nhwc.shape[0]
    Cout = w.shape[0]
    a_p, w_p, (M, Mp, Kp, Cp, tm, Ho, Wo) = _prep(x_nhwc, w, stride, pad, False)
    ni = Mp // tm

    out = pl.pallas_call(
        conv_kernel,
        out_shape=jax.ShapeDtypeStruct((Mp, Cp), jnp.float32),
        grid_spec=pltpu.PrefetchScalarGridSpec(
            num_scalar_prefetch=0,
            grid=(ni,),
            in_specs=[pl.BlockSpec((tm, Kp), lambda i: (i, 0)),
                      pl.BlockSpec((Kp, Cp), lambda i: (0, 0))],
            out_specs=pl.BlockSpec((tm, Cp), lambda i: (i, 0))),
        compiler_params=pltpu.CompilerParams(
            dimension_semantics=("parallel",),
            vmem_limit_bytes=_VMEM_LIMIT),
    )(a_p, w_p)

    if Mp != M or Cp != Cout:
        out = out[:M, :Cout]
    return out.reshape(B, Ho, Wo, Cout)


# --------------------------------------------------------------------------- #
# Module
# --------------------------------------------------------------------------- #
class EncoderCNNPallas:
    """Pallas port of hw3/autoencoder.py::EncoderCNN (deterministic params)."""

    def __init__(self, in_channels, out_channels, key):
        ks = jax.random.split(key, 10)

        def wconv(k, cout, cin):
            return 0.05 * jax.random.normal(k, (cout, cin, 4, 4), jnp.float32)

        self.w1 = wconv(ks[0], 64, in_channels)
        self.g1 = 1.0 + 0.1 * jax.random.normal(ks[1], (64,), jnp.float32)
        self.b1 = 0.1 * jax.random.normal(ks[2], (64,), jnp.float32)
        self.w2 = wconv(ks[3], 128, 64)
        self.g2 = 1.0 + 0.1 * jax.random.normal(ks[4], (128,), jnp.float32)
        self.b2 = 0.1 * jax.random.normal(ks[5], (128,), jnp.float32)
        self.w3 = wconv(ks[6], 256, 128)
        self.g3 = 1.0 + 0.1 * jax.random.normal(ks[7], (256,), jnp.float32)
        self.b3 = 0.1 * jax.random.normal(ks[8], (256,), jnp.float32)
        self.w4 = wconv(ks[9], out_channels, 256)

    def __call__(self, x):
        h = x.transpose(0, 2, 3, 1)                      # NCHW -> NHWC once
        h = conv_bn_relu_layer(h, self.w1, self.g1, self.b1, 2, 1)
        h = conv_bn_relu_layer(h, self.w2, self.g2, self.b2, 2, 1)
        h = conv_bn_relu_layer(h, self.w3, self.g3, self.b3, 2, 1)
        h = conv_layer(h, self.w4, 1, 0)
        return h.transpose(0, 3, 1, 2)                   # NHWC -> NCHW at boundary


# --------------------------------------------------------------------------- #
# Pure-JAX reference
# --------------------------------------------------------------------------- #
def reference_forward(enc, x, eps=1e-5, mxu_bf16=False):
    """lax.conv + train-mode BN reference.  With mxu_bf16=True it mirrors the
    kernel precision policy (bf16 matmul operands, f32 accumulation, bf16
    activation storage) for a tight equivalence check."""
    def conv(x, w, stride, pad):
        if mxu_bf16:
            x = x.astype(jnp.bfloat16)
            w = w.astype(jnp.bfloat16)
        return jax.lax.conv_general_dilated(
            x, w, window_strides=(stride, stride),
            padding=[(pad, pad), (pad, pad)],
            dimension_numbers=("NCHW", "OIHW", "NCHW"),
            preferred_element_type=jnp.float32)

    def bn_relu(y, g, b):
        mean = jnp.mean(y, axis=(0, 2, 3), keepdims=True)
        var = jnp.var(y, axis=(0, 2, 3), keepdims=True)
        yn = (y - mean) * jax.lax.rsqrt(var + eps)
        h = jnp.maximum(yn * g[None, :, None, None] + b[None, :, None, None], 0.0)
        if mxu_bf16:
            h = h.astype(jnp.bfloat16).astype(jnp.float32)
        return h

    h = bn_relu(conv(x, enc.w1, 2, 1), enc.g1, enc.b1)
    h = bn_relu(conv(h, enc.w2, 2, 1), enc.g2, enc.b2)
    h = bn_relu(conv(h, enc.w3, 2, 1), enc.g3, enc.b3)
    return conv(h, enc.w4, 1, 0)


if __name__ == "__main__":
    key = jax.random.PRNGKey(0)
    k_x, k_p = jax.random.split(key)

    # 32x32 input is the smallest spatial size the module supports
    # (32 -> 16 -> 8 -> 4, final 4x4 valid conv -> 1x1).
    in_channels, out_channels = 3, 64
    B, H, W = 2, 32, 32
    x = jax.random.normal(k_x, (B, in_channels, H, W), jnp.float32)

    enc = EncoderCNNPallas(in_channels, out_channels, k_p)

    out = jax.jit(enc.__call__)(x)
    out = jax.block_until_ready(out)
    assert out.shape == (B, out_channels, 1, 1), out.shape

    # (1) Check against a reference using the same precision policy
    #     (bf16 matmul operands, f32 accumulate, bf16 activation storage).
    ref_m = reference_forward(enc, x, mxu_bf16=True)
    assert jnp.allclose(out, ref_m, rtol=1e-2, atol=1e-2), (
        float(jnp.max(jnp.abs(out - ref_m))))

    # (2) Sanity check against the exact f32 reference (agreement up to bf16
    #     operand rounding on the MXU), relative Frobenius error.
    ref_f = reference_forward(enc, x, mxu_bf16=False)
    rel = jnp.linalg.norm(out - ref_f) / jnp.linalg.norm(ref_f)
    assert rel < 5e-2, float(rel)

    print("KERNEL_OK")
</pallas_src>

<mosaic_0001>
module attributes {stable_mosaic.version = 11 : i64} {
  func.func @kernel(%arg0: i32, %arg1: i32, %arg2: memref<512x128xbf16, #tpu.memory_space<vmem>>, %arg3: memref<128x128xbf16, #tpu.memory_space<vmem>>, %arg4: memref<1x128xf32, #tpu.memory_space<vmem>>, %arg5: memref<1x128xf32, #tpu.memory_space<vmem>>, %arg6: memref<512x128xbf16, #tpu.memory_space<vmem>>, %arg7: memref<512x128xf32, #tpu.memory_space<vmem>>, %arg8: memref<1x128xf32, #tpu.memory_space<vmem>>, %arg9: memref<1x128xf32, #tpu.memory_space<vmem>>) attributes {dimension_semantics = [#tpu.dimension_semantics<arbitrary>, #tpu.dimension_semantics<arbitrary>], iteration_bounds = array<i64: 2, 1>, scalar_prefetch = 0 : i64, scratch_operands = 3 : i64, tpu.core_type = #tpu.core_type<tc>, window_params = [{transform_indices = @transform_0, window_bounds = array<i64: 512, 128>}, {pipeline_mode = #tpu.pipeline_mode<synchronous>, transform_indices = @transform_1, window_bounds = array<i64: 128, 128>}, {pipeline_mode = #tpu.pipeline_mode<synchronous>, transform_indices = @transform_2, window_bounds = array<i64: 1, 128>}, {pipeline_mode = #tpu.pipeline_mode<synchronous>, transform_indices = @transform_3, window_bounds = array<i64: 1, 128>}, {transform_indices = @transform_4, window_bounds = array<i64: 512, 128>}]} {
    %c512_i32 = arith.constant 512 : i32
    %0 = arith.muli %arg1, %c512_i32 : i32
    %1 = tpu.assume_multiple %0, 512 : i32
    %c0_i32 = arith.constant 0 : i32
    %2 = arith.cmpi eq, %arg0, %c0_i32 : i32
    %3 = arith.extui %2 : i1 to i32
    %c0_i32_0 = arith.constant 0 : i32
    %4 = arith.cmpi ne, %3, %c0_i32_0 : i32
    scf.if %4 {
      %c0_i32_2 = arith.constant 0 : i32
      %8 = arith.cmpi eq, %arg1, %c0_i32_2 : i32
      %9 = arith.extui %8 : i1 to i32
      %c0_i32_3 = arith.constant 0 : i32
      %10 = arith.cmpi ne, %9, %c0_i32_3 : i32
      scf.if %10 {
        %cst_18 = arith.constant 0.000000e+00 : f32
        %27 = vector.broadcast %cst_18 : f32 to vector<1x128xf32>
        %c0_19 = arith.constant 0 : index
        %c0_20 = arith.constant 0 : index
        %28 = vector.load %arg8[%c0_19, %c0_20] : memref<1x128xf32, #tpu.memory_space<vmem>>, vector<1x128xf32>
        tpu.vector_store %arg8[%c0_19, %c0_20], %27 {strides = array<i32>} : memref<1x128xf32, #tpu.memory_space<vmem>>, vector<1x128xf32>,
        %cst_21 = arith.constant 0.000000e+00 : f32
        %29 = vector.broadcast %cst_21 : f32 to vector<1x128xf32>
        %c0_22 = arith.constant 0 : index
        %c0_23 = arith.constant 0 : index
        %30 = vector.load %arg9[%c0_22, %c0_23] : memref<1x128xf32, #tpu.memory_space<vmem>>, vector<1x128xf32>
        tpu.vector_store %arg9[%c0_22, %c0_23], %29 {strides = array<i32>} : memref<1x128xf32, #tpu.memory_space<vmem>>, vector<1x128xf32>,
      } else {
      }
      %c0 = arith.constant 0 : index
      %c0_4 = arith.constant 0 : index
      %11 = vector.load %arg2[%c0, %c0_4] : memref<512x128xbf16, #tpu.memory_space<vmem>>, vector<512x128xbf16>
      %c0_5 = arith.constant 0 : index
      %c0_6 = arith.constant 0 : index
      %12 = vector.load %arg3[%c0_5, %c0_6] : memref<128x128xbf16, #tpu.memory_space<vmem>>, vector<128x128xbf16>
      %cst = arith.constant dense<0.000000e+00> : vector<512x128xf32>
      %13 = tpu.matmul %11, %12, %cst {dimension_numbers = #tpu.dot_dimension_numbers<[1], [0], [0], [1], [0, 0, 1, 1], [], []>} : vector<512x128xbf16>, vector<128x128xbf16>, vector<512x128xf32> -> vector<512x128xf32>
      %14 = arith.index_cast %1 : i32 to index
      %c0_7 = arith.constant 0 : index
      %15 = vector.load %arg7[%14, %c0_7] : memref<512x128xf32, #tpu.memory_space<vmem>>, vector<512x128xf32>
      tpu.vector_store %arg7[%14, %c0_7], %13 {strides = array<i32>} : memref<512x128xf32, #tpu.memory_space<vmem>>, vector<512x128xf32>,
      %c0_8 = arith.constant 0 : index
      %c0_9 = arith.constant 0 : index
      %16 = vector.load %arg8[%c0_8, %c0_9] : memref<1x128xf32, #tpu.memory_space<vmem>>, vector<1x128xf32>
      %cst_10 = arith.constant dense<0.000000e+00> : vector<128xf32>
      %17 = vector.multi_reduction <add>, %13, %cst_10 [0] : vector<512x128xf32> to vector<128xf32>
      %18 = vector.shape_cast %17 : vector<128xf32> to vector<1x128xf32>
      %19 = arith.addf %16, %18 : vector<1x128xf32>
      %c0_11 = arith.constant 0 : index
      %c0_12 = arith.constant 0 : index
      %20 = vector.load %arg8[%c0_11, %c0_12] : memref<1x128xf32, #tpu.memory_space<vmem>>, vector<1x128xf32>
      tpu.vector_store %arg8[%c0_11, %c0_12], %19 {strides = array<i32>} : memref<1x128xf32, #tpu.memory_space<vmem>>, vector<1x128xf32>,
      %c0_13 = arith.constant 0 : index
      %c0_14 = arith.constant 0 : index
      %21 = vector.load %arg9[%c0_13, %c0_14] : memref<1x128xf32, #tpu.memory_space<vmem>>, vector<1x128xf32>
      %22 = arith.mulf %13, %13 : vector<512x128xf32>
      %cst_15 = arith.constant dense<0.000000e+00> : vector<128xf32>
      %23 = vector.multi_reduction <add>, %22, %cst_15 [0] : vector<512x128xf32> to vector<128xf32>
      %24 = vector.shape_cast %23 : vector<128xf32> to vector<1x128xf32>
      %25 = arith.addf %21, %24 : vector<1x128xf32>
      %c0_16 = arith.constant 0 : index
      %c0_17 = arith.constant 0 : index
      %26 = vector.load %arg9[%c0_16, %c0_17] : memref<1x128xf32, #tpu.memory_space<vmem>>, vector<1x128xf32>
      tpu.vector_store %arg9[%c0_16, %c0_17], %25 {strides = array<i32>} : memref<1x128xf32, #tpu.memory_space<vmem>>, vector<1x128xf32>,
    } else {
    }
    %c1_i32 = arith.constant 1 : i32
    %5 = arith.cmpi eq, %arg0, %c1_i32 : i32
    %6 = arith.extui %5 : i1 to i32
    %c0_i32_1 = arith.constant 0 : i32
    %7 = arith.cmpi ne, %6, %c0_i32_1 : i32
    scf.if %7 {
      %c0 = arith.constant 0 : index
      %c0_2 = arith.constant 0 : index
      %8 = vector.load %arg8[%c0, %c0_2] : memref<1x128xf32, #tpu.memory_space<vmem>>, vector<1x128xf32>
      %cst = arith.constant 0.001953125 : f32
      %9 = vector.broadcast %cst : f32 to vector<1x128xf32>
      %10 = arith.mulf %8, %9 : vector<1x128xf32>
      %c0_3 = arith.constant 0 : index
      %c0_4 = arith.constant 0 : index
      %11 = vector.load %arg9[%c0_3, %c0_4] : memref<1x128xf32, #tpu.memory_space<vmem>>, vector<1x128xf32>
      %cst_5 = arith.constant 0.001953125 : f32
      %12 = vector.broadcast %cst_5 : f32 to vector<1x128xf32>
      %13 = arith.mulf %11, %12 : vector<1x128xf32>
      %14 = arith.mulf %10, %10 : vector<1x128xf32>
      %15 = arith.subf %13, %14 : vector<1x128xf32>
      %cst_6 = arith.constant 0.000000e+00 : f32
      %16 = vector.broadcast %cst_6 : f32 to vector<1x128xf32>
      %17 = arith.maximumf %15, %16 : vector<1x128xf32>
      %c0_7 = arith.constant 0 : index
      %c0_8 = arith.constant 0 : index
      %18 = vector.load %arg4[%c0_7, %c0_8] : memref<1x128xf32, #tpu.memory_space<vmem>>, vector<1x128xf32>
      %cst_9 = arith.constant 9.99999974E-6 : f32
      %19 = vector.broadcast %cst_9 : f32 to vector<1x128xf32>
      %20 = arith.addf %17, %19 : vector<1x128xf32>
      %21 = math.rsqrt %20 : vector<1x128xf32>
      %22 = arith.mulf %18, %21 : vector<1x128xf32>
      %c0_10 = arith.constant 0 : index
      %c0_11 = arith.constant 0 : index
      %23 = vector.load %arg5[%c0_10, %c0_11] : memref<1x128xf32, #tpu.memory_space<vmem>>, vector<1x128xf32>
      %24 = arith.mulf %10, %22 : vector<1x128xf32>
      %25 = arith.subf %23, %24 : vector<1x128xf32>
      %26 = arith.index_cast %1 : i32 to index
      %c0_12 = arith.constant 0 : index
      %27 = vector.load %arg7[%26, %c0_12] : memref<512x128xf32, #tpu.memory_space<vmem>>, vector<512x128xf32>
      %28 = vector.broadcast %22 : vector<1x128xf32> to vector<512x128xf32>
      %29 = arith.mulf %27, %28 : vector<512x128xf32>
      %30 = vector.broadcast %25 : vector<1x128xf32> to vector<512x128xf32>
      %31 = arith.addf %29, %30 : vector<512x128xf32>
      %cst_13 = arith.constant 0.000000e+00 : f32
      %32 = vector.broadcast %cst_13 : f32 to vector<512x128xf32>
      %33 = arith.maximumf %31, %32 : vector<512x128xf32>
      %34 = arith.truncf %33 : vector<512x128xf32> to vector<512x128xbf16>
      %c0_14 = arith.constant 0 : index
      %c0_15 = arith.constant 0 : index
      %35 = vector.load %arg6[%c0_14, %c0_15] : memref<512x128xbf16, #tpu.memory_space<vmem>>, vector<512x128xbf16>
      tpu.vector_store %arg6[%c0_14, %c0_15], %34 {strides = array<i32>} : memref<512x128xbf16, #tpu.memory_space<vmem>>, vector<512x128xbf16>,
    } else {
    }
    return
  }
  func.func @transform_0(%arg0: i32, %arg1: i32) -> (i32, i32) {
    %c1_i32 = arith.constant 1 : i32
    %0 = arith.subi %c1_i32, %arg0 : i32
    %1 = arith.muli %arg1, %0 : i32
    %c0_i32 = arith.constant 0 : i32
    %c0_i32_0 = arith.constant 0 : i32
    return %1, %c0_i32 : i32, i32
  }
  func.func @transform_1(%arg0: i32, %arg1: i32) -> (i32, i32) {
    %c0_i32 = arith.constant 0 : i32
    %c0_i32_0 = arith.constant 0 : i32
    %c0_i32_1 = arith.constant 0 : i32
    return %c0_i32, %c0_i32_0 : i32, i32
  }
  func.func @transform_2(%arg0: i32, %arg1: i32) -> (i32, i32) {
    %c0_i32 = arith.constant 0 : i32
    %c0_i32_0 = arith.constant 0 : i32
    %c0_i32_1 = arith.constant 0 : i32
    return %c0_i32, %c0_i32_0 : i32, i32
  }
  func.func @transform_3(%arg0: i32, %arg1: i32) -> (i32, i32) {
    %c0_i32 = arith.constant 0 : i32
    %c0_i32_0 = arith.constant 0 : i32
    %c0_i32_1 = arith.constant 0 : i32
    return %c0_i32, %c0_i32_0 : i32, i32
  }
  func.func @transform_4(%arg0: i32, %arg1: i32) -> (i32, i32) {
    %0 = arith.muli %arg1, %arg0 : i32
    %c0_i32 = arith.constant 0 : i32
    %c0_i32_0 = arith.constant 0 : i32
    return %0, %c0_i32 : i32, i32
  }
}

module attributes {stable_mosaic.version = 11 : i64} {
  func.func @kernel(%arg0: i32, %arg1: i32, %arg2: memref<128x1024xbf16, #tpu.memory_space<vmem>>, %arg3: memref<1024x128xbf16, #tpu.memory_space<vmem>>, %arg4: memref<1x128xf32, #tpu.memory_space<vmem>>, %arg5: memref<1x128xf32, #tpu.memory_space<vmem>>, %arg6: memref<128x128xbf16, #tpu.memory_space<vmem>>, %arg7: memref<128x128xf32, #tpu.memory_space<vmem>>, %arg8: memref<1x128xf32, #tpu.memory_space<vmem>>, %arg9: memref<1x128xf32, #tpu.memory_space<vmem>>) attributes {dimension_semantics = [#tpu.dimension_semantics<arbitrary>, #tpu.dimension_semantics<arbitrary>], iteration_bounds = array<i64: 2, 1>, scalar_prefetch = 0 : i64, scratch_operands = 3 : i64, tpu.core_type = #tpu.core_type<tc>, window_params = [{transform_indices = @transform_0, window_bounds = array<i64: 128, 1024>}, {pipeline_mode = #tpu.pipeline_mode<synchronous>, transform_indices = @transform_1, window_bounds = array<i64: 1024, 128>}, {pipeline_mode = #tpu.pipeline_mode<synchronous>, transform_indices = @transform_2, window_bounds = array<i64: 1, 128>}, {pipeline_mode = #tpu.pipeline_mode<synchronous>, transform_indices = @transform_3, window_bounds = array<i64: 1, 128>}, {transform_indices = @transform_4, window_bounds = array<i64: 128, 128>}]} {
    %c128_i32 = arith.constant 128 : i32
    %0 = arith.muli %arg1, %c128_i32 : i32
    %1 = tpu.assume_multiple %0, 128 : i32
    %c0_i32 = arith.constant 0 : i32
    %2 = arith.cmpi eq, %arg0, %c0_i32 : i32
    %3 = arith.extui %2 : i1 to i32
    %c0_i32_0 = arith.constant 0 : i32
    %4 = arith.cmpi ne, %3, %c0_i32_0 : i32
    scf.if %4 {
      %c0_i32_2 = arith.constant 0 : i32
      %8 = arith.cmpi eq, %arg1, %c0_i32_2 : i32
      %9 = arith.extui %8 : i1 to i32
      %c0_i32_3 = arith.constant 0 : i32
      %10 = arith.cmpi ne, %9, %c0_i32_3 : i32
      scf.if %10 {
        %cst_18 = arith.constant 0.000000e+00 : f32
        %27 = vector.broadcast %cst_18 : f32 to vector<1x128xf32>
        %c0_19 = arith.constant 0 : index
        %c0_20 = arith.constant 0 : index
        %28 = vector.load %arg8[%c0_19, %c0_20] : memref<1x128xf32, #tpu.memory_space<vmem>>, vector<1x128xf32>
        tpu.vector_store %arg8[%c0_19, %c0_20], %27 {strides = array<i32>} : memref<1x128xf32, #tpu.memory_space<vmem>>, vector<1x128xf32>,
        %cst_21 = arith.constant 0.000000e+00 : f32
        %29 = vector.broadcast %cst_21 : f32 to vector<1x128xf32>
        %c0_22 = arith.constant 0 : index
        %c0_23 = arith.constant 0 : index
        %30 = vector.load %arg9[%c0_22, %c0_23] : memref<1x128xf32, #tpu.memory_space<vmem>>, vector<1x128xf32>
        tpu.vector_store %arg9[%c0_22, %c0_23], %29 {strides = array<i32>} : memref<1x128xf32, #tpu.memory_space<vmem>>, vector<1x128xf32>,
      } else {
      }
      %c0 = arith.constant 0 : index
      %c0_4 = arith.constant 0 : index
      %11 = vector.load %arg2[%c0, %c0_4] : memref<128x1024xbf16, #tpu.memory_space<vmem>>, vector<128x1024xbf16>
      %c0_5 = arith.constant 0 : index
      %c0_6 = arith.constant 0 : index
      %12 = vector.load %arg3[%c0_5, %c0_6] : memref<1024x128xbf16, #tpu.memory_space<vmem>>, vector<1024x128xbf16>
      %cst = arith.constant dense<0.000000e+00> : vector<128x128xf32>
      %13 = tpu.matmul %11, %12, %cst {dimension_numbers = #tpu.dot_dimension_numbers<[1], [0], [0], [1], [0, 0, 1, 1], [], []>} : vector<128x1024xbf16>, vector<1024x128xbf16>, vector<128x128xf32> -> vector<128x128xf32>
      %14 = arith.index_cast %1 : i32 to index
      %c0_7 = arith.constant 0 : index
      %15 = vector.load %arg7[%14, %c0_7] : memref<128x128xf32, #tpu.memory_space<vmem>>, vector<128x128xf32>
      tpu.vector_store %arg7[%14, %c0_7], %13 {strides = array<i32>} : memref<128x128xf32, #tpu.memory_space<vmem>>, vector<128x128xf32>,
      %c0_8 = arith.constant 0 : index
      %c0_9 = arith.constant 0 : index
      %16 = vector.load %arg8[%c0_8, %c0_9] : memref<1x128xf32, #tpu.memory_space<vmem>>, vector<1x128xf32>
      %cst_10 = arith.constant dense<0.000000e+00> : vector<128xf32>
      %17 = vector.multi_reduction <add>, %13, %cst_10 [0] : vector<128x128xf32> to vector<128xf32>
      %18 = vector.shape_cast %17 : vector<128xf32> to vector<1x128xf32>
      %19 = arith.addf %16, %18 : vector<1x128xf32>
      %c0_11 = arith.constant 0 : index
      %c0_12 = arith.constant 0 : index
      %20 = vector.load %arg8[%c0_11, %c0_12] : memref<1x128xf32, #tpu.memory_space<vmem>>, vector<1x128xf32>
      tpu.vector_store %arg8[%c0_11, %c0_12], %19 {strides = array<i32>} : memref<1x128xf32, #tpu.memory_space<vmem>>, vector<1x128xf32>,
      %c0_13 = arith.constant 0 : index
      %c0_14 = arith.constant 0 : index
      %21 = vector.load %arg9[%c0_13, %c0_14] : memref<1x128xf32, #tpu.memory_space<vmem>>, vector<1x128xf32>
      %22 = arith.mulf %13, %13 : vector<128x128xf32>
      %cst_15 = arith.constant dense<0.000000e+00> : vector<128xf32>
      %23 = vector.multi_reduction <add>, %22, %cst_15 [0] : vector<128x128xf32> to vector<128xf32>
      %24 = vector.shape_cast %23 : vector<128xf32> to vector<1x128xf32>
      %25 = arith.addf %21, %24 : vector<1x128xf32>
      %c0_16 = arith.constant 0 : index
      %c0_17 = arith.constant 0 : index
      %26 = vector.load %arg9[%c0_16, %c0_17] : memref<1x128xf32, #tpu.memory_space<vmem>>, vector<1x128xf32>
      tpu.vector_store %arg9[%c0_16, %c0_17], %25 {strides = array<i32>} : memref<1x128xf32, #tpu.memory_space<vmem>>, vector<1x128xf32>,
    } else {
    }
    %c1_i32 = arith.constant 1 : i32
    %5 = arith.cmpi eq, %arg0, %c1_i32 : i32
    %6 = arith.extui %5 : i1 to i32
    %c0_i32_1 = arith.constant 0 : i32
    %7 = arith.cmpi ne, %6, %c0_i32_1 : i32
    scf.if %7 {
      %c0 = arith.constant 0 : index
      %c0_2 = arith.constant 0 : index
      %8 = vector.load %arg8[%c0, %c0_2] : memref<1x128xf32, #tpu.memory_space<vmem>>, vector<1x128xf32>
      %cst = arith.constant 7.812500e-03 : f32
      %9 = vector.broadcast %cst : f32 to vector<1x128xf32>
      %10 = arith.mulf %8, %9 : vector<1x128xf32>
      %c0_3 = arith.constant 0 : index
      %c0_4 = arith.constant 0 : index
      %11 = vector.load %arg9[%c0_3, %c0_4] : memref<1x128xf32, #tpu.memory_space<vmem>>, vector<1x128xf32>
      %cst_5 = arith.constant 7.812500e-03 : f32
      %12 = vector.broadcast %cst_5 : f32 to vector<1x128xf32>
      %13 = arith.mulf %11, %12 : vector<1x128xf32>
      %14 = arith.mulf %10, %10 : vector<1x128xf32>
      %15 = arith.subf %13, %14 : vector<1x128xf32>
      %cst_6 = arith.constant 0.000000e+00 : f32
      %16 = vector.broadcast %cst_6 : f32 to vector<1x128xf32>
      %17 = arith.maximumf %15, %16 : vector<1x128xf32>
      %c0_7 = arith.constant 0 : index
      %c0_8 = arith.constant 0 : index
      %18 = vector.load %arg4[%c0_7, %c0_8] : memref<1x128xf32, #tpu.memory_space<vmem>>, vector<1x128xf32>
      %cst_9 = arith.constant 9.99999974E-6 : f32
      %19 = vector.broadcast %cst_9 : f32 to vector<1x128xf32>
      %20 = arith.addf %17, %19 : vector<1x128xf32>
      %21 = math.rsqrt %20 : vector<1x128xf32>
      %22 = arith.mulf %18, %21 : vector<1x128xf32>
      %c0_10 = arith.constant 0 : index
      %c0_11 = arith.constant 0 : index
      %23 = vector.load %arg5[%c0_10, %c0_11] : memref<1x128xf32, #tpu.memory_space<vmem>>, vector<1x128xf32>
      %24 = arith.mulf %10, %22 : vector<1x128xf32>
      %25 = arith.subf %23, %24 : vector<1x128xf32>
      %26 = arith.index_cast %1 : i32 to index
      %c0_12 = arith.constant 0 : index
      %27 = vector.load %arg7[%26, %c0_12] : memref<128x128xf32, #tpu.memory_space<vmem>>, vector<128x128xf32>
      %28 = vector.broadcast %22 : vector<1x128xf32> to vector<128x128xf32>
      %29 = arith.mulf %27, %28 : vector<128x128xf32>
      %30 = vector.broadcast %25 : vector<1x128xf32> to vector<128x128xf32>
      %31 = arith.addf %29, %30 : vector<128x128xf32>
      %cst_13 = arith.constant 0.000000e+00 : f32
      %32 = vector.broadcast %cst_13 : f32 to vector<128x128xf32>
      %33 = arith.maximumf %31, %32 : vector<128x128xf32>
      %34 = arith.truncf %33 : vector<128x128xf32> to vector<128x128xbf16>
      %c0_14 = arith.constant 0 : index
      %c0_15 = arith.constant 0 : index
      %35 = vector.load %arg6[%c0_14, %c0_15] : memref<128x128xbf16, #tpu.memory_space<vmem>>, vector<128x128xbf16>
      tpu.vector_store %arg6[%c0_14, %c0_15], %34 {strides = array<i32>} : memref<128x128xbf16, #tpu.memory_space<vmem>>, vector<128x128xbf16>,
    } else {
    }
    return
  }
  func.func @transform_0(%arg0: i32, %arg1: i32) -> (i32, i32) {
    %c1_i32 = arith.constant 1 : i32
    %0 = arith.subi %c1_i32, %arg0 : i32
    %1 = arith.muli %arg1, %0 : i32
    %c0_i32 = arith.constant 0 : i32
    %c0_i32_0 = arith.constant 0 : i32
    return %1, %c0_i32 : i32, i32
  }
  func.func @transform_1(%arg0: i32, %arg1: i32) -> (i32, i32) {
    %c0_i32 = arith.constant 0 : i32
    %c0_i32_0 = arith.constant 0 : i32
    %c0_i32_1 = arith.constant 0 : i32
    return %c0_i32, %c0_i32_0 : i32, i32
  }
  func.func @transform_2(%arg0: i32, %arg1: i32) -> (i32, i32) {
    %c0_i32 = arith.constant 0 : i32
    %c0_i32_0 = arith.constant 0 : i32
    %c0_i32_1 = arith.constant 0 : i32
    return %c0_i32, %c0_i32_0 : i32, i32
  }
  func.func @transform_3(%arg0: i32, %arg1: i32) -> (i32, i32) {
    %c0_i32 = arith.constant 0 : i32
    %c0_i32_0 = arith.constant 0 : i32
    %c0_i32_1 = arith.constant 0 : i32
    return %c0_i32, %c0_i32_0 : i32, i32
  }
  func.func @transform_4(%arg0: i32, %arg1: i32) -> (i32, i32) {
    %0 = arith.muli %arg1, %arg0 : i32
    %c0_i32 = arith.constant 0 : i32
    %c0_i32_0 = arith.constant 0 : i32
    return %0, %c0_i32 : i32, i32
  }
}

module attributes {stable_mosaic.version = 11 : i64} {
  func.func @kernel(%arg0: i32, %arg1: i32, %arg2: memref<32x2048xbf16, #tpu.memory_space<vmem>>, %arg3: memref<2048x256xbf16, #tpu.memory_space<vmem>>, %arg4: memref<1x256xf32, #tpu.memory_space<vmem>>, %arg5: memref<1x256xf32, #tpu.memory_space<vmem>>, %arg6: memref<32x256xbf16, #tpu.memory_space<vmem>>, %arg7: memref<32x256xf32, #tpu.memory_space<vmem>>, %arg8: memref<1x256xf32, #tpu.memory_space<vmem>>, %arg9: memref<1x256xf32, #tpu.memory_space<vmem>>) attributes {dimension_semantics = [#tpu.dimension_semantics<arbitrary>, #tpu.dimension_semantics<arbitrary>], iteration_bounds = array<i64: 2, 1>, scalar_prefetch = 0 : i64, scratch_operands = 3 : i64, tpu.core_type = #tpu.core_type<tc>, window_params = [{transform_indices = @transform_0, window_bounds = array<i64: 32, 2048>}, {pipeline_mode = #tpu.pipeline_mode<synchronous>, transform_indices = @transform_1, window_bounds = array<i64: 2048, 256>}, {pipeline_mode = #tpu.pipeline_mode<synchronous>, transform_indices = @transform_2, window_bounds = array<i64: 1, 256>}, {pipeline_mode = #tpu.pipeline_mode<synchronous>, transform_indices = @transform_3, window_bounds = array<i64: 1, 256>}, {transform_indices = @transform_4, window_bounds = array<i64: 32, 256>}]} {
    %c32_i32 = arith.constant 32 : i32
    %0 = arith.muli %arg1, %c32_i32 : i32
    %1 = tpu.assume_multiple %0, 32 : i32
    %c0_i32 = arith.constant 0 : i32
    %2 = arith.cmpi eq, %arg0, %c0_i32 : i32
    %3 = arith.extui %2 : i1 to i32
    %c0_i32_0 = arith.constant 0 : i32
    %4 = arith.cmpi ne, %3, %c0_i32_0 : i32
    scf.if %4 {
      %c0_i32_2 = arith.constant 0 : i32
      %8 = arith.cmpi eq, %arg1, %c0_i32_2 : i32
      %9 = arith.extui %8 : i1 to i32
      %c0_i32_3 = arith.constant 0 : i32
      %10 = arith.cmpi ne, %9, %c0_i32_3 : i32
      scf.if %10 {
        %cst_18 = arith.constant 0.000000e+00 : f32
        %27 = vector.broadcast %cst_18 : f32 to vector<1x256xf32>
        %c0_19 = arith.constant 0 : index
        %c0_20 = arith.constant 0 : index
        %28 = vector.load %arg8[%c0_19, %c0_20] : memref<1x256xf32, #tpu.memory_space<vmem>>, vector<1x256xf32>
        tpu.vector_store %arg8[%c0_19, %c0_20], %27 {strides = array<i32>} : memref<1x256xf32, #tpu.memory_space<vmem>>, vector<1x256xf32>,
        %cst_21 = arith.constant 0.000000e+00 : f32
        %29 = vector.broadcast %cst_21 : f32 to vector<1x256xf32>
        %c0_22 = arith.constant 0 : index
        %c0_23 = arith.constant 0 : index
        %30 = vector.load %arg9[%c0_22, %c0_23] : memref<1x256xf32, #tpu.memory_space<vmem>>, vector<1x256xf32>
        tpu.vector_store %arg9[%c0_22, %c0_23], %29 {strides = array<i32>} : memref<1x256xf32, #tpu.memory_space<vmem>>, vector<1x256xf32>,
      } else {
      }
      %c0 = arith.constant 0 : index
      %c0_4 = arith.constant 0 : index
      %11 = vector.load %arg2[%c0, %c0_4] : memref<32x2048xbf16, #tpu.memory_space<vmem>>, vector<32x2048xbf16>
      %c0_5 = arith.constant 0 : index
      %c0_6 = arith.constant 0 : index
      %12 = vector.load %arg3[%c0_5, %c0_6] : memref<2048x256xbf16, #tpu.memory_space<vmem>>, vector<2048x256xbf16>
      %cst = arith.constant dense<0.000000e+00> : vector<32x256xf32>
      %13 = tpu.matmul %11, %12, %cst {dimension_numbers = #tpu.dot_dimension_numbers<[1], [0], [0], [1], [0, 0, 1, 1], [], []>} : vector<32x2048xbf16>, vector<2048x256xbf16>, vector<32x256xf32> -> vector<32x256xf32>
      %14 = arith.index_cast %1 : i32 to index
      %c0_7 = arith.constant 0 : index
      %15 = vector.load %arg7[%14, %c0_7] : memref<32x256xf32, #tpu.memory_space<vmem>>, vector<32x256xf32>
      tpu.vector_store %arg7[%14, %c0_7], %13 {strides = array<i32>} : memref<32x256xf32, #tpu.memory_space<vmem>>, vector<32x256xf32>,
      %c0_8 = arith.constant 0 : index
      %c0_9 = arith.constant 0 : index
      %16 = vector.load %arg8[%c0_8, %c0_9] : memref<1x256xf32, #tpu.memory_space<vmem>>, vector<1x256xf32>
      %cst_10 = arith.constant dense<0.000000e+00> : vector<256xf32>
      %17 = vector.multi_reduction <add>, %13, %cst_10 [0] : vector<32x256xf32> to vector<256xf32>
      %18 = vector.shape_cast %17 : vector<256xf32> to vector<1x256xf32>
      %19 = arith.addf %16, %18 : vector<1x256xf32>
      %c0_11 = arith.constant 0 : index
      %c0_12 = arith.constant 0 : index
      %20 = vector.load %arg8[%c0_11, %c0_12] : memref<1x256xf32, #tpu.memory_space<vmem>>, vector<1x256xf32>
      tpu.vector_store %arg8[%c0_11, %c0_12], %19 {strides = array<i32>} : memref<1x256xf32, #tpu.memory_space<vmem>>, vector<1x256xf32>,
      %c0_13 = arith.constant 0 : index
      %c0_14 = arith.constant 0 : index
      %21 = vector.load %arg9[%c0_13, %c0_14] : memref<1x256xf32, #tpu.memory_space<vmem>>, vector<1x256xf32>
      %22 = arith.mulf %13, %13 : vector<32x256xf32>
      %cst_15 = arith.constant dense<0.000000e+00> : vector<256xf32>
      %23 = vector.multi_reduction <add>, %22, %cst_15 [0] : vector<32x256xf32> to vector<256xf32>
      %24 = vector.shape_cast %23 : vector<256xf32> to vector<1x256xf32>
      %25 = arith.addf %21, %24 : vector<1x256xf32>
      %c0_16 = arith.constant 0 : index
      %c0_17 = arith.constant 0 : index
      %26 = vector.load %arg9[%c0_16, %c0_17] : memref<1x256xf32, #tpu.memory_space<vmem>>, vector<1x256xf32>
      tpu.vector_store %arg9[%c0_16, %c0_17], %25 {strides = array<i32>} : memref<1x256xf32, #tpu.memory_space<vmem>>, vector<1x256xf32>,
    } else {
    }
    %c1_i32 = arith.constant 1 : i32
    %5 = arith.cmpi eq, %arg0, %c1_i32 : i32
    %6 = arith.extui %5 : i1 to i32
    %c0_i32_1 = arith.constant 0 : i32
    %7 = arith.cmpi ne, %6, %c0_i32_1 : i32
    scf.if %7 {
      %c0 = arith.constant 0 : index
      %c0_2 = arith.constant 0 : index
      %8 = vector.load %arg8[%c0, %c0_2] : memref<1x256xf32, #tpu.memory_space<vmem>>, vector<1x256xf32>
      %cst = arith.constant 3.125000e-02 : f32
      %9 = vector.broadcast %cst : f32 to vector<1x256xf32>
      %10 = arith.mulf %8, %9 : vector<1x256xf32>
      %c0_3 = arith.constant 0 : index
      %c0_4 = arith.constant 0 : index
      %11 = vector.load %arg9[%c0_3, %c0_4] : memref<1x256xf32, #tpu.memory_space<vmem>>, vector<1x256xf32>
      %cst_5 = arith.constant 3.125000e-02 : f32
      %12 = vector.broadcast %cst_5 : f32 to vector<1x256xf32>
      %13 = arith.mulf %11, %12 : vector<1x256xf32>
      %14 = arith.mulf %10, %10 : vector<1x256xf32>
      %15 = arith.subf %13, %14 : vector<1x256xf32>
      %cst_6 = arith.constant 0.000000e+00 : f32
      %16 = vector.broadcast %cst_6 : f32 to vector<1x256xf32>
      %17 = arith.maximumf %15, %16 : vector<1x256xf32>
      %c0_7 = arith.constant 0 : index
      %c0_8 = arith.constant 0 : index
      %18 = vector.load %arg4[%c0_7, %c0_8] : memref<1x256xf32, #tpu.memory_space<vmem>>, vector<1x256xf32>
      %cst_9 = arith.constant 9.99999974E-6 : f32
      %19 = vector.broadcast %cst_9 : f32 to vector<1x256xf32>
      %20 = arith.addf %17, %19 : vector<1x256xf32>
      %21 = math.rsqrt %20 : vector<1x256xf32>
      %22 = arith.mulf %18, %21 : vector<1x256xf32>
      %c0_10 = arith.constant 0 : index
      %c0_11 = arith.constant 0 : index
      %23 = vector.load %arg5[%c0_10, %c0_11] : memref<1x256xf32, #tpu.memory_space<vmem>>, vector<1x256xf32>
      %24 = arith.mulf %10, %22 : vector<1x256xf32>
      %25 = arith.subf %23, %24 : vector<1x256xf32>
      %26 = arith.index_cast %1 : i32 to index
      %c0_12 = arith.constant 0 : index
      %27 = vector.load %arg7[%26, %c0_12] : memref<32x256xf32, #tpu.memory_space<vmem>>, vector<32x256xf32>
      %28 = vector.broadcast %22 : vector<1x256xf32> to vector<32x256xf32>
      %29 = arith.mulf %27, %28 : vector<32x256xf32>
      %30 = vector.broadcast %25 : vector<1x256xf32> to vector<32x256xf32>
      %31 = arith.addf %29, %30 : vector<32x256xf32>
      %cst_13 = arith.constant 0.000000e+00 : f32
      %32 = vector.broadcast %cst_13 : f32 to vector<32x256xf32>
      %33 = arith.maximumf %31, %32 : vector<32x256xf32>
      %34 = arith.truncf %33 : vector<32x256xf32> to vector<32x256xbf16>
      %c0_14 = arith.constant 0 : index
      %c0_15 = arith.constant 0 : index
      %35 = vector.load %arg6[%c0_14, %c0_15] : memref<32x256xbf16, #tpu.memory_space<vmem>>, vector<32x256xbf16>
      tpu.vector_store %arg6[%c0_14, %c0_15], %34 {strides = array<i32>} : memref<32x256xbf16, #tpu.memory_space<vmem>>, vector<32x256xbf16>,
    } else {
    }
    return
  }
  func.func @transform_0(%arg0: i32, %arg1: i32) -> (i32, i32) {
    %c1_i32 = arith.constant 1 : i32
    %0 = arith.subi %c1_i32, %arg0 : i32
    %1 = arith.muli %arg1, %0 : i32
    %c0_i32 = arith.constant 0 : i32
    %c0_i32_0 = arith.constant 0 : i32
    return %1, %c0_i32 : i32, i32
  }
  func.func @transform_1(%arg0: i32, %arg1: i32) -> (i32, i32) {
    %c0_i32 = arith.constant 0 : i32
    %c0_i32_0 = arith.constant 0 : i32
    %c0_i32_1 = arith.constant 0 : i32
    return %c0_i32, %c0_i32_0 : i32, i32
  }
  func.func @transform_2(%arg0: i32, %arg1: i32) -> (i32, i32) {
    %c0_i32 = arith.constant 0 : i32
    %c0_i32_0 = arith.constant 0 : i32
    %c0_i32_1 = arith.constant 0 : i32
    return %c0_i32, %c0_i32_0 : i32, i32
  }
  func.func @transform_3(%arg0: i32, %arg1: i32) -> (i32, i32) {
    %c0_i32 = arith.constant 0 : i32
    %c0_i32_0 = arith.constant 0 : i32
    %c0_i32_1 = arith.constant 0 : i32
    return %c0_i32, %c0_i32_0 : i32, i32
  }
  func.func @transform_4(%arg0: i32, %arg1: i32) -> (i32, i32) {
    %0 = arith.muli %arg1, %arg0 : i32
    %c0_i32 = arith.constant 0 : i32
    %c0_i32_0 = arith.constant 0 : i32
    return %0, %c0_i32 : i32, i32
  }
}

module attributes {stable_mosaic.version = 11 : i64} {
  func.func @conv_kernel(%arg0: i32, %arg1: memref<16x4096xbf16, #tpu.memory_space<vmem>>, %arg2: memref<4096x128xbf16, #tpu.memory_space<vmem>>, %arg3: memref<16x128xf32, #tpu.memory_space<vmem>>) attributes {dimension_semantics = [#tpu.dimension_semantics<parallel>], iteration_bounds = array<i64: 1>, scalar_prefetch = 0 : i64, scratch_operands = 0 : i64, tpu.core_type = #tpu.core_type<tc>, window_params = [{transform_indices = @transform_0, window_bounds = array<i64: 16, 4096>}, {pipeline_mode = #tpu.pipeline_mode<synchronous>, transform_indices = @transform_1, window_bounds = array<i64: 4096, 128>}, {transform_indices = @transform_2, window_bounds = array<i64: 16, 128>}]} {
    %c0 = arith.constant 0 : index
    %c0_0 = arith.constant 0 : index
    %0 = vector.load %arg1[%c0, %c0_0] : memref<16x4096xbf16, #tpu.memory_space<vmem>>, vector<16x4096xbf16>
    %c0_1 = arith.constant 0 : index
    %c0_2 = arith.constant 0 : index
    %1 = vector.load %arg2[%c0_1, %c0_2] : memref<4096x128xbf16, #tpu.memory_space<vmem>>, vector<4096x128xbf16>
    %cst = arith.constant dense<0.000000e+00> : vector<16x128xf32>
    %2 = tpu.matmul %0, %1, %cst {dimension_numbers = #tpu.dot_dimension_numbers<[1], [0], [0], [1], [0, 0, 1, 1], [], []>} : vector<16x4096xbf16>, vector<4096x128xbf16>, vector<16x128xf32> -> vector<16x128xf32>
    %c0_3 = arith.constant 0 : index
    %c0_4 = arith.constant 0 : index
    %3 = vector.load %arg3[%c0_3, %c0_4] : memref<16x128xf32, #tpu.memory_space<vmem>>, vector<16x128xf32>
    tpu.vector_store %arg3[%c0_3, %c0_4], %2 {strides = array<i32>} : memref<16x128xf32, #tpu.memory_space<vmem>>, vector<16x128xf32>,
    return
  }
  func.func @transform_0(%arg0: i32) -> (i32, i32) {
    %c0_i32 = arith.constant 0 : i32
    %c0_i32_0 = arith.constant 0 : i32
    return %arg0, %c0_i32 : i32, i32
  }
  func.func @transform_1(%arg0: i32) -> (i32, i32) {
    %c0_i32 = arith.constant 0 : i32
    %c0_i32_0 = arith.constant 0 : i32
    %c0_i32_1 = arith.constant 0 : i32
    return %c0_i32, %c0_i32_0 : i32, i32
  }
  func.func @transform_2(%arg0: i32) -> (i32, i32) {
    %c0_i32 = arith.constant 0 : i32
    %c0_i32_0 = arith.constant 0 : i32
    return %arg0, %c0_i32 : i32, i32
  }
}

</mosaic_0001>

<bundles_post_ra>
// kernel: a_call__.4
= control target key start
LH: loop header
LB: loop body
LE: loop exit
PB: predicated region body
PF: predicated region fallthrough
CT: control target
= control target key end

     0   :  { %s2429_s15 = smov 0   ;;  %s2431_s16 = smov 0   ;;  %s3006_s0 = inlined_call_operand.vmem [shape: bf16[512,128], index: 0, kind: input, shape index: {}]   ;;  %s3007_s1 = inlined_call_operand.vmem [shape: bf16[128,128], index: 1, kind: input, shape index: {}]   ;;  %s3008_s2 = inlined_call_operand.vmem [shape: f32[1,128], index: 2, kind: input, shape index: {}]   ;;  %s3009_s3 = inlined_call_operand.vmem [shape: f32[1,128], index: 3, kind: input, shape index: {}]   ;;  %s3010_s4 = inlined_call_operand.vmem [shape: bf16[512,128], index: 4, kind: output, shape index: {}]  }
   0x1   :  { %s2433_s17 = smov 0  }
   0x2 LB: > { %s26_s18 = sadd.s32 1, %s2397_s16  ;;  %p1810_p0 = scmp.ge.s32.totalorder %s2401_s17, 1  ;;  %s2401_s17 = sphi %s2433_s17, %s14_s17   ;;  %s2397_s16 = sphi %s2431_s16, %s3012_s16   ;;  %s2393_s15 = sphi %s2429_s15, %s3011_s15  }
   0x3   : > { %p28_p1 = scmp.ge.s32.totalorder %s26_s18, 2  ;;  %p185_p2 = scmp.lt.s32.totalorder %s2401_s17, 3 }
   0x5   : > { %s3014_s18 = smov (%p28_p1, %s26_s18), 0  ;;  %p186_p3 = pnand %p1810_p0, %p185_p2 }
   0x6   : > { %p1811_p4 = scmp.ne.s32.totalorder (!%p186_p3), %s2393_s15, 0 }
   0x7   : > { %189 = sbr.rel (%p186_p3) target bundleno = 497 (0x1f1), region = 36 }
   0xe   : > { %237 = sbr.rel (%p1811_p4) target bundleno = 405 (0x195), region = 40  ;;  %v2337_v0 = vld [vmem:[%s3007_s1] sm:$0xff] (!%p1811_p4)   ;;  %v2338_v1 = vld [vmem:[%s3007_s1 + $0x8] sm:$0xff] (!%p1811_p4)   ;;  %v2339_v2 = vld [vmem:[%s3007_s1 + $0x10] sm:$0xff] (!%p1811_p4)   ;;  %v2403_v40 = vmov (!%p1811_p4), 0.0  }
   0xf   : > { %2216 = vmatprep.subr.bf16.mxu0 (!%p1811_p4), %v2337_v0  ;;  %2296 = vmatprep.subr.bf16.mxu1 (!%p1811_p4), %v2337_v0  ;;  %v2340_v3 = vld [vmem:[%s3007_s1 + $0x18] sm:$0xff] (!%p1811_p4)   ;;  %v2345_v4 = vld [vmem:[%s3006_s0] sm:$0xff] (!%p1811_p4)   ;;  %v2342_v6 = vld [vmem:[%s3007_s1 + $0x28] sm:$0xff] (!%p1811_p4)   ;;  %242 = vst [vmem:[#allocation3] sm:$0x1] (!%p1811_p4), %v2403_v40 }
  0x10   : > { %2217 = vmatpush3.bf16.msra.mxu0 (!%p1811_p4), %v2337_v0  ;;  %2304 = vmatpush3.bf16.msra.mxu1 (!%p1811_p4), %v2337_v0  ;;  %v2341_v5 = vld [vmem:[%s3007_s1 + $0x20] sm:$0xff] (!%p1811_p4)   ;;  %v2343_v7 = vld [vmem:[%s3007_s1 + $0x30] sm:$0xff] (!%p1811_p4)   ;;  %v2344_v8 = vld [vmem:[%s3007_s1 + $0x38] sm:$0xff] (!%p1811_p4)   ;;  %243 = vst [vmem:[#allocation4] sm:$0x1] (!%p1811_p4), %v2403_v40 }
  0x11   : > { %2218 = vmatprep.subr.bf16.mxu0 (!%p1811_p4), %v2338_v1  ;;  %2297 = vmatprep.subr.bf16.mxu1 (!%p1811_p4), %v2338_v1  ;;  %v2361_v9 = vld [vmem:[%s3006_s0 + $0x80] sm:$0xff] (!%p1811_p4)   ;;  %v2346_v10 = vld [vmem:[%s3006_s0 + $0x8] sm:$0xff] (!%p1811_p4)   ;;  %v2347_v11 = vld [vmem:[%s3006_s0 + $0x10] sm:$0xff] (!%p1811_p4)  }
  0x12   : > { %2232 = vmatprep.mubr.bf16.mxu0 (!%p1811_p4), %v2345_v4  ;;  %2264 = vmatprep.mubr.bf16.mxu1 (!%p1811_p4), %v2361_v9  ;;  %v2362_v12 = vld [vmem:[%s3006_s0 + $0x88] sm:$0xff] (!%p1811_p4)   ;;  %v2363_v13 = vld [vmem:[%s3006_s0 + $0x90] sm:$0xff] (!%p1811_p4)   ;;  %v2348_v14 = vld [vmem:[%s3006_s0 + $0x18] sm:$0xff] (!%p1811_p4)  }
  0x13   : > { %v2349_v15 = vld [vmem:[%s3006_s0 + $0x20] sm:$0xff] (!%p1811_p4)   ;;  %v2364_v16 = vld [vmem:[%s3006_s0 + $0x98] sm:$0xff] (!%p1811_p4)   ;;  %v2350_v18 = vld [vmem:[%s3006_s0 + $0x28] sm:$0xff] (!%p1811_p4)  }
  0x14   : > { %2219 = vmatpush3.bf16.msra.mxu0 (!%p1811_p4), %v2338_v1  ;;  %2305 = vmatpush3.bf16.msra.mxu1 (!%p1811_p4), %v2338_v1  ;;  %v2365_v17 = vld [vmem:[%s3006_s0 + $0xa0] sm:$0xff] (!%p1811_p4)   ;;  %v2366_v19 = vld [vmem:[%s3006_s0 + $0xa8] sm:$0xff] (!%p1811_p4)   ;;  %v2351_v20 = vld [vmem:[%s3006_s0 + $0x30] sm:$0xff] (!%p1811_p4)  }
  0x15   : > { %2220 = vmatprep.subr.bf16.mxu0 %v2339_v2  ;;  %2298 = vmatprep.subr.bf16.mxu1 %v2339_v2  ;;  %v2367_v21 = vld [vmem:[%s3006_s0 + $0xb0] sm:$0xff]   ;;  %v2352_v22 = vld [vmem:[%s3006_s0 + $0x38] sm:$0xff]   ;;  %v2353_v24 = vld [vmem:[%s3006_s0 + $0x40] sm:$0xff]  }
  0x16   : > { %v2368_v23 = vld [vmem:[%s3006_s0 + $0xb8] sm:$0xff]   ;;  %v2369_v25 = vld [vmem:[%s3006_s0 + $0xc0] sm:$0xff]   ;;  %v2354_v26 = vld [vmem:[%s3006_s0 + $0x48] sm:$0xff]  }
  0x17   : > { %v2370_v27 = vld [vmem:[%s3006_s0 + $0xc8] sm:$0xff]   ;;  %v2355_v28 = vld [vmem:[%s3006_s0 + $0x50] sm:$0xff]   ;;  %v2356_v30 = vld [vmem:[%s3006_s0 + $0x58] sm:$0xff]  }
  0x18   : > { %2221 = vmatpush3.bf16.msra.mxu0 %v2339_v2  ;;  %2306 = vmatpush3.bf16.msra.mxu1 %v2339_v2  ;;  %v2371_v29 = vld [vmem:[%s3006_s0 + $0xd0] sm:$0xff]   ;;  %v2372_v31 = vld [vmem:[%s3006_s0 + $0xd8] sm:$0xff]   ;;  %v2357_v32 = vld [vmem:[%s3006_s0 + $0x60] sm:$0xff]  }
  0x19   : > { %2222 = vmatprep.subr.bf16.mxu0 %v2340_v3  ;;  %2299 = vmatprep.subr.bf16.mxu1 %v2340_v3  ;;  %v2373_v33 = vld [vmem:[%s3006_s0 + $0xe0] sm:$0xff]   ;;  %v2358_v34 = vld [vmem:[%s3006_s0 + $0x68] sm:$0xff]   ;;  %v2359_v36 = vld [vmem:[%s3006_s0 + $0x70] sm:$0xff]  }
  0x1a   : > { %v2374_v35 = vld [vmem:[%s3006_s0 + $0xe8] sm:$0xff]   ;;  %v2375_v37 = vld [vmem:[%s3006_s0 + $0xf0] sm:$0xff]   ;;  %v2360_v38 = vld [vmem:[%s3006_s0 + $0x78] sm:$0xff]  }
  0x1b   : > { %v2376_v39 = vld [vmem:[%s3006_s0 + $0xf8] sm:$0xff]  }
  0x1c   : > { %2223 = vmatpush3.bf16.msra.mxu0 %v2340_v3  ;;  %2307 = vmatpush3.bf16.msra.mxu1 %v2340_v3 }
  0x1d   : > { %2224 = vmatprep.subr.bf16.mxu0 %v2341_v5  ;;  %2300 = vmatprep.subr.bf16.mxu1 %v2341_v5 }
  0x20   : > { %2225 = vmatpush3.bf16.msra.mxu0 %v2341_v5  ;;  %2308 = vmatpush3.bf16.msra.mxu1 %v2341_v5 }
  0x21   : > { %2226 = vmatprep.subr.bf16.mxu0 %v2342_v6  ;;  %2301 = vmatprep.subr.bf16.mxu1 %v2342_v6 }
  0x24   : > { %2227 = vmatpush3.bf16.msra.mxu0 %v2342_v6  ;;  %2309 = vmatpush3.bf16.msra.mxu1 %v2342_v6 }
  0x25   : > { %2228 = vmatprep.subr.bf16.mxu0 %v2343_v7  ;;  %2302 = vmatprep.subr.bf16.mxu1 %v2343_v7 }
  0x28   : > { %2229 = vmatpush3.bf16.msra.mxu0 %v2343_v7  ;;  %2310 = vmatpush3.bf16.msra.mxu1 %v2343_v7 }
  0x29   : > { %2230 = vmatprep.subr.bf16.mxu0 %v2344_v8  ;;  %2303 = vmatprep.subr.bf16.mxu1 %v2344_v8 }
  0x2c   : > { %2231 = vmatpush3.bf16.msra.mxu0 %v2344_v8  ;;  %2311 = vmatpush3.bf16.msra.mxu1 %v2344_v8 }
  0x2f   : > { %2233 = vmatmul.mubr.bf16.vlgmr.msra.gmra.mrb[0].mxu0 %v2346_v10  ;;  %2265 = vmatmul.mubr.bf16.vlgmr.msra.gmra.mrb[0].mxu1 %v2362_v12 }
  0x30   : > { %2236 = vmatprep.mubr.bf16.mxu0 %v2347_v11  ;;  %2268 = vmatprep.mubr.bf16.mxu1 %v2363_v13 }
  0x37   : > { %2237 = vmatmul.mubr.bf16.gmra.mrb[4].mxu0 %v2348_v14  ;;  %2269 = vmatmul.mubr.bf16.gmra.mrb[4].mxu1 %v2364_v16 }
  0x38   : > { %2240 = vmatprep.mubr.bf16.mxu0 %v2349_v15  ;;  %2272 = vmatprep.mubr.bf16.mxu1 %v2365_v17 }
  0x3f   : > { %2241 = vmatmul.mubr.bf16.gmra.mrb[8].mxu0 %v2350_v18  ;;  %2273 = vmatmul.mubr.bf16.gmra.mrb[8].mxu1 %v2366_v19 }
  0x40   : > { %2244 = vmatprep.mubr.bf16.mxu0 %v2351_v20  ;;  %2276 = vmatprep.mubr.bf16.mxu1 %v2367_v21 }
  0x47   : > { %2245 = vmatmul.mubr.bf16.gmra.mrb[12].mxu0 %v2352_v22  ;;  %2277 = vmatmul.mubr.bf16.gmra.mrb[12].mxu1 %v2368_v23 }
  0x48   : > { %2248 = vmatprep.mubr.bf16.mxu0 %v2353_v24  ;;  %2280 = vmatprep.mubr.bf16.mxu1 %v2369_v25 }
  0x4f   : > { %2249 = vmatmul.mubr.bf16.gmra.mrb[16].mxu0 %v2354_v26  ;;  %2281 = vmatmul.mubr.bf16.gmra.mrb[16].mxu1 %v2370_v27 }
  0x50   : > { %2252 = vmatprep.mubr.bf16.mxu0 %v2355_v28  ;;  %2284 = vmatprep.mubr.bf16.mxu1 %v2371_v29 }
  0x57   : > { %2253 = vmatmul.mubr.bf16.gmra.mrb[20].mxu0 %v2356_v30  ;;  %2285 = vmatmul.mubr.bf16.gmra.mrb[20].mxu1 %v2372_v31 }
  0x58   : > { %2256 = vmatprep.mubr.bf16.mxu0 %v2357_v32  ;;  %2288 = vmatprep.mubr.bf16.mxu1 %v2373_v33 }
  0x5f   : > { %2257 = vmatmul.mubr.bf16.gmra.mrb[24].mxu0 %v2358_v34  ;;  %2289 = vmatmul.mubr.bf16.gmra.mrb[24].mxu1 %v2374_v35 }
  0x60   : > { %2260 = vmatprep.mubr.bf16.mxu0 %v2359_v36  ;;  %2292 = vmatprep.mubr.bf16.mxu1 %v2375_v37 }
  0x67   : > { %2261 = vmatmul.mubr.bf16.gmra.mrb[28].mxu0 %v2360_v38  ;;  %2293 = vmatmul.mubr.bf16.gmra.mrb[28].mxu1 %v2376_v39 }
 0x102   : > { %v2234_v41 = vpop.f32.mrb[0].mxu0  ;;  %v2570_v42 = vpop.f32.mrb[0].mxu1 }
 0x103   : > { %856 = vst [vmem:[#allocation2 + $0x10] sm:$0xff] %v2234_v41  ;;  %v598_v43 = vpop.f32.mrb[1].mxu0  ;;  %888 = vst [vmem:[#allocation2 + $0x110] sm:$0xff] %v2570_v42  ;;  %v2573_v44 = vpop.f32.mrb[1].mxu1  ;;  %v993_v52 = vmul.f32 %v2234_v41, %v2234_v41 }
 0x104   : > { %854 = vst [vmem:[#allocation2] sm:$0xff] %v598_v43  ;;  %v2235_v45 = vpop.f32.mrb[2].mxu0  ;;  %886 = vst [vmem:[#allocation2 + $0x100] sm:$0xff] %v2573_v44  ;;  %v2576_v46 = vpop.f32.mrb[2].mxu1  ;;  %v991_v49 = vmul.f32 %v598_v43, %v598_v43 }
 0x105   : > { %857 = vst [vmem:[#allocation2 + $0x18] sm:$0xff] %v2235_v45  ;;  %v601_v47 = vpop.f32.mrb[3].mxu0  ;;  %889 = vst [vmem:[#allocation2 + $0x118] sm:$0xff] %v2576_v46  ;;  %v2579_v48 = vpop.f32.mrb[3].mxu1  ;;  %v994_v55 = vmul.f32 %v2235_v45, %v2235_v45 }
 0x106   : > { %855 = vst [vmem:[#allocation2 + $0x8] sm:$0xff] %v601_v47  ;;  %v919_v50 = vadd.f32 %v601_v47, %v598_v43  ;;  %v992_v51 = vmul.f32 %v601_v47, %v601_v47  ;;  %887 = vst [vmem:[#allocation2 + $0x108] sm:$0xff] %v2579_v48 }
 0x108   : > { %v920_v53 = vadd.f32 %v2234_v41, %v919_v50  ;;  %v1055_v54 = vadd.f32 %v992_v51, %v991_v49 }
 0x10a   : > { %v1056_v56 = vadd.f32 %v1055_v54, %v993_v52  ;;  %v2238_v57 = vpop.f32.mrb[4].mxu0  ;;  %v921_v58 = vadd.f32 %v2235_v45, %v920_v53  ;;  %v2582_v59 = vpop.f32.mrb[4].mxu1 }
 0x10b   : > { %860 = vst [vmem:[#allocation2 + $0x30] sm:$0xff] %v2238_v57  ;;  %v614_v60 = vpop.f32.mrb[5].mxu0  ;;  %892 = vst [vmem:[#allocation2 + $0x130] sm:$0xff] %v2582_v59  ;;  %v2585_v61 = vpop.f32.mrb[5].mxu1  ;;  %v997_v8 = vmul.f32 %v2238_v57, %v2238_v57 }
 0x10c   : > { %858 = vst [vmem:[#allocation2 + $0x20] sm:$0xff] %v614_v60  ;;  %v922_v62 = vadd.f32 %v921_v58, %v614_v60  ;;  %v995_v63 = vmul.f32 %v614_v60, %v614_v60  ;;  %v1057_v0 = vadd.f32 %v1056_v56, %v994_v55  ;;  %v2239_v1 = vpop.f32.mrb[6].mxu0  ;;  %890 = vst [vmem:[#allocation2 + $0x120] sm:$0xff] %v2585_v61  ;;  %v2588_v2 = vpop.f32.mrb[6].mxu1 }
 0x10d   : > { %861 = vst [vmem:[#allocation2 + $0x38] sm:$0xff] %v2239_v1  ;;  %v617_v3 = vpop.f32.mrb[7].mxu0  ;;  %893 = vst [vmem:[#allocation2 + $0x138] sm:$0xff] %v2588_v2  ;;  %v2591_v4 = vpop.f32.mrb[7].mxu1  ;;  %v998_v11 = vmul.f32 %v2239_v1, %v2239_v1 }
 0x10e   : > { %v1058_v5 = vadd.f32 %v1057_v0, %v995_v63  ;;  %859 = vst [vmem:[#allocation2 + $0x28] sm:$0xff] %v617_v3  ;;  %v923_v6 = vadd.f32 %v922_v62, %v617_v3  ;;  %v996_v7 = vmul.f32 %v617_v3, %v617_v3  ;;  %891 = vst [vmem:[#allocation2 + $0x128] sm:$0xff] %v2591_v4 }
 0x110   : > { %v924_v9 = vadd.f32 %v2238_v57, %v923_v6  ;;  %v1059_v10 = vadd.f32 %v1058_v5, %v996_v7 }
 0x112   : > { %v1060_v12 = vadd.f32 %v1059_v10, %v997_v8  ;;  %v2242_v13 = vpop.f32.mrb[8].mxu0  ;;  %v925_v14 = vadd.f32 %v2239_v1, %v924_v9  ;;  %v2594_v15 = vpop.f32.mrb[8].mxu1 }
 0x113   : > { %864 = vst [vmem:[#allocation2 + $0x50] sm:$0xff] %v2242_v13  ;;  %v630_v16 = vpop.f32.mrb[9].mxu0  ;;  %896 = vst [vmem:[#allocation2 + $0x150] sm:$0xff] %v2594_v15  ;;  %v2597_v17 = vpop.f32.mrb[9].mxu1  ;;  %v1001_v28 = vmul.f32 %v2242_v13, %v2242_v13 }
 0x114   : > { %862 = vst [vmem:[#allocation2 + $0x40] sm:$0xff] %v630_v16  ;;  %v926_v18 = vadd.f32 %v925_v14, %v630_v16  ;;  %v999_v19 = vmul.f32 %v630_v16, %v630_v16  ;;  %v1061_v20 = vadd.f32 %v1060_v12, %v998_v11  ;;  %v2243_v21 = vpop.f32.mrb[10].mxu0  ;;  %894 = vst [vmem:[#allocation2 + $0x140] sm:$0xff] %v2597_v17  ;;  %v2600_v22 = vpop.f32.mrb[10].mxu1 }
 0x115   : > { %865 = vst [vmem:[#allocation2 + $0x58] sm:$0xff] %v2243_v21  ;;  %v633_v23 = vpop.f32.mrb[11].mxu0  ;;  %897 = vst [vmem:[#allocation2 + $0x158] sm:$0xff] %v2600_v22  ;;  %v2603_v24 = vpop.f32.mrb[11].mxu1  ;;  %v1002_v31 = vmul.f32 %v2243_v21, %v2243_v21 }
 0x116   : > { %v1062_v25 = vadd.f32 %v1061_v20, %v999_v19  ;;  %863 = vst [vmem:[#allocation2 + $0x48] sm:$0xff] %v633_v23  ;;  %v927_v26 = vadd.f32 %v926_v18, %v633_v23  ;;  %v1000_v27 = vmul.f32 %v633_v23, %v633_v23  ;;  %895 = vst [vmem:[#allocation2 + $0x148] sm:$0xff] %v2603_v24 }
 0x118   : > { %v928_v29 = vadd.f32 %v2242_v13, %v927_v26  ;;  %v1063_v30 = vadd.f32 %v1062_v25, %v1000_v27 }
 0x11a   : > { %v1064_v32 = vadd.f32 %v1063_v30, %v1001_v28  ;;  %v2246_v33 = vpop.f32.mrb[12].mxu0  ;;  %v929_v34 = vadd.f32 %v2243_v21, %v928_v29  ;;  %v2606_v35 = vpop.f32.mrb[12].mxu1 }
 0x11b   : > { %868 = vst [vmem:[#allocation2 + $0x70] sm:$0xff] %v2246_v33  ;;  %v646_v36 = vpop.f32.mrb[13].mxu0  ;;  %900 = vst [vmem:[#allocation2 + $0x170] sm:$0xff] %v2606_v35  ;;  %v2609_v37 = vpop.f32.mrb[13].mxu1  ;;  %v1005_v52 = vmul.f32 %v2246_v33, %v2246_v33 }
 0x11c   : > { %866 = vst [vmem:[#allocation2 + $0x60] sm:$0xff] %v646_v36  ;;  %v930_v38 = vadd.f32 %v929_v34, %v646_v36  ;;  %v1003_v39 = vmul.f32 %v646_v36, %v646_v36  ;;  %v1065_v40 = vadd.f32 %v1064_v32, %v1002_v31  ;;  %v2247_v41 = vpop.f32.mrb[14].mxu0  ;;  %898 = vst [vmem:[#allocation2 + $0x160] sm:$0xff] %v2609_v37  ;;  %v2612_v43 = vpop.f32.mrb[14].mxu1 }
 0x11d   : > { %869 = vst [vmem:[#allocation2 + $0x78] sm:$0xff] %v2247_v41  ;;  %v649_v45 = vpop.f32.mrb[15].mxu0  ;;  %901 = vst [vmem:[#allocation2 + $0x178] sm:$0xff] %v2612_v43  ;;  %v2615_v47 = vpop.f32.mrb[15].mxu1  ;;  %v1006_v55 = vmul.f32 %v2247_v41, %v2247_v41 }
 0x11e   : > { %v1066_v49 = vadd.f32 %v1065_v40, %v1003_v39  ;;  %867 = vst [vmem:[#allocation2 + $0x68] sm:$0xff] %v649_v45  ;;  %v931_v50 = vadd.f32 %v930_v38, %v649_v45  ;;  %v1004_v51 = vmul.f32 %v649_v45, %v649_v45  ;;  %899 = vst [vmem:[#allocation2 + $0x168] sm:$0xff] %v2615_v47 }
 0x120   : > { %v932_v53 = vadd.f32 %v2246_v33, %v931_v50  ;;  %v1067_v54 = vadd.f32 %v1066_v49, %v1004_v51 }
 0x122   : > { %v1068_v56 = vadd.f32 %v1067_v54, %v1005_v52  ;;  %v2250_v57 = vpop.f32.mrb[16].mxu0  ;;  %v933_v58 = vadd.f32 %v2247_v41, %v932_v53  ;;  %v2618_v60 = vpop.f32.mrb[16].mxu1 }
 0x123   : > { %872 = vst [vmem:[#allocation2 + $0x90] sm:$0xff] %v2250_v57  ;;  %v662_v62 = vpop.f32.mrb[17].mxu0  ;;  %904 = vst [vmem:[#allocation2 + $0x190] sm:$0xff] %v2618_v60  ;;  %v2621_v63 = vpop.f32.mrb[17].mxu1  ;;  %v1009_v12 = vmul.f32 %v2250_v57, %v2250_v57 }
 0x124   : > { %870 = vst [vmem:[#allocation2 + $0x80] sm:$0xff] %v662_v62  ;;  %v934_v0 = vadd.f32 %v933_v58, %v662_v62  ;;  %v1007_v1 = vmul.f32 %v662_v62, %v662_v62  ;;  %v1069_v3 = vadd.f32 %v1068_v56, %v1006_v55  ;;  %v2251_v5 = vpop.f32.mrb[18].mxu0  ;;  %902 = vst [vmem:[#allocation2 + $0x180] sm:$0xff] %v2621_v63  ;;  %v2624_v6 = vpop.f32.mrb[18].mxu1 }
 0x125   : > { %873 = vst [vmem:[#allocation2 + $0x98] sm:$0xff] %v2251_v5  ;;  %v665_v7 = vpop.f32.mrb[19].mxu0  ;;  %905 = vst [vmem:[#allocation2 + $0x198] sm:$0xff] %v2624_v6  ;;  %v2627_v8 = vpop.f32.mrb[19].mxu1  ;;  %v1010_v16 = vmul.f32 %v2251_v5, %v2251_v5 }
 0x126   : > { %v1070_v9 = vadd.f32 %v1069_v3, %v1007_v1  ;;  %871 = vst [vmem:[#allocation2 + $0x88] sm:$0xff] %v665_v7  ;;  %v935_v10 = vadd.f32 %v934_v0, %v665_v7  ;;  %v1008_v11 = vmul.f32 %v665_v7, %v665_v7  ;;  %903 = vst [vmem:[#allocation2 + $0x188] sm:$0xff] %v2627_v8 }
 0x128   : > { %v936_v13 = vadd.f32 %v2250_v57, %v935_v10  ;;  %v1071_v14 = vadd.f32 %v1070_v9, %v1008_v11 }
 0x12a   : > { %v1072_v18 = vadd.f32 %v1071_v14, %v1009_v12  ;;  %v2254_v19 = vpop.f32.mrb[20].mxu0  ;;  %v937_v20 = vadd.f32 %v2251_v5, %v936_v13  ;;  %v2630_v21 = vpop.f32.mrb[20].mxu1 }
 0x12b   : > { %876 = vst [vmem:[#allocation2 + $0xb0] sm:$0xff] %v2254_v19  ;;  %v678_v23 = vpop.f32.mrb[21].mxu0  ;;  %908 = vst [vmem:[#allocation2 + $0x1b0] sm:$0xff] %v2630_v21  ;;  %v2633_v25 = vpop.f32.mrb[21].mxu1  ;;  %v1013_v38 = vmul.f32 %v2254_v19, %v2254_v19 }
 0x12c   : > { %874 = vst [vmem:[#allocation2 + $0xa0] sm:$0xff] %v678_v23  ;;  %v938_v26 = vadd.f32 %v937_v20, %v678_v23  ;;  %v1011_v27 = vmul.f32 %v678_v23, %v678_v23  ;;  %v1073_v28 = vadd.f32 %v1072_v18, %v1010_v16  ;;  %v2255_v29 = vpop.f32.mrb[22].mxu0  ;;  %906 = vst [vmem:[#allocation2 + $0x1a0] sm:$0xff] %v2633_v25  ;;  %v2636_v30 = vpop.f32.mrb[22].mxu1 }
 0x12d   : > { %877 = vst [vmem:[#allocation2 + $0xb8] sm:$0xff] %v2255_v29  ;;  %v681_v31 = vpop.f32.mrb[23].mxu0  ;;  %909 = vst [vmem:[#allocation2 + $0x1b8] sm:$0xff] %v2636_v30  ;;  %v2639_v32 = vpop.f32.mrb[23].mxu1  ;;  %v1014_v41 = vmul.f32 %v2255_v29, %v2255_v29 }
 0x12e   : > { %v1074_v33 = vadd.f32 %v1073_v28, %v1011_v27  ;;  %875 = vst [vmem:[#allocation2 + $0xa8] sm:$0xff] %v681_v31  ;;  %v939_v34 = vadd.f32 %v938_v26, %v681_v31  ;;  %v1012_v36 = vmul.f32 %v681_v31, %v681_v31  ;;  %907 = vst [vmem:[#allocation2 + $0x1a8] sm:$0xff] %v2639_v32 }
 0x130   : > { %v940_v39 = vadd.f32 %v2254_v19, %v939_v34  ;;  %v1075_v40 = vadd.f32 %v1074_v33, %v1012_v36 }
 0x132   : > { %v1076_v45 = vadd.f32 %v1075_v40, %v1013_v38  ;;  %v2258_v49 = vpop.f32.mrb[24].mxu0  ;;  %v941_v50 = vadd.f32 %v2255_v29, %v940_v39  ;;  %v2642_v51 = vpop.f32.mrb[24].mxu1 }
 0x133   : > { %880 = vst [vmem:[#allocation2 + $0xd0] sm:$0xff] %v2258_v49  ;;  %v694_v52 = vpop.f32.mrb[25].mxu0  ;;  %912 = vst [vmem:[#allocation2 + $0x1d0] sm:$0xff] %v2642_v51  ;;  %v2645_v53 = vpop.f32.mrb[25].mxu1  ;;  %v1017_v7 = vmul.f32 %v2258_v49, %v2258_v49 }
 0x134   : > { %878 = vst [vmem:[#allocation2 + $0xc0] sm:$0xff] %v694_v52  ;;  %v942_v54 = vadd.f32 %v941_v50, %v694_v52  ;;  %v1015_v55 = vmul.f32 %v694_v52, %v694_v52  ;;  %v1077_v56 = vadd.f32 %v1076_v45, %v1014_v41  ;;  %v2259_v57 = vpop.f32.mrb[26].mxu0  ;;  %910 = vst [vmem:[#allocation2 + $0x1c0] sm:$0xff] %v2645_v53  ;;  %v2648_v58 = vpop.f32.mrb[26].mxu1 }
 0x135   : > { %881 = vst [vmem:[#allocation2 + $0xd8] sm:$0xff] %v2259_v57  ;;  %v697_v62 = vpop.f32.mrb[27].mxu0  ;;  %913 = vst [vmem:[#allocation2 + $0x1d8] sm:$0xff] %v2648_v58  ;;  %v2651_v0 = vpop.f32.mrb[27].mxu1  ;;  %v1018_v11 = vmul.f32 %v2259_v57, %v2259_v57  ;;  %v1023_v50 = vmul.f32 %v2573_v44, %v2573_v44 }
 0x136   : > { %v1078_v1 = vadd.f32 %v1077_v56, %v1015_v55  ;;  %879 = vst [vmem:[#allocation2 + $0xc8] sm:$0xff] %v697_v62  ;;  %v943_v3 = vadd.f32 %v942_v54, %v697_v62  ;;  %v1016_v5 = vmul.f32 %v697_v62, %v697_v62  ;;  %911 = vst [vmem:[#allocation2 + $0x1c8] sm:$0xff] %v2651_v0 }
 0x137   : > { %v1025_v62 = vmul.f32 %v2570_v42, %v2570_v42 }
 0x138   : > { %v944_v9 = vadd.f32 %v2258_v49, %v943_v3  ;;  %v1079_v10 = vadd.f32 %v1078_v1, %v1016_v5  ;;  %v1026_v5 = vmul.f32 %v2576_v46, %v2576_v46 }
 0x13a   : > { %v1080_v12 = vadd.f32 %v1079_v10, %v1017_v7  ;;  %v2262_v13 = vpop.f32.mrb[28].mxu0  ;;  %v945_v14 = vadd.f32 %v2259_v57, %v944_v9  ;;  %v2654_v16 = vpop.f32.mrb[28].mxu1  ;;  %v1024_v57 = vmul.f32 %v2579_v48, %v2579_v48 }
 0x13b   : > { %884 = vst [vmem:[#allocation2 + $0xf0] sm:$0xff] %v2262_v13  ;;  %v710_v18 = vpop.f32.mrb[29].mxu0  ;;  %916 = vst [vmem:[#allocation2 + $0x1f0] sm:$0xff] %v2654_v16  ;;  %v2657_v19 = vpop.f32.mrb[29].mxu1  ;;  %v1021_v38 = vmul.f32 %v2262_v13, %v2262_v13 }
 0x13c   : > { %882 = vst [vmem:[#allocation2 + $0xe0] sm:$0xff] %v710_v18  ;;  %v946_v20 = vadd.f32 %v945_v14, %v710_v18  ;;  %v1019_v23 = vmul.f32 %v710_v18, %v710_v18  ;;  %v1081_v26 = vadd.f32 %v1080_v12, %v1018_v11  ;;  %v2263_v27 = vpop.f32.mrb[30].mxu0  ;;  %914 = vst [vmem:[#allocation2 + $0x1e0] sm:$0xff] %v2657_v19  ;;  %v2660_v28 = vpop.f32.mrb[30].mxu1 }
 0x13d   : > { %885 = vst [vmem:[#allocation2 + $0xf8] sm:$0xff] %v2263_v27  ;;  %v713_v29 = vpop.f32.mrb[31].mxu0  ;;  %917 = vst [vmem:[#allocation2 + $0x1f8] sm:$0xff] %v2660_v28  ;;  %v2663_v31 = vpop.f32.mrb[31].mxu1  ;;  %v1022_v41 = vmul.f32 %v2263_v27, %v2263_v27 }
 0x13e   : > { %v1082_v33 = vadd.f32 %v1081_v26, %v1019_v23  ;;  %883 = vst [vmem:[#allocation2 + $0xe8] sm:$0xff] %v713_v29  ;;  %v947_v34 = vadd.f32 %v946_v20, %v713_v29  ;;  %v1020_v36 = vmul.f32 %v713_v29, %v713_v29  ;;  %915 = vst [vmem:[#allocation2 + $0x1e8] sm:$0xff] %v2663_v31 }
 0x140   : > { %v948_v39 = vadd.f32 %v2262_v13, %v947_v34  ;;  %v1083_v40 = vadd.f32 %v1082_v33, %v1020_v36  ;;  %v1028_v13 = vmul.f32 %v2591_v4, %v2591_v4  ;;  %v1032_v33 = vmul.f32 %v2603_v24, %v2603_v24 }
 0x142   : > { %v1084_v45 = vadd.f32 %v1083_v40, %v1021_v38  ;;  %v949_v49 = vadd.f32 %v2263_v27, %v948_v39 }
 0x144   : > { %v950_v52 = vadd.f32 %v949_v49, %v2573_v44  ;;  %v1085_v54 = vadd.f32 %v1084_v45, %v1022_v41  ;;  %v1027_v44 = vmul.f32 %v2585_v61, %v2585_v61  ;;  %v1036_v49 = vmul.f32 %v2615_v47, %v2615_v47 }
 0x146   : > { %v1086_v55 = vadd.f32 %v1085_v54, %v1023_v50  ;;  %v951_v56 = vadd.f32 %v950_v52, %v2579_v48 }
 0x148   : > { %v952_v1 = vadd.f32 %v2570_v42, %v951_v56  ;;  %v1087_v3 = vadd.f32 %v1086_v55, %v1024_v57  ;;  %v1029_v42 = vmul.f32 %v2582_v59, %v2582_v59 }
 0x14a   : > { %v1088_v7 = vadd.f32 %v1087_v3, %v1025_v62  ;;  %v953_v9 = vadd.f32 %v2576_v46, %v952_v1  ;;  %v1030_v46 = vmul.f32 %v2588_v2, %v2588_v2  ;;  %v1040_v1 = vmul.f32 %v2627_v8, %v2627_v8 }
 0x14c   : > { %v954_v10 = vadd.f32 %v953_v9, %v2585_v61  ;;  %v1089_v11 = vadd.f32 %v1088_v7, %v1026_v5  ;;  %v1031_v61 = vmul.f32 %v2597_v17, %v2597_v17 }
 0x14e   : > { %v1090_v12 = vadd.f32 %v1089_v11, %v1027_v44  ;;  %v955_v48 = vadd.f32 %v954_v10, %v2591_v4 }
 0x150   : > { %v956_v14 = vadd.f32 %v2582_v59, %v955_v48  ;;  %v1091_v18 = vadd.f32 %v1090_v12, %v1028_v13  ;;  %v1033_v59 = vmul.f32 %v2594_v15, %v2594_v15  ;;  %v1044_v12 = vmul.f32 %v2639_v32, %v2639_v32 }
 0x152   : > { %v1092_v20 = vadd.f32 %v1091_v18, %v1029_v42  ;;  %v957_v23 = vadd.f32 %v2588_v2, %v956_v14  ;;  %v1034_v2 = vmul.f32 %v2600_v22, %v2600_v22 }
 0x154   : > { %v958_v26 = vadd.f32 %v957_v23, %v2597_v17  ;;  %v1093_v27 = vadd.f32 %v1092_v20, %v1030_v46  ;;  %v1035_v17 = vmul.f32 %v2609_v37, %v2609_v37  ;;  %v1048_v23 = vmul.f32 %v2651_v0, %v2651_v0 }
 0x156   : > { %v1094_v29 = vadd.f32 %v1093_v27, %v1031_v61  ;;  %v959_v4 = vadd.f32 %v958_v26, %v2603_v24 }
 0x158   : > { %v960_v34 = vadd.f32 %v2594_v15, %v959_v4  ;;  %v1095_v36 = vadd.f32 %v1094_v29, %v1032_v33  ;;  %v1037_v15 = vmul.f32 %v2606_v35, %v2606_v35 }
 0x15a   : > { %v1096_v38 = vadd.f32 %v1095_v36, %v1033_v59  ;;  %v961_v39 = vadd.f32 %v2600_v22, %v960_v34  ;;  %v1038_v22 = vmul.f32 %v2612_v43, %v2612_v43  ;;  %v1052_v34 = vmul.f32 %v2663_v31, %v2663_v31 }
 0x15c   : > { %v962_v40 = vadd.f32 %v961_v39, %v2609_v37  ;;  %v1097_v41 = vadd.f32 %v1096_v38, %v1034_v2  ;;  %v1039_v37 = vmul.f32 %v2621_v63, %v2621_v63 }
 0x15e   : > { %v1098_v45 = vadd.f32 %v1097_v41, %v1035_v17  ;;  %v963_v24 = vadd.f32 %v962_v40, %v2615_v47 }
 0x160   : > { %v964_v50 = vadd.f32 %v2606_v35, %v963_v24  ;;  %v1099_v52 = vadd.f32 %v1098_v45, %v1036_v49  ;;  %v1041_v35 = vmul.f32 %v2618_v60, %v2618_v60 }
 0x162   : > { %v1100_v54 = vadd.f32 %v1099_v52, %v1037_v15  ;;  %v965_v55 = vadd.f32 %v2612_v43, %v964_v50  ;;  %v1042_v43 = vmul.f32 %v2624_v6, %v2624_v6  ;;  %v918_v52 = vld [vmem:[#allocation3] sm:$0x1] }
 0x164   : > { %v966_v56 = vadd.f32 %v965_v55, %v2621_v63  ;;  %v1101_v57 = vadd.f32 %v1100_v54, %v1038_v22  ;;  %v1043_v63 = vmul.f32 %v2633_v25, %v2633_v25  ;;  %v990_v54 = vld [vmem:[#allocation4] sm:$0x1] }
 0x166   : > { %v1102_v62 = vadd.f32 %v1101_v57, %v1039_v37  ;;  %v967_v47 = vadd.f32 %v966_v56, %v2627_v8 }
 0x168   : > { %v968_v3 = vadd.f32 %v2618_v60, %v967_v47  ;;  %v1103_v5 = vadd.f32 %v1102_v62, %v1040_v1  ;;  %v1045_v60 = vmul.f32 %v2630_v21, %v2630_v21 }
 0x16a   : > { %v1104_v7 = vadd.f32 %v1103_v5, %v1041_v35  ;;  %v969_v9 = vadd.f32 %v2624_v6, %v968_v3  ;;  %v1046_v6 = vmul.f32 %v2636_v30, %v2636_v30 }
 0x16c   : > { %v970_v44 = vadd.f32 %v969_v9, %v2633_v25  ;;  %v1105_v10 = vadd.f32 %v1104_v7, %v1042_v43  ;;  %v1047_v25 = vmul.f32 %v2645_v53, %v2645_v53 }
 0x16e   : > { %v1106_v11 = vadd.f32 %v1105_v10, %v1043_v63  ;;  %v971_v8 = vadd.f32 %v970_v44, %v2639_v32 }
 0x170   : > { %v972_v48 = vadd.f32 %v2630_v21, %v971_v8  ;;  %v1107_v13 = vadd.f32 %v1106_v11, %v1044_v12  ;;  %v1049_v21 = vmul.f32 %v2642_v51, %v2642_v51 }
 0x172   : > { %v1108_v42 = vadd.f32 %v1107_v13, %v1045_v60  ;;  %v973_v14 = vadd.f32 %v2636_v30, %v972_v48  ;;  %v1050_v30 = vmul.f32 %v2648_v58, %v2648_v58 }
 0x174   : > { %v974_v18 = vadd.f32 %v973_v14, %v2645_v53  ;;  %v1109_v46 = vadd.f32 %v1108_v42, %v1046_v6  ;;  %v1051_v53 = vmul.f32 %v2657_v19, %v2657_v19 }
 0x176   : > { %v1110_v20 = vadd.f32 %v1109_v46, %v1047_v25  ;;  %v975_v32 = vadd.f32 %v974_v18, %v2651_v0 }
 0x178   : > { %v976_v61 = vadd.f32 %v2642_v51, %v975_v32  ;;  %v1111_v26 = vadd.f32 %v1110_v20, %v1048_v23  ;;  %v1053_v51 = vmul.f32 %v2654_v16, %v2654_v16 }
 0x17a   : > { %v1112_v27 = vadd.f32 %v1111_v26, %v1049_v21  ;;  %v977_v29 = vadd.f32 %v2648_v58, %v976_v61  ;;  %v1054_v58 = vmul.f32 %v2660_v28, %v2660_v28 }
 0x17c   : > { %v978_v4 = vadd.f32 %v977_v29, %v2657_v19  ;;  %v1113_v33 = vadd.f32 %v1112_v27, %v1050_v30 }
 0x17e   : > { %v1114_v59 = vadd.f32 %v1113_v33, %v1051_v53  ;;  %v979_v0 = vadd.f32 %v978_v4, %v2663_v31 }
 0x180   : > { %v980_v36 = vadd.f32 %v2654_v16, %v979_v0  ;;  %v1115_v2 = vadd.f32 %v1114_v59, %v1052_v34 }
 0x182   : > { %v981_v38 = vadd.f32 %v2660_v28, %v980_v36  ;;  %v1116_v39 = vadd.f32 %v1115_v2, %v1053_v51 }
 0x184   : > { %v982_v19 = vrot.slane %v981_v38, 4  ;;  %v1117_v17 = vadd.f32 %v1116_v39, %v1054_v58 }
 0x186   : > { %v983_v40 = vadd.f32 %v982_v19, %v981_v38  ;;  %v1118_v41 = vrot.slane %v1117_v17, 4 }
 0x188   : > { %v984_v45 = vrot.slane %v983_v40, 2  ;;  %v1119_v24 = vadd.f32 %v1118_v41, %v1117_v17 }
 0x18a   : > { %v985_v49 = vadd.f32 %v984_v45, %v983_v40  ;;  %v1120_v31 = vrot.slane %v1119_v24, 2 }
 0x18c   : > { %v986_v15 = vrot.slane %v985_v49, 1  ;;  %v1121_v50 = vadd.f32 %v1120_v31, %v1119_v24 }
 0x18e   : > { %v987_v22 = vadd.f32 %v986_v15, %v985_v49  ;;  %v1122_v16 = vrot.slane %v1121_v50, 1 }
 0x190   : > { %v988_v55 = vadd.f32 %v987_v22, %v918_v52  ;;  %v1123_v37 = vadd.f32 %v1122_v16, %v1121_v50 }
 0x192   : > { %989 = vst [vmem:[#allocation3] sm:$0x1] %v988_v55  ;;  %v1124_v56 = vadd.f32 %v1123_v37, %v990_v54 }
 0x194   : > { %1125 = vst [vmem:[#allocation4] sm:$0x1] %v1124_v56 }
 0x195 PF: > { %p1852_p5 = scmp.ne.s32.totalorder %s2393_s15, 1 }
 0x196   : > { %v1210_v43 = vlaneseq (!%p1852_p5)  ;;  %v1137_v9 = vld [vmem:[%s3008_s2] sm:$0x1] (!%p1852_p5)  ;;  %v1146_v12 = vld [vmem:[#allocation2 + $0x8] sm:$0xff] (!%p1852_p5)  ;;  %v1147_v60 = vld [vmem:[#allocation2 + $0x10] sm:$0xff] (!%p1852_p5) }
 0x197   : > { %1129 = sbr.rel (%p1852_p5) target bundleno = 497 (0x1f1), region = 48  ;;  %v1141_v11 = vld [vmem:[%s3009_s3] sm:$0x1] (!%p1852_p5)  ;;  %v1148_v48 = vld [vmem:[#allocation2 + $0x18] sm:$0xff] (!%p1852_p5)  ;;  %v1150_v14 = vld [vmem:[#allocation2 + $0x28] sm:$0xff] (!%p1852_p5) }
 0x198   : > { %v1211_v7 = vshrl.u32 (!%p1852_p5), %v1210_v43, 7  ;;  %v1145_v8 = vld [vmem:[#allocation2] sm:$0xff] (!%p1852_p5)  ;;  %v1151_v25 = vld [vmem:[#allocation2 + $0x30] sm:$0xff] (!%p1852_p5)  ;;  %v1152_v18 = vld [vmem:[#allocation2 + $0x38] sm:$0xff] (!%p1852_p5) }
 0x199   : > { %v1130_v28 = vld [vmem:[#allocation3] sm:$0x1] (!%p1852_p5)  ;;  %v1154_v20 = vld [vmem:[#allocation2 + $0x48] sm:$0xff] (!%p1852_p5)  ;;  %v1155_v32 = vld [vmem:[#allocation2 + $0x50] sm:$0xff] (!%p1852_p5) }
 0x19a   : > { %v1131_v62 = vmul.f32 (!%p1852_p5), 0.001953125, %v1130_v28  ;;  %v1212_v63 = vsub.s32 (!%p1852_p5), 0, %v1211_v7  ;;  %v1149_v13 = vld [vmem:[#allocation2 + $0x20] sm:$0xff] (!%p1852_p5)  ;;  %v1156_v30 = vld [vmem:[#allocation2 + $0x58] sm:$0xff] (!%p1852_p5)  ;;  %v1158_v29 = vld [vmem:[#allocation2 + $0x68] sm:$0xff] (!%p1852_p5) }
 0x19b   : > { %v1132_v57 = vld [vmem:[#allocation4] sm:$0x1] (!%p1852_p5) }
 0x19c   : > { %v1133_v47 = vmul.f32 (!%p1852_p5), 0.001953125, %v1132_v57  ;;  %v1134_v1 = vmul.f32 (!%p1852_p5), %v1131_v62, %v1131_v62  ;;  %v1153_v46 = vld [vmem:[#allocation2 + $0x40] sm:$0xff] (!%p1852_p5) }
 0x19d   : > { %v1157_v27 = vld [vmem:[#allocation2 + $0x60] sm:$0xff] (!%p1852_p5) }
 0x19e   : > { %v1135_v35 = vsub.f32 %v1133_v47, %v1134_v1  ;;  %v1159_v47 = vld [vmem:[#allocation2 + $0x70] sm:$0xff]  ;;  %v1160_v1 = vld [vmem:[#allocation2 + $0x78] sm:$0xff]  ;;  %v1161_v7 = vld [vmem:[#allocation2 + $0x80] sm:$0xff] }
 0x1a0   : > { %v1136_v3 = vmax.f32 %v1135_v35, 0.0 }
 0x1a2   : > { %v1138_v5 = vadd.f32 1e-05, %v1136_v3 }
 0x1a4   : > { %2377 = vrsqrt.f32 %v1138_v5 }
 0x1ae   : > { %v2378_v44 = vpop.eup %2377 }
 0x1af   : > { %v1140_v10 = vmul.f32 %v2378_v44, %v1137_v9 }
 0x1b1   : > { %v1142_v6 = vmul.f32 %v1140_v10, %v1131_v62  ;;  %v2769_v42 = vrot.slane %v1140_v10, %v1212_v63 }
 0x1b3   : > { %v1143_v23 = vsub.f32 %v1141_v11, %v1142_v6  ;;  %v1215_v21 = vmul.f32 %v2769_v42, %v1145_v8  ;;  %v1216_v61 = vmul.f32 %v2769_v42, %v1146_v12  ;;  %v1217_v26 = vmul.f32 %v2769_v42, %v1147_v60  ;;  %v1162_v11 = vld [vmem:[#allocation2 + $0x88] sm:$0xff]  ;;  %v1164_v6 = vld [vmem:[#allocation2 + $0x98] sm:$0xff] }
 0x1b4   : > { %v1218_v53 = vmul.f32 %v2769_v42, %v1148_v48  ;;  %v1219_v4 = vmul.f32 %v2769_v42, %v1149_v13  ;;  %v1220_v33 = vmul.f32 %v2769_v42, %v1150_v14  ;;  %v1221_v59 = vmul.f32 %v2769_v42, %v1151_v25  ;;  %v1163_v13 = vld [vmem:[#allocation2 + $0x90] sm:$0xff] }
 0x1b5   : > { %v2778_v0 = vrot.slane %v1143_v23, %v1212_v63  ;;  %v1222_v34 = vmul.f32 %v2769_v42, %v1152_v18  ;;  %v1223_v51 = vmul.f32 %v2769_v42, %v1153_v46  ;;  %v1224_v36 = vmul.f32 %v2769_v42, %v1154_v20  ;;  %v1165_v20 = vld [vmem:[#allocation2 + $0xa0] sm:$0xff] }
 0x1b6   : > { %v1225_v2 = vmul.f32 %v2769_v42, %v1155_v32  ;;  %v1226_v58 = vmul.f32 %v2769_v42, %v1156_v30  ;;  %v1227_v38 = vmul.f32 %v2769_v42, %v1157_v27  ;;  %v1228_v39 = vmul.f32 %v2769_v42, %v1158_v29 }
 0x1b7   : > { %v1285_v19 = vadd.f32 %v2778_v0, %v1215_v21  ;;  %v1286_v17 = vadd.f32 %v2778_v0, %v1216_v61  ;;  %v1287_v40 = vadd.f32 %v2778_v0, %v1217_v26  ;;  %v1288_v41 = vadd.f32 %v2778_v0, %v1218_v53  ;;  %v1166_v26 = vld [vmem:[#allocation2 + $0xa8] sm:$0xff] }
 0x1b8   : > { %v1289_v45 = vadd.f32 %v2778_v0, %v1219_v4  ;;  %v1290_v24 = vadd.f32 %v2778_v0, %v1220_v33  ;;  %v1291_v49 = vadd.f32 %v2778_v0, %v1221_v59  ;;  %v1292_v31 = vadd.f32 %v2778_v0, %v1222_v34  ;;  %v1167_v4 = vld [vmem:[#allocation2 + $0xb0] sm:$0xff] }
 0x1b9   : > { %v1349_v15 = vmax.f32 %v1285_v19, 0.0  ;;  %v1350_v50 = vmax.f32 %v1286_v17, 0.0  ;;  %v1351_v52 = vmax.f32 %v1287_v40, 0.0  ;;  %v1352_v22 = vmax.f32 %v1288_v41, 0.0  ;;  %v1169_v19 = vld [vmem:[#allocation2 + $0xc0] sm:$0xff] }
 0x1ba   : > { %v1353_v16 = vmax.f32 %v1289_v45, 0.0  ;;  %v1354_v54 = vmax.f32 %v1290_v24, 0.0  ;;  %v1355_v55 = vmax.f32 %v1291_v49, 0.0  ;;  %v1356_v37 = vmax.f32 %v1292_v31, 0.0  ;;  %v1170_v24 = vld [vmem:[#allocation2 + $0xc8] sm:$0xff] }
 0x1bb   : > { %v1988_v56 = vpack.c.bf16 %v1350_v50, %v1349_v15  ;;  %v1993_v28 = vpack.c.bf16 %v1352_v22, %v1351_v52  ;;  %v1293_v57 = vadd.f32 %v2778_v0, %v1223_v51  ;;  %v1294_v62 = vadd.f32 %v2778_v0, %v1224_v36  ;;  %v1168_v36 = vld [vmem:[#allocation2 + $0xb8] sm:$0xff]  ;;  %v1171_v52 = vld [vmem:[#allocation2 + $0xd0] sm:$0xff] }
 0x1bc   : > { %v1998_v35 = vpack.c.bf16 %v1354_v54, %v1353_v16  ;;  %v2003_v3 = vpack.c.bf16 %v1356_v37, %v1355_v55  ;;  %v1295_v5 = vadd.f32 %v2778_v0, %v1225_v2  ;;  %v1296_v43 = vadd.f32 %v2778_v0, %v1226_v58  ;;  %v1172_v22 = vld [vmem:[#allocation2 + $0xd8] sm:$0xff] }
 0x1bd   : > { %1989 = vst [vmem:[%s3010_s4] sm:$0xff] %v1988_v56   ;;  %2145 = vst [vmem:[%s3010_s4 + $0x8] sm:$0xff] %v1993_v28   ;;  %v1357_v9 = vmax.f32 %v1293_v57, 0.0  ;;  %v1358_v63 = vmax.f32 %v1294_v62, 0.0  ;;  %v1297_v44 = vadd.f32 %v2778_v0, %v1227_v38  ;;  %v1298_v10 = vadd.f32 %v2778_v0, %v1228_v39  ;;  %v1173_v56 = vld [vmem:[#allocation2 + $0xe0] sm:$0xff] }
 0x1be   : > { %2146 = vst [vmem:[%s3010_s4 + $0x10] sm:$0xff] %v1998_v35   ;;  %2147 = vst [vmem:[%s3010_s4 + $0x18] sm:$0xff] %v2003_v3   ;;  %v1359_v8 = vmax.f32 %v1295_v5, 0.0  ;;  %v1360_v12 = vmax.f32 %v1296_v43, 0.0  ;;  %v1229_v60 = vmul.f32 %v2769_v42, %v1159_v47  ;;  %v1230_v48 = vmul.f32 %v2769_v42, %v1160_v1  ;;  %v1174_v1 = vld [vmem:[#allocation2 + $0xe8] sm:$0xff] }
 0x1bf   : > { %v2008_v14 = vpack.c.bf16 %v1358_v63, %v1357_v9  ;;  %v1361_v25 = vmax.f32 %v1297_v44, 0.0  ;;  %v1362_v18 = vmax.f32 %v1298_v10, 0.0  ;;  %v1231_v46 = vmul.f32 %v2769_v42, %v1161_v7  ;;  %v1175_v7 = vld [vmem:[#allocation2 + $0xf0] sm:$0xff] }
 0x1c0   : > { %v2013_v32 = vpack.c.bf16 %v1360_v12, %v1359_v8  ;;  %v1299_v23 = vadd.f32 %v2778_v0, %v1229_v60  ;;  %v1300_v21 = vadd.f32 %v2778_v0, %v1230_v48  ;;  %v1232_v61 = vmul.f32 %v2769_v42, %v1162_v11  ;;  %v1176_v11 = vld [vmem:[#allocation2 + $0xf8] sm:$0xff] }
 0x1c1   : > { %2148 = vst [vmem:[%s3010_s4 + $0x20] sm:$0xff] %v2008_v14   ;;  %v2018_v30 = vpack.c.bf16 %v1362_v18, %v1361_v25  ;;  %v1301_v27 = vadd.f32 %v2778_v0, %v1231_v46  ;;  %v1233_v29 = vmul.f32 %v2769_v42, %v1163_v13  ;;  %v1234_v53 = vmul.f32 %v2769_v42, %v1164_v6  ;;  %v1177_v13 = vld [vmem:[#allocation2 + $0x100] sm:$0xff]  ;;  %v1178_v46 = vld [vmem:[#allocation2 + $0x108] sm:$0xff] }
 0x1c2   : > { %2149 = vst [vmem:[%s3010_s4 + $0x28] sm:$0xff] %v2013_v32   ;;  %v1363_v33 = vmax.f32 %v1299_v23, 0.0  ;;  %v1364_v59 = vmax.f32 %v1300_v21, 0.0  ;;  %v1302_v34 = vadd.f32 %v2778_v0, %v1232_v61  ;;  %v1235_v51 = vmul.f32 %v2769_v42, %v1165_v20  ;;  %v1179_v61 = vld [vmem:[#allocation2 + $0x110] sm:$0xff] }
 0x1c3   : > { %2150 = vst [vmem:[%s3010_s4 + $0x30] sm:$0xff] %v2018_v30   ;;  %v1365_v2 = vmax.f32 %v1301_v27, 0.0  ;;  %v1303_v58 = vadd.f32 %v2778_v0, %v1233_v29  ;;  %v1304_v38 = vadd.f32 %v2778_v0, %v1234_v53  ;;  %v1236_v39 = vmul.f32 %v2769_v42, %v1166_v26  ;;  %v1180_v26 = vld [vmem:[#allocation2 + $0x118] sm:$0xff] }
 0x1c4   : > { %v2023_v17 = vpack.c.bf16 %v1364_v59, %v1363_v33  ;;  %v1366_v40 = vmax.f32 %v1302_v34, 0.0  ;;  %v1305_v41 = vadd.f32 %v2778_v0, %v1235_v51  ;;  %v1237_v45 = vmul.f32 %v2769_v42, %v1167_v4  ;;  %v1181_v4 = vld [vmem:[#allocation2 + $0x120] sm:$0xff] }
 0x1c5   : > { %v1367_v49 = vmax.f32 %v1303_v58, 0.0  ;;  %v1368_v31 = vmax.f32 %v1304_v38, 0.0  ;;  %v1306_v15 = vadd.f32 %v2778_v0, %v1236_v39  ;;  %v1238_v50 = vmul.f32 %v2769_v42, %v1168_v36  ;;  %v1182_v36 = vld [vmem:[#allocation2 + $0x128] sm:$0xff] }
 0x1c6   : > { %2151 = vst [vmem:[%s3010_s4 + $0x38] sm:$0xff] %v2023_v17   ;;  %v2028_v16 = vpack.c.bf16 %v1366_v40, %v1365_v2  ;;  %v1369_v54 = vmax.f32 %v1305_v41, 0.0  ;;  %v1307_v55 = vadd.f32 %v2778_v0, %v1237_v45  ;;  %v1239_v37 = vmul.f32 %v2769_v42, %v1169_v19  ;;  %v1183_v19 = vld [vmem:[#allocation2 + $0x130] sm:$0xff] }
 0x1c7   : > { %v2033_v28 = vpack.c.bf16 %v1368_v31, %v1367_v49  ;;  %v1370_v57 = vmax.f32 %v1306_v15, 0.0  ;;  %v1308_v62 = vadd.f32 %v2778_v0, %v1238_v50  ;;  %v1240_v47 = vmul.f32 %v2769_v42, %v1170_v24  ;;  %v1184_v24 = vld [vmem:[#allocation2 + $0x138] sm:$0xff] }
 0x1c8   : > { %2152 = vst [vmem:[%s3010_s4 + $0x40] sm:$0xff] %v2028_v16   ;;  %v1371_v35 = vmax.f32 %v1307_v55, 0.0  ;;  %v1309_v3 = vadd.f32 %v2778_v0, %v1239_v37  ;;  %v1241_v5 = vmul.f32 %v2769_v42, %v1171_v52  ;;  %v1242_v43 = vmul.f32 %v2769_v42, %v1172_v22  ;;  %v1185_v52 = vld [vmem:[#allocation2 + $0x140] sm:$0xff]  ;;  %v1186_v37 = vld [vmem:[#allocation2 + $0x148] sm:$0xff] }
 0x1c9   : > { %2153 = vst [vmem:[%s3010_s4 + $0x48] sm:$0xff] %v2033_v28   ;;  %v2038_v9 = vpack.c.bf16 %v1370_v57, %v1369_v54  ;;  %v1372_v63 = vmax.f32 %v1308_v62, 0.0  ;;  %v1310_v44 = vadd.f32 %v2778_v0, %v1240_v47  ;;  %v1243_v10 = vmul.f32 %v2769_v42, %v1173_v56  ;;  %v1187_v47 = vld [vmem:[#allocation2 + $0x150] sm:$0xff] }
 0x1ca   : > { %v1373_v8 = vmax.f32 %v1309_v3, 0.0  ;;  %v1311_v12 = vadd.f32 %v2778_v0, %v1241_v5  ;;  %v1312_v60 = vadd.f32 %v2778_v0, %v1242_v43  ;;  %v1244_v48 = vmul.f32 %v2769_v42, %v1174_v1  ;;  %v1188_v1 = vld [vmem:[#allocation2 + $0x158] sm:$0xff] }
 0x1cb   : > { %2154 = vst [vmem:[%s3010_s4 + $0x50] sm:$0xff] %v2038_v9   ;;  %v2043_v6 = vpack.c.bf16 %v1372_v63, %v1371_v35  ;;  %v1374_v14 = vmax.f32 %v1310_v44, 0.0  ;;  %v1313_v25 = vadd.f32 %v2778_v0, %v1243_v10  ;;  %v1245_v18 = vmul.f32 %v2769_v42, %v1175_v7  ;;  %v1189_v7 = vld [vmem:[#allocation2 + $0x160] sm:$0xff] }
 0x1cc   : > { %v1375_v20 = vmax.f32 %v1311_v12, 0.0  ;;  %v1376_v32 = vmax.f32 %v1312_v60, 0.0  ;;  %v1314_v23 = vadd.f32 %v2778_v0, %v1244_v48  ;;  %v1246_v21 = vmul.f32 %v2769_v42, %v1176_v11  ;;  %v1190_v11 = vld [vmem:[#allocation2 + $0x168] sm:$0xff] }
 0x1cd   : > { %2155 = vst [vmem:[%s3010_s4 + $0x58] sm:$0xff] %v2043_v6   ;;  %v2048_v30 = vpack.c.bf16 %v1374_v14, %v1373_v8  ;;  %v1377_v27 = vmax.f32 %v1313_v25, 0.0  ;;  %v1315_v29 = vadd.f32 %v2778_v0, %v1245_v18  ;;  %v1247_v53 = vmul.f32 %v2769_v42, %v1177_v13  ;;  %v1191_v13 = vld [vmem:[#allocation2 + $0x170] sm:$0xff] }
 0x1ce   : > { %v2053_v33 = vpack.c.bf16 %v1376_v32, %v1375_v20  ;;  %v1378_v59 = vmax.f32 %v1314_v23, 0.0  ;;  %v1316_v34 = vadd.f32 %v2778_v0, %v1246_v21  ;;  %v1248_v51 = vmul.f32 %v2769_v42, %v1178_v46  ;;  %v1192_v46 = vld [vmem:[#allocation2 + $0x178] sm:$0xff] }
 0x1cf   : > { %2156 = vst [vmem:[%s3010_s4 + $0x60] sm:$0xff] %v2048_v30   ;;  %v1379_v2 = vmax.f32 %v1315_v29, 0.0  ;;  %v1317_v58 = vadd.f32 %v2778_v0, %v1247_v53  ;;  %v1249_v38 = vmul.f32 %v2769_v42, %v1179_v61  ;;  %v1250_v39 = vmul.f32 %v2769_v42, %v1180_v26  ;;  %v1193_v61 = vld [vmem:[#allocation2 + $0x180] sm:$0xff]  ;;  %v1194_v53 = vld [vmem:[#allocation2 + $0x188] sm:$0xff] }
 0x1d0   : > { %2157 = vst [vmem:[%s3010_s4 + $0x68] sm:$0xff] %v2053_v33   ;;  %v2058_v17 = vpack.c.bf16 %v1378_v59, %v1377_v27  ;;  %v1380_v40 = vmax.f32 %v1316_v34, 0.0  ;;  %v1318_v41 = vadd.f32 %v2778_v0, %v1248_v51  ;;  %v1251_v45 = vmul.f32 %v2769_v42, %v1181_v4  ;;  %v1195_v51 = vld [vmem:[#allocation2 + $0x190] sm:$0xff] }
 0x1d1   : > { %v1381_v49 = vmax.f32 %v1317_v58, 0.0  ;;  %v1319_v31 = vadd.f32 %v2778_v0, %v1249_v38  ;;  %v1320_v15 = vadd.f32 %v2778_v0, %v1250_v39  ;;  %v1252_v50 = vmul.f32 %v2769_v42, %v1182_v36  ;;  %v1196_v36 = vld [vmem:[#allocation2 + $0x198] sm:$0xff] }
 0x1d2   : > { %2158 = vst [vmem:[%s3010_s4 + $0x70] sm:$0xff] %v2058_v17   ;;  %v2063_v22 = vpack.c.bf16 %v1380_v40, %v1379_v2  ;;  %v1382_v16 = vmax.f32 %v1318_v41, 0.0  ;;  %v1321_v54 = vadd.f32 %v2778_v0, %v1251_v45  ;;  %v1253_v55 = vmul.f32 %v2769_v42, %v1183_v19  ;;  %v1197_v19 = vld [vmem:[#allocation2 + $0x1a0] sm:$0xff] }
 0x1d3   : > { %v1383_v56 = vmax.f32 %v1319_v31, 0.0  ;;  %v1384_v28 = vmax.f32 %v1320_v15, 0.0  ;;  %v1322_v57 = vadd.f32 %v2778_v0, %v1252_v50  ;;  %v1254_v62 = vmul.f32 %v2769_v42, %v1184_v24  ;;  %v1198_v24 = vld [vmem:[#allocation2 + $0x1a8] sm:$0xff] }
 0x1d4   : > { %2159 = vst [vmem:[%s3010_s4 + $0x78] sm:$0xff] %v2063_v22   ;;  %v2068_v35 = vpack.c.bf16 %v1382_v16, %v1381_v49  ;;  %v1385_v3 = vmax.f32 %v1321_v54, 0.0  ;;  %v1323_v5 = vadd.f32 %v2778_v0, %v1253_v55  ;;  %v1255_v43 = vmul.f32 %v2769_v42, %v1185_v52  ;;  %v1199_v52 = vld [vmem:[#allocation2 + $0x1b0] sm:$0xff] }
 0x1d5   : > { %v2073_v9 = vpack.c.bf16 %v1384_v28, %v1383_v56  ;;  %v1386_v63 = vmax.f32 %v1322_v57, 0.0  ;;  %v1324_v44 = vadd.f32 %v2778_v0, %v1254_v62  ;;  %v1256_v10 = vmul.f32 %v2769_v42, %v1186_v37  ;;  %v1200_v37 = vld [vmem:[#allocation2 + $0x1b8] sm:$0xff] }
 0x1d6   : > { %2160 = vst [vmem:[%s3010_s4 + $0x80] sm:$0xff] %v2068_v35   ;;  %v1387_v8 = vmax.f32 %v1323_v5, 0.0  ;;  %v1325_v12 = vadd.f32 %v2778_v0, %v1255_v43  ;;  %v1257_v60 = vmul.f32 %v2769_v42, %v1187_v47  ;;  %v1258_v48 = vmul.f32 %v2769_v42, %v1188_v1  ;;  %v1201_v47 = vld [vmem:[#allocation2 + $0x1c0] sm:$0xff]  ;;  %v1202_v43 = vld [vmem:[#allocation2 + $0x1c8] sm:$0xff] }
 0x1d7   : > { %2161 = vst [vmem:[%s3010_s4 + $0x88] sm:$0xff] %v2073_v9   ;;  %v2078_v6 = vpack.c.bf16 %v1386_v63, %v1385_v3  ;;  %v1388_v14 = vmax.f32 %v1324_v44, 0.0  ;;  %v1326_v25 = vadd.f32 %v2778_v0, %v1256_v10  ;;  %v1259_v18 = vmul.f32 %v2769_v42, %v1189_v7  ;;  %v1203_v10 = vld [vmem:[#allocation2 + $0x1d0] sm:$0xff] }
 0x1d8   : > { %v1389_v20 = vmax.f32 %v1325_v12, 0.0  ;;  %v1327_v32 = vadd.f32 %v2778_v0, %v1257_v60  ;;  %v1328_v23 = vadd.f32 %v2778_v0, %v1258_v48  ;;  %v1260_v21 = vmul.f32 %v2769_v42, %v1190_v11  ;;  %v1204_v11 = vld [vmem:[#allocation2 + $0x1d8] sm:$0xff] }
 0x1d9   : > { %2162 = vst [vmem:[%s3010_s4 + $0x90] sm:$0xff] %v2078_v6   ;;  %v2083_v26 = vpack.c.bf16 %v1388_v14, %v1387_v8  ;;  %v1390_v30 = vmax.f32 %v1326_v25, 0.0  ;;  %v1329_v27 = vadd.f32 %v2778_v0, %v1259_v18  ;;  %v1261_v29 = vmul.f32 %v2769_v42, %v1191_v13  ;;  %v1205_v13 = vld [vmem:[#allocation2 + $0x1e0] sm:$0xff] }
 0x1da   : > { %v1391_v4 = vmax.f32 %v1327_v32, 0.0  ;;  %v1392_v33 = vmax.f32 %v1328_v23, 0.0  ;;  %v1330_v59 = vadd.f32 %v2778_v0, %v1260_v21  ;;  %v1262_v34 = vmul.f32 %v2769_v42, %v1192_v46  ;;  %v1206_v46 = vld [vmem:[#allocation2 + $0x1e8] sm:$0xff] }
 0x1db   : > { %2163 = vst [vmem:[%s3010_s4 + $0x98] sm:$0xff] %v2083_v26   ;;  %v2088_v2 = vpack.c.bf16 %v1390_v30, %v1389_v20  ;;  %v1393_v58 = vmax.f32 %v1329_v27, 0.0  ;;  %v1331_v38 = vadd.f32 %v2778_v0, %v1261_v29  ;;  %v1263_v39 = vmul.f32 %v2769_v42, %v1193_v61  ;;  %v1207_v61 = vld [vmem:[#allocation2 + $0x1f0] sm:$0xff] }
 0x1dc   : > { %v2093_v17 = vpack.c.bf16 %v1392_v33, %v1391_v4  ;;  %v1394_v40 = vmax.f32 %v1330_v59, 0.0  ;;  %v1332_v41 = vadd.f32 %v2778_v0, %v1262_v34  ;;  %v1264_v45 = vmul.f32 %v2769_v42, %v1194_v53  ;;  %v1208_v53 = vld [vmem:[#allocation2 + $0x1f8] sm:$0xff] }
 0x1dd   : > { %2164 = vst [vmem:[%s3010_s4 + $0xa0] sm:$0xff] %v2088_v2   ;;  %v1395_v49 = vmax.f32 %v1331_v38, 0.0  ;;  %v1333_v31 = vadd.f32 %v2778_v0, %v1263_v39  ;;  %v1265_v15 = vmul.f32 %v2769_v42, %v1195_v51  ;;  %v1266_v50 = vmul.f32 %v2769_v42, %v1196_v36 }
 0x1de   : > { %2165 = vst [vmem:[%s3010_s4 + $0xa8] sm:$0xff] %v2093_v17   ;;  %v2098_v22 = vpack.c.bf16 %v1394_v40, %v1393_v58  ;;  %v1396_v16 = vmax.f32 %v1332_v41, 0.0  ;;  %v1334_v54 = vadd.f32 %v2778_v0, %v1264_v45  ;;  %v1267_v55 = vmul.f32 %v2769_v42, %v1197_v19 }
 0x1df   : > { %v1397_v56 = vmax.f32 %v1333_v31, 0.0  ;;  %v1335_v28 = vadd.f32 %v2778_v0, %v1265_v15  ;;  %v1336_v57 = vadd.f32 %v2778_v0, %v1266_v50  ;;  %v1268_v62 = vmul.f32 %v2769_v42, %v1198_v24 }
 0x1e0   : > { %2166 = vst [vmem:[%s3010_s4 + $0xb0] sm:$0xff] %v2098_v22   ;;  %v2103_v1 = vpack.c.bf16 %v1396_v16, %v1395_v49  ;;  %v1398_v35 = vmax.f32 %v1334_v54, 0.0  ;;  %v1337_v3 = vadd.f32 %v2778_v0, %v1267_v55  ;;  %v1269_v5 = vmul.f32 %v2769_v42, %v1199_v52 }
 0x1e1   : > { %v1399_v7 = vmax.f32 %v1335_v28, 0.0  ;;  %v1400_v9 = vmax.f32 %v1336_v57, 0.0  ;;  %v1338_v63 = vadd.f32 %v2778_v0, %v1268_v62  ;;  %v1270_v44 = vmul.f32 %v2769_v42, %v1200_v37 }
 0x1e2   : > { %2167 = vst [vmem:[%s3010_s4 + $0xb8] sm:$0xff] %v2103_v1   ;;  %v2108_v8 = vpack.c.bf16 %v1398_v35, %v1397_v56  ;;  %v1401_v12 = vmax.f32 %v1337_v3, 0.0  ;;  %v1339_v60 = vadd.f32 %v2778_v0, %v1269_v5  ;;  %v1271_v48 = vmul.f32 %v2769_v42, %v1201_v47 }
 0x1e3   : > { %v2113_v6 = vpack.c.bf16 %v1400_v9, %v1399_v7  ;;  %v1402_v14 = vmax.f32 %v1338_v63, 0.0  ;;  %v1340_v25 = vadd.f32 %v2778_v0, %v1270_v44  ;;  %v1272_v18 = vmul.f32 %v2769_v42, %v1202_v43 }
 0x1e4   : > { %2168 = vst [vmem:[%s3010_s4 + $0xc0] sm:$0xff] %v2108_v8   ;;  %v1403_v20 = vmax.f32 %v1339_v60, 0.0  ;;  %v1341_v32 = vadd.f32 %v2778_v0, %v1271_v48  ;;  %v1273_v23 = vmul.f32 %v2769_v42, %v1203_v10  ;;  %v1274_v21 = vmul.f32 %v2769_v42, %v1204_v11 }
 0x1e5   : > { %2169 = vst [vmem:[%s3010_s4 + $0xc8] sm:$0xff] %v2113_v6   ;;  %v2118_v26 = vpack.c.bf16 %v1402_v14, %v1401_v12  ;;  %v1404_v30 = vmax.f32 %v1340_v25, 0.0  ;;  %v1342_v27 = vadd.f32 %v2778_v0, %v1272_v18  ;;  %v1275_v29 = vmul.f32 %v2769_v42, %v1205_v13 }
 0x1e6   : > { %v1405_v4 = vmax.f32 %v1341_v32, 0.0  ;;  %v1343_v33 = vadd.f32 %v2778_v0, %v1273_v23  ;;  %v1344_v59 = vadd.f32 %v2778_v0, %v1274_v21  ;;  %v1276_v34 = vmul.f32 %v2769_v42, %v1206_v46 }
 0x1e7   : > { %2170 = vst [vmem:[%s3010_s4 + $0xd0] sm:$0xff] %v2118_v26   ;;  %v2123_v51 = vpack.c.bf16 %v1404_v30, %v1403_v20  ;;  %v1406_v36 = vmax.f32 %v1342_v27, 0.0  ;;  %v1345_v2 = vadd.f32 %v2778_v0, %v1275_v29  ;;  %v1277_v58 = vmul.f32 %v2769_v42, %v1207_v61 }
 0x1e8   : > { %v1407_v38 = vmax.f32 %v1343_v33, 0.0  ;;  %v1408_v39 = vmax.f32 %v1344_v59, 0.0  ;;  %v1346_v19 = vadd.f32 %v2778_v0, %v1276_v34  ;;  %v1278_v17 = vmul.f32 %v2769_v42, %v1208_v53 }
 0x1e9   : > { %2171 = vst [vmem:[%s3010_s4 + $0xd8] sm:$0xff] %v2123_v51   ;;  %v2128_v40 = vpack.c.bf16 %v1406_v36, %v1405_v4  ;;  %v1409_v41 = vmax.f32 %v1345_v2, 0.0  ;;  %v1347_v45 = vadd.f32 %v2778_v0, %v1277_v58 }
 0x1ea   : > { %v2133_v24 = vpack.c.bf16 %v1408_v39, %v1407_v38  ;;  %v1410_v49 = vmax.f32 %v1346_v19, 0.0  ;;  %v1348_v31 = vadd.f32 %v2778_v0, %v1278_v17 }
 0x1eb   : > { %2172 = vst [vmem:[%s3010_s4 + $0xe0] sm:$0xff] %v2128_v40   ;;  %v1411_v15 = vmax.f32 %v1347_v45, 0.0 }
 0x1ec   : > { %2173 = vst [vmem:[%s3010_s4 + $0xe8] sm:$0xff] %v2133_v24   ;;  %v2138_v42 = vpack.c.bf16 %v1410_v49, %v1409_v41  ;;  %v1412_v50 = vmax.f32 %v1348_v31, 0.0 }
 0x1ee   : > { %2174 = vst [vmem:[%s3010_s4 + $0xf0] sm:$0xff] %v2138_v42   ;;  %v2143_v52 = vpack.c.bf16 %v1412_v50, %v1411_v15 }
 0x1f0   : > { %2175 = vst [vmem:[%s3010_s4 + $0xf8] sm:$0xff] %v2143_v52  }
 0x1f1 PF: > { %s14_s17 = sadd.s32 1, %s2401_s17   ;;  %s3011_s15 = smov %s2397_s16 }
 0x1f2   : > { %p11_p6 = scmp.ge.s32.totalorder %s14_s17, 4   ;;  %s3012_s16 = smov %s3014_s18 }
 0x1f4   :  { %13 = sbr.rel (!%p11_p6) target bundleno = 2 (0x2), region = 80 }

// kernel: a_call__.5
= control target key start
LH: loop header
LB: loop body
LE: loop exit
PB: predicated region body
PF: predicated region fallthrough
CT: control target
= control target key end

     0   :  { %s2475_s15 = smov 0   ;;  %s2477_s16 = smov 0   ;;  %s2986_s0 = inlined_call_operand.vmem [shape: bf16[128,1024], index: 0, kind: input, shape index: {}]   ;;  %s2987_s1 = inlined_call_operand.vmem [shape: bf16[1024,128], index: 1, kind: input, shape index: {}]   ;;  %s2988_s2 = inlined_call_operand.vmem [shape: f32[1,128], index: 2, kind: input, shape index: {}]   ;;  %s2989_s3 = inlined_call_operand.vmem [shape: f32[1,128], index: 3, kind: input, shape index: {}]   ;;  %s2990_s4 = inlined_call_operand.vmem [shape: bf16[128,128], index: 4, kind: output, shape index: {}]  }
   0x1   :  { %s2479_s17 = smov 0  }
   0x2 LB: > { %s26_s18 = sadd.s32 1, %s2443_s16  ;;  %p1864_p0 = scmp.ge.s32.totalorder %s2447_s17, 1  ;;  %s2447_s17 = sphi %s2479_s17, %s14_s17   ;;  %s2443_s16 = sphi %s2477_s16, %s2992_s16   ;;  %s2439_s15 = sphi %s2475_s15, %s2991_s15  }
   0x3   : > { %p28_p1 = scmp.ge.s32.totalorder %s26_s18, 2  ;;  %p186_p2 = scmp.lt.s32.totalorder %s2447_s17, 3 }
   0x5   : > { %s2994_s18 = smov (%p28_p1, %s26_s18), 0  ;;  %p187_p3 = pnand %p1864_p0, %p186_p2 }
   0x6   : > { %p1865_p4 = scmp.ne.s32.totalorder (!%p187_p3), %s2439_s15, 0 }
   0x7   : > { %190 = sbr.rel (%p187_p3) target bundleno = 458 (0x1ca), region = 36 }
   0xe   : > { %240 = sbr.rel (%p1865_p4) target bundleno = 408 (0x198), region = 40  ;;  %v2359_v0 = vld [vmem:[%s2987_s1 + $0x40] sm:$0xff] (!%p1865_p4)   ;;  %v2363_v4 = vld [vmem:[%s2987_s1 + $0x48] sm:$0xff] (!%p1865_p4)   ;;  %v2367_v8 = vld [vmem:[%s2987_s1 + $0x50] sm:$0xff] (!%p1865_p4)  }
   0xf   : > { %v2360_v1 = vld [vmem:[%s2987_s1 + $0xc0] sm:$0xff] (!%p1865_p4)   ;;  %2078 = vmatprep.subr.bf16.mxu0 (!%p1865_p4), %v2359_v0  ;;  %v2364_v5 = vld [vmem:[%s2987_s1 + $0xc8] sm:$0xff] (!%p1865_p4)   ;;  %v2368_v9 = vld [vmem:[%s2987_s1 + $0xd0] sm:$0xff] (!%p1865_p4)  }
  0x10   : > { %v2361_v2 = vld [vmem:[%s2987_s1] sm:$0xff] (!%p1865_p4)   ;;  %2142 = vmatprep.subr.bf16.mxu1 (!%p1865_p4), %v2360_v1  ;;  %v2365_v6 = vld [vmem:[%s2987_s1 + $0x8] sm:$0xff] (!%p1865_p4)   ;;  %v2369_v10 = vld [vmem:[%s2987_s1 + $0x10] sm:$0xff] (!%p1865_p4)  }
  0x11   : > { %v2362_v3 = vld [vmem:[%s2987_s1 + $0x80] sm:$0xff] (!%p1865_p4)   ;;  %2079 = vmatpush3.bf16.msra.mxu0 (!%p1865_p4), %v2361_v2  ;;  %v2366_v7 = vld [vmem:[%s2987_s1 + $0x88] sm:$0xff] (!%p1865_p4)   ;;  %v2370_v11 = vld [vmem:[%s2987_s1 + $0x90] sm:$0xff] (!%p1865_p4)  }
  0x12   : > { %2143 = vmatpush3.bf16.msra.mxu1 (!%p1865_p4), %v2362_v3  ;;  %2080 = vmatprep.subr.bf16.mxu0 (!%p1865_p4), %v2363_v4  ;;  %v2371_v12 = vld [vmem:[%s2987_s1 + $0x58] sm:$0xff] (!%p1865_p4)   ;;  %v2375_v16 = vld [vmem:[%s2987_s1 + $0x60] sm:$0xff] (!%p1865_p4)   ;;  %v2379_v20 = vld [vmem:[%s2987_s1 + $0x68] sm:$0xff] (!%p1865_p4)  }
  0x13   : > { %2144 = vmatprep.subr.bf16.mxu1 (!%p1865_p4), %v2364_v5  ;;  %v2372_v13 = vld [vmem:[%s2987_s1 + $0xd8] sm:$0xff] (!%p1865_p4)   ;;  %v2376_v17 = vld [vmem:[%s2987_s1 + $0xe0] sm:$0xff] (!%p1865_p4)   ;;  %v2380_v21 = vld [vmem:[%s2987_s1 + $0xe8] sm:$0xff] (!%p1865_p4)  }
  0x14   : > { %v2373_v14 = vld [vmem:[%s2987_s1 + $0x18] sm:$0xff] (!%p1865_p4)   ;;  %v2377_v18 = vld [vmem:[%s2987_s1 + $0x20] sm:$0xff] (!%p1865_p4)   ;;  %v2381_v22 = vld [vmem:[%s2987_s1 + $0x28] sm:$0xff] (!%p1865_p4)  }
  0x15   : > { %2081 = vmatpush3.bf16.msra.mxu0 %v2365_v6  ;;  %v2374_v15 = vld [vmem:[%s2987_s1 + $0x98] sm:$0xff]   ;;  %v2378_v19 = vld [vmem:[%s2987_s1 + $0xa0] sm:$0xff]   ;;  %v2382_v23 = vld [vmem:[%s2987_s1 + $0xa8] sm:$0xff]  }
  0x16   : > { %2145 = vmatpush3.bf16.msra.mxu1 %v2366_v7  ;;  %2082 = vmatprep.subr.bf16.mxu0 %v2367_v8  ;;  %v2383_v24 = vld [vmem:[%s2987_s1 + $0x70] sm:$0xff]   ;;  %v2387_v28 = vld [vmem:[%s2987_s1 + $0x78] sm:$0xff]   ;;  %v247_v32 = vld [vmem:[%s2986_s0] sm:$0xff] }
  0x17   : > { %2146 = vmatprep.subr.bf16.mxu1 %v2368_v9  ;;  %v2384_v25 = vld [vmem:[%s2987_s1 + $0xf0] sm:$0xff]   ;;  %v2388_v29 = vld [vmem:[%s2987_s1 + $0xf8] sm:$0xff]   ;;  %v251_v33 = vld [vmem:[%s2986_s0 + $0x20] sm:$0xff] }
  0x18   : > { %v2385_v26 = vld [vmem:[%s2987_s1 + $0x30] sm:$0xff]   ;;  %v2389_v30 = vld [vmem:[%s2987_s1 + $0x38] sm:$0xff]   ;;  %v248_v34 = vld [vmem:[%s2986_s0 + $0x8] sm:$0xff]  ;;  %v1866_v35 = vcombine.low %v247_v32, %v251_v33  ;;  %v1867_v36 = vcombine.high %v247_v32, %v251_v33 }
  0x19   : > { %2083 = vmatpush3.bf16.msra.mxu0 %v2369_v10  ;;  %v2386_v27 = vld [vmem:[%s2987_s1 + $0xb0] sm:$0xff]   ;;  %v2390_v31 = vld [vmem:[%s2987_s1 + $0xb8] sm:$0xff]   ;;  %v252_v37 = vld [vmem:[%s2986_s0 + $0x28] sm:$0xff] }
  0x1a   : > { %2147 = vmatpush3.bf16.msra.mxu1 %v2370_v11  ;;  %2084 = vmatprep.subr.bf16.mxu0 %v2371_v12  ;;  %v1868_v38 = vcombine.low %v248_v34, %v252_v37  ;;  %v1869_v39 = vcombine.high %v248_v34, %v252_v37  ;;  %v2391_v40 = vld [vmem:[%s2987_s1 + $0x140] sm:$0xff]   ;;  %v256_v47 = vld [vmem:[%s2986_s0 + $0x48] sm:$0xff]  ;;  %v2399_v62 = vld [vmem:[%s2987_s1 + $0x150] sm:$0xff]  }
  0x1b   : > { %2148 = vmatprep.subr.bf16.mxu1 %v2372_v13  ;;  %1175 = vmatprep.mubr.bf16.mxu0 %v1867_v36  ;;  %v2392_v41 = vld [vmem:[%s2987_s1 + $0x100] sm:$0xff]   ;;  %v260_v48 = vld [vmem:[%s2986_s0 + $0x68] sm:$0xff]  ;;  %v2400_v63 = vld [vmem:[%s2987_s1 + $0x110] sm:$0xff]  }
  0x1c   : > { %1272 = vmatprep.mubr.bf16.mxu1 %v1869_v39  ;;  %v2393_v42 = vld [vmem:[%s2987_s1 + $0x1c0] sm:$0xff]   ;;  %v1877_v49 = vcombine.high %v256_v47, %v260_v48  ;;  %v2395_v50 = vld [vmem:[%s2987_s1 + $0x148] sm:$0xff]   ;;  %v1876_v53 = vcombine.low %v256_v47, %v260_v48  ;;  %v2401_v0 = vld [vmem:[%s2987_s1 + $0x1d0] sm:$0xff]  }
  0x1d   : > { %2085 = vmatpush3.bf16.msra.mxu0 %v2373_v14  ;;  %v2394_v43 = vld [vmem:[%s2987_s1 + $0x180] sm:$0xff]   ;;  %v2396_v52 = vld [vmem:[%s2987_s1 + $0x108] sm:$0xff]   ;;  %v2402_v1 = vld [vmem:[%s2987_s1 + $0x190] sm:$0xff]  }
  0x1e   : > { %2149 = vmatpush3.bf16.msra.mxu1 %v2374_v15  ;;  %2086 = vmatprep.subr.bf16.mxu0 %v2375_v16  ;;  %v255_v44 = vld [vmem:[%s2986_s0 + $0x40] sm:$0xff]  ;;  %v2397_v54 = vld [vmem:[%s2987_s1 + $0x1c8] sm:$0xff]   ;;  %v2403_v10 = vld [vmem:[%s2987_s1 + $0x158] sm:$0xff]  }
  0x1f   : > { %2150 = vmatprep.subr.bf16.mxu1 %v2376_v17  ;;  %v259_v45 = vld [vmem:[%s2986_s0 + $0x60] sm:$0xff]  ;;  %v2398_v55 = vld [vmem:[%s2987_s1 + $0x188] sm:$0xff]   ;;  %v2404_v11 = vld [vmem:[%s2987_s1 + $0x118] sm:$0xff]  }
  0x20   : > { %v1875_v46 = vcombine.high %v255_v44, %v259_v45  ;;  %v1874_v51 = vcombine.low %v255_v44, %v259_v45  ;;  %v263_v56 = vld [vmem:[%s2986_s0 + $0x80] sm:$0xff]  ;;  %v264_v58 = vld [vmem:[%s2986_s0 + $0x88] sm:$0xff]  ;;  %v2405_v12 = vld [vmem:[%s2987_s1 + $0x1d8] sm:$0xff]  }
  0x21   : > { %2087 = vmatpush3.bf16.msra.mxu0 %v2377_v18  ;;  %v267_v57 = vld [vmem:[%s2986_s0 + $0xa0] sm:$0xff]  ;;  %v268_v59 = vld [vmem:[%s2986_s0 + $0xa8] sm:$0xff]  ;;  %v2406_v13 = vld [vmem:[%s2987_s1 + $0x198] sm:$0xff]  }
  0x22   : > { %2151 = vmatpush3.bf16.msra.mxu1 %v2378_v19  ;;  %2088 = vmatprep.subr.bf16.mxu0 %v2379_v20  ;;  %v1883_v60 = vcombine.high %v263_v56, %v267_v57  ;;  %v1885_v61 = vcombine.high %v264_v58, %v268_v59  ;;  %v1882_v2 = vcombine.low %v263_v56, %v267_v57  ;;  %v271_v3 = vld [vmem:[%s2986_s0 + $0xc0] sm:$0xff]  ;;  %v272_v5 = vld [vmem:[%s2986_s0 + $0xc8] sm:$0xff]  ;;  %v2416_v39 = vld [vmem:[%s2987_s1 + $0x130] sm:$0xff]  }
  0x23   : > { %2152 = vmatprep.subr.bf16.mxu1 %v2380_v21  ;;  %v275_v4 = vld [vmem:[%s2986_s0 + $0xe0] sm:$0xff]  ;;  %v1884_v6 = vcombine.low %v264_v58, %v268_v59  ;;  %v276_v8 = vld [vmem:[%s2986_s0 + $0xe8] sm:$0xff]  ;;  %v2420_v48 = vld [vmem:[%s2987_s1 + $0x138] sm:$0xff]  }
  0x24   : > { %v1891_v7 = vcombine.high %v271_v3, %v275_v4  ;;  %v1893_v9 = vcombine.high %v272_v5, %v276_v8  ;;  %v279_v14 = vld [vmem:[%s2986_s0 + $0x100] sm:$0xff]  ;;  %v280_v16 = vld [vmem:[%s2986_s0 + $0x108] sm:$0xff]  ;;  %v1890_v19 = vcombine.low %v271_v3, %v275_v4  ;;  %v1892_v21 = vcombine.low %v272_v5, %v276_v8  ;;  %v258_v8 = vld [vmem:[%s2986_s0 + $0x58] sm:$0xff] }
  0x25   : > { %2089 = vmatpush3.bf16.msra.mxu0 %v2381_v22  ;;  %v283_v15 = vld [vmem:[%s2986_s0 + $0x120] sm:$0xff]  ;;  %v284_v17 = vld [vmem:[%s2986_s0 + $0x128] sm:$0xff] }
  0x26   : > { %2153 = vmatpush3.bf16.msra.mxu1 %v2382_v23  ;;  %2090 = vmatprep.subr.bf16.mxu0 %v2383_v24  ;;  %v2407_v18 = vld [vmem:[%s2987_s1 + $0x160] sm:$0xff]   ;;  %v1899_v22 = vcombine.high %v279_v14, %v283_v15  ;;  %v1901_v24 = vcombine.high %v280_v16, %v284_v17  ;;  %v2413_v32 = vld [vmem:[%s2987_s1 + $0x1e8] sm:$0xff]   ;;  %v1898_v34 = vcombine.low %v279_v14, %v283_v15  ;;  %v265_v14 = vld [vmem:[%s2986_s0 + $0x90] sm:$0xff] }
  0x27   : > { %2154 = vmatprep.subr.bf16.mxu1 %v2384_v25  ;;  %v2408_v20 = vld [vmem:[%s2987_s1 + $0x120] sm:$0xff]   ;;  %v2414_v33 = vld [vmem:[%s2987_s1 + $0x1a8] sm:$0xff]   ;;  %v269_v15 = vld [vmem:[%s2986_s0 + $0xb0] sm:$0xff] }
  0x28   : > { %v2409_v23 = vld [vmem:[%s2987_s1 + $0x1e0] sm:$0xff]   ;;  %v296_v44 = vld [vmem:[%s2986_s0 + $0x188] sm:$0xff] }
  0x29   : > { %2091 = vmatpush3.bf16.msra.mxu0 %v2385_v26  ;;  %v2410_v25 = vld [vmem:[%s2987_s1 + $0x1a0] sm:$0xff]   ;;  %v300_v45 = vld [vmem:[%s2986_s0 + $0x1a8] sm:$0xff] }
  0x2a   : > { %2155 = vmatpush3.bf16.msra.mxu1 %v2386_v27  ;;  %2092 = vmatprep.subr.bf16.mxu0 %v2387_v28  ;;  %v287_v26 = vld [vmem:[%s2986_s0 + $0x140] sm:$0xff]  ;;  %v2411_v28 = vld [vmem:[%s2987_s1 + $0x168] sm:$0xff]   ;;  %v1916_v59 = vcombine.low %v296_v44, %v300_v45 }
  0x2b   : > { %2156 = vmatprep.subr.bf16.mxu1 %v2388_v29  ;;  %v291_v27 = vld [vmem:[%s2986_s0 + $0x160] sm:$0xff]  ;;  %v288_v29 = vld [vmem:[%s2986_s0 + $0x148] sm:$0xff] }
  0x2c   : > { %v1907_v36 = vcombine.high %v287_v26, %v291_v27  ;;  %v1906_v47 = vcombine.low %v287_v26, %v291_v27  ;;  %v304_v56 = vld [vmem:[%s2986_s0 + $0x1c8] sm:$0xff]  ;;  %v1886_v26 = vcombine.low %v265_v14, %v269_v15 }
  0x2d   : > { %2093 = vmatpush3.bf16.msra.mxu0 %v2389_v30  ;;  %v292_v30 = vld [vmem:[%s2986_s0 + $0x168] sm:$0xff] }
  0x2e   : > { %2157 = vmatpush3.bf16.msra.mxu1 %v2390_v31  ;;  %2206 = vmatprep.subr.bf16.mxu0 %v2391_v40  ;;  %v2412_v31 = vld [vmem:[%s2987_s1 + $0x128] sm:$0xff]   ;;  %v1909_v37 = vcombine.high %v288_v29, %v292_v30  ;;  %v2417_v40 = vld [vmem:[%s2987_s1 + $0x1f0] sm:$0xff]  }
  0x2f   : > { %2270 = vmatprep.subr.bf16.mxu1 %v2393_v42  ;;  %v299_v42 = vld [vmem:[%s2986_s0 + $0x1a0] sm:$0xff]  ;;  %v308_v57 = vld [vmem:[%s2986_s0 + $0x1e8] sm:$0xff] }
  0x30   : > { %1176 = vmatmul.mubr.bf16.vlgmr.msra.gmra.mrb[0].mxu0 %v1866_v35  ;;  %v1900_v35 = vcombine.low %v280_v16, %v284_v17  ;;  %v1924_v3 = vcombine.low %v304_v56, %v308_v57  ;;  %v266_v16 = vld [vmem:[%s2986_s0 + $0x98] sm:$0xff] }
  0x31   : > { %1273 = vmatmul.mubr.bf16.vlgmr.msra.gmra.mrb[0].mxu1 %v1868_v38  ;;  %2207 = vmatpush3.bf16.msra.mxu0 %v2392_v41  ;;  %v2415_v38 = vld [vmem:[%s2987_s1 + $0x170] sm:$0xff]   ;;  %v295_v41 = vld [vmem:[%s2986_s0 + $0x180] sm:$0xff]  ;;  %v270_v17 = vld [vmem:[%s2986_s0 + $0xb8] sm:$0xff] }
  0x32   : > { %2271 = vmatpush3.bf16.msra.mxu1 %v2394_v43  ;;  %1183 = vmatprep.mubr.bf16.mxu0 %v1875_v46  ;;  %v2418_v43 = vld [vmem:[%s2987_s1 + $0x1b0] sm:$0xff]   ;;  %v2419_v46 = vld [vmem:[%s2987_s1 + $0x178] sm:$0xff]   ;;  %v1914_v58 = vcombine.low %v295_v41, %v299_v42  ;;  %v1888_v27 = vcombine.low %v266_v16, %v270_v17 }
  0x33   : > { %1280 = vmatprep.mubr.bf16.mxu1 %v1877_v49  ;;  %2208 = vmatprep.subr.bf16.mxu0 %v2395_v50  ;;  %v1908_v49 = vcombine.low %v288_v29, %v292_v30  ;;  %v1915_v50 = vcombine.high %v295_v41, %v299_v42  ;;  %v281_v30 = vld [vmem:[%s2986_s0 + $0x110] sm:$0xff]  ;;  %v294_v41 = vld [vmem:[%s2986_s0 + $0x178] sm:$0xff] }
  0x34   : > { %2272 = vmatprep.subr.bf16.mxu1 %v2397_v54  ;;  %v303_v54 = vld [vmem:[%s2986_s0 + $0x1c0] sm:$0xff] }
  0x35   : > { %2209 = vmatpush3.bf16.msra.mxu0 %v2396_v52  ;;  %v1917_v52 = vcombine.high %v296_v44, %v300_v45 }
  0x36   : > { %2273 = vmatpush3.bf16.msra.mxu1 %v2398_v55  ;;  %2210 = vmatprep.subr.bf16.mxu0 %v2399_v62  ;;  %v307_v55 = vld [vmem:[%s2986_s0 + $0x1e0] sm:$0xff]  ;;  %v249_v62 = vld [vmem:[%s2986_s0 + $0x10] sm:$0xff] }
  0x37   : > { %2274 = vmatprep.subr.bf16.mxu1 %v2401_v0  ;;  %v250_v0 = vld [vmem:[%s2986_s0 + $0x18] sm:$0xff] }
  0x38   : > { %1184 = vmatmul.mubr.bf16.gmra.mrb[4].mxu0 %v1874_v51  ;;  %v2421_v51 = vld [vmem:[%s2987_s1 + $0x1f8] sm:$0xff]  }
  0x39   : > { %1281 = vmatmul.mubr.bf16.gmra.mrb[4].mxu1 %v1876_v53  ;;  %1191 = vmatprep.mubr.bf16.mxu0 %v1883_v60  ;;  %v2422_v53 = vld [vmem:[%s2987_s1 + $0x1b8] sm:$0xff]   ;;  %v1923_v60 = vcombine.high %v303_v54, %v307_v55 }
  0x3a   : > { %1288 = vmatprep.mubr.bf16.mxu1 %v1885_v61  ;;  %2211 = vmatpush3.bf16.msra.mxu0 %v2400_v63  ;;  %v1925_v61 = vcombine.high %v304_v56, %v308_v57  ;;  %v253_v63 = vld [vmem:[%s2986_s0 + $0x30] sm:$0xff]  ;;  %v306_v56 = vld [vmem:[%s2986_s0 + $0x1d8] sm:$0xff] }
  0x3b   : > { %2275 = vmatpush3.bf16.msra.mxu1 %v2402_v1  ;;  %2212 = vmatprep.subr.bf16.mxu0 %v2403_v10  ;;  %v254_v1 = vld [vmem:[%s2986_s0 + $0x38] sm:$0xff]  ;;  %v1871_v4 = vcombine.high %v249_v62, %v253_v63  ;;  %v1870_v10 = vcombine.low %v249_v62, %v253_v63 }
  0x3c   : > { %2276 = vmatprep.subr.bf16.mxu1 %v2405_v12  ;;  %v1873_v5 = vcombine.high %v250_v0, %v254_v1  ;;  %v310_v57 = vld [vmem:[%s2986_s0 + $0x1f8] sm:$0xff] }
  0x3d   : > { %v1928_v63 = vcombine.low %v306_v56, %v310_v57 }
  0x3e   : > { %2213 = vmatpush3.bf16.msra.mxu0 %v2404_v11  ;;  %v1872_v11 = vcombine.low %v250_v0, %v254_v1 }
  0x3f   : > { %2277 = vmatpush3.bf16.msra.mxu1 %v2406_v13  ;;  %2214 = vmatprep.subr.bf16.mxu0 %v2407_v18 }
  0x40   : > { %1192 = vmatmul.mubr.bf16.gmra.mrb[8].mxu0 %v1882_v2  ;;  %2278 = vmatprep.subr.bf16.mxu1 %v2409_v23  ;;  %v1922_v2 = vcombine.low %v303_v54, %v307_v55  ;;  %v277_v23 = vld [vmem:[%s2986_s0 + $0xf0] sm:$0xff] }
  0x41   : > { %1289 = vmatmul.mubr.bf16.gmra.mrb[8].mxu1 %v1884_v6  ;;  %1199 = vmatprep.mubr.bf16.mxu0 %v1891_v7  ;;  %v257_v6 = vld [vmem:[%s2986_s0 + $0x50] sm:$0xff] }
  0x42   : > { %1296 = vmatprep.mubr.bf16.mxu1 %v1893_v9  ;;  %2215 = vmatpush3.bf16.msra.mxu0 %v2408_v20  ;;  %v261_v7 = vld [vmem:[%s2986_s0 + $0x70] sm:$0xff]  ;;  %v262_v9 = vld [vmem:[%s2986_s0 + $0x78] sm:$0xff]  ;;  %v1887_v20 = vcombine.high %v265_v14, %v269_v15 }
  0x43   : > { %2279 = vmatpush3.bf16.msra.mxu1 %v2410_v25  ;;  %2216 = vmatprep.subr.bf16.mxu0 %v2411_v28  ;;  %v1879_v12 = vcombine.high %v257_v6, %v261_v7  ;;  %v1881_v13 = vcombine.high %v258_v8, %v262_v9  ;;  %v1878_v18 = vcombine.low %v257_v6, %v261_v7  ;;  %v278_v25 = vld [vmem:[%s2986_s0 + $0xf8] sm:$0xff]  ;;  %v305_v54 = vld [vmem:[%s2986_s0 + $0x1d0] sm:$0xff] }
  0x44   : > { %2280 = vmatprep.subr.bf16.mxu1 %v2413_v32  ;;  %v282_v32 = vld [vmem:[%s2986_s0 + $0x118] sm:$0xff]  ;;  %v309_v55 = vld [vmem:[%s2986_s0 + $0x1f0] sm:$0xff] }
  0x45   : > { %v1926_v62 = vcombine.low %v305_v54, %v309_v55 }
  0x46   : > { %2217 = vmatpush3.bf16.msra.mxu0 %v2412_v31  ;;  %v285_v31 = vld [vmem:[%s2986_s0 + $0x130] sm:$0xff] }
  0x47   : > { %2281 = vmatpush3.bf16.msra.mxu1 %v2414_v33  ;;  %2218 = vmatprep.subr.bf16.mxu0 %v2415_v38  ;;  %v286_v33 = vld [vmem:[%s2986_s0 + $0x138] sm:$0xff]  ;;  %v289_v38 = vld [vmem:[%s2986_s0 + $0x150] sm:$0xff]  ;;  %v1902_v42 = vcombine.low %v281_v30, %v285_v31 }
  0x48   : > { %1200 = vmatmul.mubr.bf16.gmra.mrb[12].mxu0 %v1890_v19  ;;  %2282 = vmatprep.subr.bf16.mxu1 %v2417_v40  ;;  %v1880_v19 = vcombine.low %v258_v8, %v262_v9  ;;  %v290_v40 = vld [vmem:[%s2986_s0 + $0x158] sm:$0xff]  ;;  %v2449_v9 = vmov 0.0  }
  0x49   : > { %1297 = vmatmul.mubr.bf16.gmra.mrb[12].mxu1 %v1892_v21  ;;  %1207 = vmatprep.mubr.bf16.mxu0 %v1899_v22  ;;  %v1889_v21 = vcombine.high %v266_v16, %v270_v17  ;;  %v273_v22 = vld [vmem:[%s2986_s0 + $0xd0] sm:$0xff]  ;;  %v1913_v45 = vcombine.high %v290_v40, %v294_v41  ;;  %245 = vst [vmem:[#allocation3] sm:$0x1] %v2449_v9  ;;  %246 = vst [vmem:[#allocation4] sm:$0x1] %v2449_v9 }
  0x4a   : > { %1304 = vmatprep.mubr.bf16.mxu1 %v1901_v24  ;;  %2219 = vmatpush3.bf16.msra.mxu0 %v2416_v39  ;;  %v274_v24 = vld [vmem:[%s2986_s0 + $0xd8] sm:$0xff]  ;;  %v1895_v28 = vcombine.high %v273_v22, %v277_v23  ;;  %v293_v39 = vld [vmem:[%s2986_s0 + $0x170] sm:$0xff] }
  0x4b   : > { %2283 = vmatpush3.bf16.msra.mxu1 %v2418_v43  ;;  %2220 = vmatprep.subr.bf16.mxu0 %v2419_v46  ;;  %v1897_v29 = vcombine.high %v274_v24, %v278_v25  ;;  %v1904_v43 = vcombine.low %v282_v32, %v286_v33  ;;  %v1911_v44 = vcombine.high %v289_v38, %v293_v39  ;;  %v297_v46 = vld [vmem:[%s2986_s0 + $0x190] sm:$0xff] }
  0x4c   : > { %2284 = vmatprep.subr.bf16.mxu1 %v2421_v51  ;;  %v1912_v51 = vcombine.low %v290_v40, %v294_v41 }
  0x4e   : > { %2221 = vmatpush3.bf16.msra.mxu0 %v2420_v48  ;;  %v298_v48 = vld [vmem:[%s2986_s0 + $0x198] sm:$0xff] }
  0x4f   : > { %2285 = vmatpush3.bf16.msra.mxu1 %v2422_v53 }
  0x50   : > { %1208 = vmatmul.mubr.bf16.gmra.mrb[16].mxu0 %v1898_v34  ;;  %v1894_v34 = vcombine.low %v273_v22, %v277_v23 }
  0x51   : > { %1305 = vmatmul.mubr.bf16.gmra.mrb[16].mxu1 %v1900_v35  ;;  %1215 = vmatprep.mubr.bf16.mxu0 %v1907_v36  ;;  %v1896_v35 = vcombine.low %v274_v24, %v278_v25  ;;  %v1903_v36 = vcombine.high %v281_v30, %v285_v31 }
  0x52   : > { %1312 = vmatprep.mubr.bf16.mxu1 %v1909_v37  ;;  %v1905_v37 = vcombine.high %v282_v32, %v286_v33 }
  0x58   : > { %1216 = vmatmul.mubr.bf16.gmra.mrb[20].mxu0 %v1906_v47  ;;  %v301_v47 = vld [vmem:[%s2986_s0 + $0x1b0] sm:$0xff] }
  0x59   : > { %1313 = vmatmul.mubr.bf16.gmra.mrb[20].mxu1 %v1908_v49  ;;  %1223 = vmatprep.mubr.bf16.mxu0 %v1915_v50  ;;  %v302_v49 = vld [vmem:[%s2986_s0 + $0x1b8] sm:$0xff]  ;;  %v1910_v50 = vcombine.low %v289_v38, %v293_v39 }
  0x5a   : > { %1320 = vmatprep.mubr.bf16.mxu1 %v1917_v52  ;;  %v1919_v52 = vcombine.high %v297_v46, %v301_v47  ;;  %v1921_v53 = vcombine.high %v298_v48, %v302_v49 }
  0x60   : > { %1224 = vmatmul.mubr.bf16.gmra.mrb[24].mxu0 %v1914_v58  ;;  %v1918_v58 = vcombine.low %v297_v46, %v301_v47 }
  0x61   : > { %1321 = vmatmul.mubr.bf16.gmra.mrb[24].mxu1 %v1916_v59  ;;  %1231 = vmatprep.mubr.bf16.mxu0 %v1923_v60  ;;  %v1920_v59 = vcombine.low %v298_v48, %v302_v49  ;;  %v1927_v60 = vcombine.high %v305_v54, %v309_v55 }
  0x62   : > { %1328 = vmatprep.mubr.bf16.mxu1 %v1925_v61  ;;  %v1929_v61 = vcombine.high %v306_v56, %v310_v57 }
  0x68   : > { %1232 = vmatmul.mubr.bf16.gmra.mrb[28].mxu0 %v1922_v2 }
  0x69   : > { %1329 = vmatmul.mubr.bf16.gmra.mrb[28].mxu1 %v1924_v3  ;;  %1369 = vmatprep.mubr.bf16.mxu0 %v1871_v4 }
  0x6a   : > { %1466 = vmatprep.mubr.bf16.mxu1 %v1873_v5 }
  0x70   : > { %1370 = vmatmul.mubr.bf16.vlgmr.msra.gmra.mrb[32].mxu0 %v1870_v10 }
  0x71   : > { %1467 = vmatmul.mubr.bf16.vlgmr.msra.gmra.mrb[32].mxu1 %v1872_v11  ;;  %1377 = vmatprep.mubr.bf16.mxu0 %v1879_v12 }
  0x72   : > { %1474 = vmatprep.mubr.bf16.mxu1 %v1881_v13 }
  0x78   : > { %1378 = vmatmul.mubr.bf16.gmra.mrb[36].mxu0 %v1878_v18 }
  0x79   : > { %1475 = vmatmul.mubr.bf16.gmra.mrb[36].mxu1 %v1880_v19  ;;  %1385 = vmatprep.mubr.bf16.mxu0 %v1887_v20 }
  0x7a   : > { %1482 = vmatprep.mubr.bf16.mxu1 %v1889_v21 }
  0x80   : > { %1386 = vmatmul.mubr.bf16.gmra.mrb[40].mxu0 %v1886_v26 }
  0x81   : > { %1483 = vmatmul.mubr.bf16.gmra.mrb[40].mxu1 %v1888_v27  ;;  %1393 = vmatprep.mubr.bf16.mxu0 %v1895_v28 }
  0x82   : > { %1490 = vmatprep.mubr.bf16.mxu1 %v1897_v29 }
  0x88   : > { %1394 = vmatmul.mubr.bf16.gmra.mrb[44].mxu0 %v1894_v34 }
  0x89   : > { %1491 = vmatmul.mubr.bf16.gmra.mrb[44].mxu1 %v1896_v35  ;;  %1401 = vmatprep.mubr.bf16.mxu0 %v1903_v36 }
  0x8a   : > { %1498 = vmatprep.mubr.bf16.mxu1 %v1905_v37 }
  0x90   : > { %1402 = vmatmul.mubr.bf16.gmra.mrb[48].mxu0 %v1902_v42 }
  0x91   : > { %1499 = vmatmul.mubr.bf16.gmra.mrb[48].mxu1 %v1904_v43  ;;  %1409 = vmatprep.mubr.bf16.mxu0 %v1911_v44 }
  0x92   : > { %1506 = vmatprep.mubr.bf16.mxu1 %v1913_v45 }
  0x98   : > { %1410 = vmatmul.mubr.bf16.gmra.mrb[52].mxu0 %v1910_v50 }
  0x99   : > { %1507 = vmatmul.mubr.bf16.gmra.mrb[52].mxu1 %v1912_v51  ;;  %1417 = vmatprep.mubr.bf16.mxu0 %v1919_v52 }
  0x9a   : > { %1514 = vmatprep.mubr.bf16.mxu1 %v1921_v53 }
  0xa0   : > { %1418 = vmatmul.mubr.bf16.gmra.mrb[56].mxu0 %v1918_v58 }
  0xa1   : > { %1515 = vmatmul.mubr.bf16.gmra.mrb[56].mxu1 %v1920_v59  ;;  %1425 = vmatprep.mubr.bf16.mxu0 %v1927_v60 }
  0xa2   : > { %1522 = vmatprep.mubr.bf16.mxu1 %v1929_v61 }
  0xa8   : > { %1426 = vmatmul.mubr.bf16.gmra.mrb[60].mxu0 %v1926_v62 }
  0xa9   : > { %1523 = vmatmul.mubr.bf16.gmra.mrb[60].mxu1 %v1928_v63 }
 0x103   : > { %v2094_v0 = vpop.f32.mrb[0].mxu0 }
 0x104   : > { %v2158_v1 = vpop.f32.mrb[0].mxu1  ;;  %v2095_v2 = vpop.f32.mrb[1].mxu0 }
 0x105   : > { %v2096_v3 = vadd.f32 %v2095_v2, %v2094_v0  ;;  %v2159_v4 = vpop.f32.mrb[1].mxu1  ;;  %v2097_v5 = vpop.f32.mrb[2].mxu0 }
 0x106   : > { %v2160_v6 = vadd.f32 %v2159_v4, %v2158_v1  ;;  %v2161_v7 = vpop.f32.mrb[2].mxu1  ;;  %v2098_v8 = vpop.f32.mrb[3].mxu0 }
 0x107   : > { %v2099_v10 = vadd.f32 %v2098_v8, %v2097_v5  ;;  %v2162_v11 = vpop.f32.mrb[3].mxu1 }
 0x108   : > { %v2880_v12 = vadd.f32 %v2160_v6, %v2096_v3  ;;  %v2163_v13 = vadd.f32 %v2162_v11, %v2161_v7 }
 0x10a   : > { %v2882_v14 = vadd.f32 %v2163_v13, %v2099_v10 }
 0x10b   : > { %v2100_v15 = vpop.f32.mrb[4].mxu0 }
 0x10c   : > { %v2164_v16 = vpop.f32.mrb[4].mxu1  ;;  %v2101_v17 = vpop.f32.mrb[5].mxu0 }
 0x10d   : > { %v2102_v18 = vadd.f32 %v2101_v17, %v2100_v15  ;;  %v2165_v19 = vpop.f32.mrb[5].mxu1  ;;  %v2103_v20 = vpop.f32.mrb[6].mxu0 }
 0x10e   : > { %v2166_v21 = vadd.f32 %v2165_v19, %v2164_v16  ;;  %v2167_v22 = vpop.f32.mrb[6].mxu1  ;;  %v2104_v23 = vpop.f32.mrb[7].mxu0 }
 0x10f   : > { %v2105_v24 = vadd.f32 %v2104_v23, %v2103_v20  ;;  %v2168_v25 = vpop.f32.mrb[7].mxu1 }
 0x110   : > { %v2884_v26 = vadd.f32 %v2166_v21, %v2102_v18  ;;  %v2169_v27 = vadd.f32 %v2168_v25, %v2167_v22 }
 0x112   : > { %v2886_v28 = vadd.f32 %v2169_v27, %v2105_v24 }
 0x113   : > { %v2106_v29 = vpop.f32.mrb[8].mxu0 }
 0x114   : > { %v2170_v30 = vpop.f32.mrb[8].mxu1  ;;  %v2107_v31 = vpop.f32.mrb[9].mxu0 }
 0x115   : > { %v2108_v32 = vadd.f32 %v2107_v31, %v2106_v29  ;;  %v2171_v33 = vpop.f32.mrb[9].mxu1  ;;  %v2109_v34 = vpop.f32.mrb[10].mxu0 }
 0x116   : > { %v2172_v35 = vadd.f32 %v2171_v33, %v2170_v30  ;;  %v2173_v36 = vpop.f32.mrb[10].mxu1  ;;  %v2110_v37 = vpop.f32.mrb[11].mxu0 }
 0x117   : > { %v2111_v38 = vadd.f32 %v2110_v37, %v2109_v34  ;;  %v2174_v39 = vpop.f32.mrb[11].mxu1 }
 0x118   : > { %v2888_v40 = vadd.f32 %v2172_v35, %v2108_v32  ;;  %v2175_v41 = vadd.f32 %v2174_v39, %v2173_v36 }
 0x11a   : > { %v2890_v42 = vadd.f32 %v2175_v41, %v2111_v38 }
 0x11b   : > { %v2112_v43 = vpop.f32.mrb[12].mxu0 }
 0x11c   : > { %v2176_v44 = vpop.f32.mrb[12].mxu1  ;;  %v2113_v45 = vpop.f32.mrb[13].mxu0 }
 0x11d   : > { %v2114_v46 = vadd.f32 %v2113_v45, %v2112_v43  ;;  %v2177_v47 = vpop.f32.mrb[13].mxu1  ;;  %v2115_v48 = vpop.f32.mrb[14].mxu0 }
 0x11e   : > { %v2178_v49 = vadd.f32 %v2177_v47, %v2176_v44  ;;  %v2179_v50 = vpop.f32.mrb[14].mxu1  ;;  %v2116_v51 = vpop.f32.mrb[15].mxu0 }
 0x11f   : > { %v2117_v52 = vadd.f32 %v2116_v51, %v2115_v48  ;;  %v2180_v53 = vpop.f32.mrb[15].mxu1 }
 0x120   : > { %v2892_v54 = vadd.f32 %v2178_v49, %v2114_v46  ;;  %v2181_v55 = vadd.f32 %v2180_v53, %v2179_v50 }
 0x122   : > { %v2894_v56 = vadd.f32 %v2181_v55, %v2117_v52 }
 0x123   : > { %v2118_v57 = vpop.f32.mrb[16].mxu0 }
 0x124   : > { %v2182_v58 = vpop.f32.mrb[16].mxu1  ;;  %v2119_v59 = vpop.f32.mrb[17].mxu0 }
 0x125   : > { %v2120_v60 = vadd.f32 %v2119_v59, %v2118_v57  ;;  %v2183_v61 = vpop.f32.mrb[17].mxu1  ;;  %v2121_v62 = vpop.f32.mrb[18].mxu0 }
 0x126   : > { %v2184_v63 = vadd.f32 %v2183_v61, %v2182_v58  ;;  %v2185_v0 = vpop.f32.mrb[18].mxu1  ;;  %v2122_v1 = vpop.f32.mrb[19].mxu0 }
 0x127   : > { %v2123_v2 = vadd.f32 %v2122_v1, %v2121_v62  ;;  %v2186_v3 = vpop.f32.mrb[19].mxu1 }
 0x128   : > { %v2896_v4 = vadd.f32 %v2184_v63, %v2120_v60  ;;  %v2187_v5 = vadd.f32 %v2186_v3, %v2185_v0 }
 0x12a   : > { %v2898_v6 = vadd.f32 %v2187_v5, %v2123_v2 }
 0x12b   : > { %v2124_v7 = vpop.f32.mrb[20].mxu0 }
 0x12c   : > { %v2188_v8 = vpop.f32.mrb[20].mxu1  ;;  %v2125_v9 = vpop.f32.mrb[21].mxu0 }
 0x12d   : > { %v2126_v10 = vadd.f32 %v2125_v9, %v2124_v7  ;;  %v2189_v11 = vpop.f32.mrb[21].mxu1  ;;  %v2127_v13 = vpop.f32.mrb[22].mxu0 }
 0x12e   : > { %v2190_v15 = vadd.f32 %v2189_v11, %v2188_v8  ;;  %v2191_v16 = vpop.f32.mrb[22].mxu1  ;;  %v2128_v17 = vpop.f32.mrb[23].mxu0 }
 0x12f   : > { %v2129_v18 = vadd.f32 %v2128_v17, %v2127_v13  ;;  %v2192_v19 = vpop.f32.mrb[23].mxu1 }
 0x130   : > { %v2900_v20 = vadd.f32 %v2190_v15, %v2126_v10  ;;  %v2193_v21 = vadd.f32 %v2192_v19, %v2191_v16 }
 0x132   : > { %v2902_v22 = vadd.f32 %v2193_v21, %v2129_v18 }
 0x133   : > { %v2130_v23 = vpop.f32.mrb[24].mxu0 }
 0x134   : > { %v2194_v24 = vpop.f32.mrb[24].mxu1  ;;  %v2131_v25 = vpop.f32.mrb[25].mxu0 }
 0x135   : > { %v2132_v27 = vadd.f32 %v2131_v25, %v2130_v23  ;;  %v2195_v29 = vpop.f32.mrb[25].mxu1  ;;  %v2133_v30 = vpop.f32.mrb[26].mxu0 }
 0x136   : > { %v2196_v31 = vadd.f32 %v2195_v29, %v2194_v24  ;;  %v2197_v32 = vpop.f32.mrb[26].mxu1  ;;  %v2134_v33 = vpop.f32.mrb[27].mxu0 }
 0x137   : > { %v2135_v34 = vadd.f32 %v2134_v33, %v2133_v30  ;;  %v2198_v35 = vpop.f32.mrb[27].mxu1 }
 0x138   : > { %v2904_v36 = vadd.f32 %v2196_v31, %v2132_v27  ;;  %v2199_v37 = vadd.f32 %v2198_v35, %v2197_v32 }
 0x13a   : > { %v2906_v38 = vadd.f32 %v2199_v37, %v2135_v34 }
 0x13b   : > { %v2136_v39 = vpop.f32.mrb[28].mxu0 }
 0x13c   : > { %v2200_v41 = vpop.f32.mrb[28].mxu1  ;;  %v2137_v43 = vpop.f32.mrb[29].mxu0 }
 0x13d   : > { %v2138_v44 = vadd.f32 %v2137_v43, %v2136_v39  ;;  %v2201_v45 = vpop.f32.mrb[29].mxu1  ;;  %v2139_v46 = vpop.f32.mrb[30].mxu0 }
 0x13e   : > { %v2202_v47 = vadd.f32 %v2201_v45, %v2200_v41  ;;  %v2203_v48 = vpop.f32.mrb[30].mxu1  ;;  %v2140_v49 = vpop.f32.mrb[31].mxu0 }
 0x13f   : > { %v2141_v50 = vadd.f32 %v2140_v49, %v2139_v46  ;;  %v2204_v51 = vpop.f32.mrb[31].mxu1 }
 0x140   : > { %v2908_v52 = vadd.f32 %v2202_v47, %v2138_v44  ;;  %v2205_v53 = vadd.f32 %v2204_v51, %v2203_v48 }
 0x142   : > { %v2910_v55 = vadd.f32 %v2205_v53, %v2141_v50 }
 0x143   : > { %v2222_v57 = vpop.f32.mrb[32].mxu0 }
 0x144   : > { %v2286_v58 = vpop.f32.mrb[32].mxu1  ;;  %v2223_v59 = vpop.f32.mrb[33].mxu0 }
 0x145   : > { %v2224_v60 = vadd.f32 %v2223_v59, %v2222_v57  ;;  %v2287_v61 = vpop.f32.mrb[33].mxu1  ;;  %v2225_v62 = vpop.f32.mrb[34].mxu0 }
 0x146   : > { %v2288_v63 = vadd.f32 %v2287_v61, %v2286_v58  ;;  %v2289_v0 = vpop.f32.mrb[34].mxu1  ;;  %v2226_v1 = vpop.f32.mrb[35].mxu0 }
 0x147   : > { %v1372_v2 = vadd.f32 %v2224_v60, %v2880_v12  ;;  %v2227_v3 = vadd.f32 %v2226_v1, %v2225_v62  ;;  %v2290_v5 = vpop.f32.mrb[35].mxu1 }
 0x148   : > { %v2291_v7 = vadd.f32 %v2290_v5, %v2289_v0 }
 0x149   : > { %v1469_v8 = vadd.f32 %v2288_v63, %v1372_v2  ;;  %v1375_v9 = vadd.f32 %v2227_v3, %v2882_v14 }
 0x14b   : > { %1532 = vst [vmem:[#allocation2] sm:$0xff] %v1469_v8  ;;  %v1472_v10 = vadd.f32 %v2291_v7, %v1375_v9  ;;  %v2228_v11 = vpop.f32.mrb[36].mxu0  ;;  %v1573_v16 = vmul.f32 %v1469_v8, %v1469_v8 }
 0x14c   : > { %v2292_v13 = vpop.f32.mrb[36].mxu1  ;;  %v2229_v15 = vpop.f32.mrb[37].mxu0 }
 0x14d   : > { %1533 = vst [vmem:[#allocation2 + $0x8] sm:$0xff] %v1472_v10  ;;  %v1549_v17 = vadd.f32 %v1472_v10, %v1469_v8  ;;  %v1574_v18 = vmul.f32 %v1472_v10, %v1472_v10  ;;  %v2230_v19 = vadd.f32 %v2229_v15, %v2228_v11  ;;  %v2293_v21 = vpop.f32.mrb[37].mxu1  ;;  %v2231_v23 = vpop.f32.mrb[38].mxu0 }
 0x14e   : > { %v2294_v24 = vadd.f32 %v2293_v21, %v2292_v13  ;;  %v2295_v12 = vpop.f32.mrb[38].mxu1  ;;  %v2232_v25 = vpop.f32.mrb[39].mxu0 }
 0x14f   : > { %v1589_v27 = vadd.f32 %v1574_v18, %v1573_v16  ;;  %v1380_v29 = vadd.f32 %v2230_v19, %v2884_v26  ;;  %v2233_v30 = vadd.f32 %v2232_v25, %v2231_v23  ;;  %v2296_v14 = vpop.f32.mrb[39].mxu1 }
 0x150   : > { %v2297_v31 = vadd.f32 %v2296_v14, %v2295_v12 }
 0x151   : > { %v1477_v32 = vadd.f32 %v2294_v24, %v1380_v29  ;;  %v1383_v33 = vadd.f32 %v2233_v30, %v2886_v28 }
 0x153   : > { %1534 = vst [vmem:[#allocation2 + $0x10] sm:$0xff] %v1477_v32  ;;  %v1550_v34 = vadd.f32 %v1549_v17, %v1477_v32  ;;  %v1575_v35 = vmul.f32 %v1477_v32, %v1477_v32  ;;  %v1480_v37 = vadd.f32 %v2297_v31, %v1383_v33  ;;  %v2234_v39 = vpop.f32.mrb[40].mxu0 }
 0x154   : > { %v2298_v41 = vpop.f32.mrb[40].mxu1  ;;  %v2235_v43 = vpop.f32.mrb[41].mxu0 }
 0x155   : > { %v1590_v44 = vadd.f32 %v1589_v27, %v1575_v35  ;;  %1535 = vst [vmem:[#allocation2 + $0x18] sm:$0xff] %v1480_v37  ;;  %v1551_v45 = vadd.f32 %v1550_v34, %v1480_v37  ;;  %v1576_v46 = vmul.f32 %v1480_v37, %v1480_v37  ;;  %v2236_v47 = vadd.f32 %v2235_v43, %v2234_v39  ;;  %v2299_v48 = vpop.f32.mrb[41].mxu1  ;;  %v2237_v26 = vpop.f32.mrb[42].mxu0 }
 0x156   : > { %v2300_v49 = vadd.f32 %v2299_v48, %v2298_v41  ;;  %v2301_v50 = vpop.f32.mrb[42].mxu1  ;;  %v2238_v51 = vpop.f32.mrb[43].mxu0 }
 0x157   : > { %v1591_v53 = vadd.f32 %v1590_v44, %v1576_v46  ;;  %v1388_v28 = vadd.f32 %v2236_v47, %v2888_v40  ;;  %v2239_v57 = vadd.f32 %v2238_v51, %v2237_v26  ;;  %v2302_v58 = vpop.f32.mrb[43].mxu1 }
 0x158   : > { %v2303_v59 = vadd.f32 %v2302_v58, %v2301_v50 }
 0x159   : > { %v1485_v60 = vadd.f32 %v2300_v49, %v1388_v28  ;;  %v1391_v61 = vadd.f32 %v2239_v57, %v2890_v42 }
 0x15b   : > { %1536 = vst [vmem:[#allocation2 + $0x20] sm:$0xff] %v1485_v60  ;;  %v1552_v62 = vadd.f32 %v1551_v45, %v1485_v60  ;;  %v1577_v63 = vmul.f32 %v1485_v60, %v1485_v60  ;;  %v1488_v0 = vadd.f32 %v2303_v59, %v1391_v61  ;;  %v2240_v1 = vpop.f32.mrb[44].mxu0 }
 0x15c   : > { %v2304_v2 = vpop.f32.mrb[44].mxu1  ;;  %v2241_v3 = vpop.f32.mrb[45].mxu0 }
 0x15d   : > { %v1592_v5 = vadd.f32 %v1591_v53, %v1577_v63  ;;  %1537 = vst [vmem:[#allocation2 + $0x28] sm:$0xff] %v1488_v0  ;;  %v1553_v7 = vadd.f32 %v1552_v62, %v1488_v0  ;;  %v1578_v8 = vmul.f32 %v1488_v0, %v1488_v0  ;;  %v2242_v9 = vadd.f32 %v2241_v3, %v2240_v1  ;;  %v2305_v10 = vpop.f32.mrb[45].mxu1  ;;  %v2243_v40 = vpop.f32.mrb[46].mxu0 }
 0x15e   : > { %v2306_v11 = vadd.f32 %v2305_v10, %v2304_v2  ;;  %v2307_v13 = vpop.f32.mrb[46].mxu1  ;;  %v2244_v15 = vpop.f32.mrb[47].mxu0 }
 0x15f   : > { %v1593_v16 = vadd.f32 %v1592_v5, %v1578_v8  ;;  %v1396_v42 = vadd.f32 %v2242_v9, %v2892_v54  ;;  %v2245_v17 = vadd.f32 %v2244_v15, %v2243_v40  ;;  %v2308_v18 = vpop.f32.mrb[47].mxu1 }
 0x160   : > { %v2309_v19 = vadd.f32 %v2308_v18, %v2307_v13 }
 0x161   : > { %v1493_v21 = vadd.f32 %v2306_v11, %v1396_v42  ;;  %v1399_v23 = vadd.f32 %v2245_v17, %v2894_v56 }
 0x163   : > { %1538 = vst [vmem:[#allocation2 + $0x30] sm:$0xff] %v1493_v21  ;;  %v1554_v24 = vadd.f32 %v1553_v7, %v1493_v21  ;;  %v1579_v12 = vmul.f32 %v1493_v21, %v1493_v21  ;;  %v1496_v25 = vadd.f32 %v2309_v19, %v1399_v23  ;;  %v2246_v27 = vpop.f32.mrb[48].mxu0 }
 0x164   : > { %v2310_v29 = vpop.f32.mrb[48].mxu1  ;;  %v2247_v30 = vpop.f32.mrb[49].mxu0 }
 0x165   : > { %v1594_v14 = vadd.f32 %v1593_v16, %v1579_v12  ;;  %1539 = vst [vmem:[#allocation2 + $0x38] sm:$0xff] %v1496_v25  ;;  %v1555_v31 = vadd.f32 %v1554_v24, %v1496_v25  ;;  %v1580_v32 = vmul.f32 %v1496_v25, %v1496_v25  ;;  %v2248_v33 = vadd.f32 %v2247_v30, %v2246_v27  ;;  %v2311_v34 = vpop.f32.mrb[49].mxu1  ;;  %v2249_v54 = vpop.f32.mrb[50].mxu0 }
 0x166   : > { %v2312_v35 = vadd.f32 %v2311_v34, %v2310_v29  ;;  %v2313_v37 = vpop.f32.mrb[50].mxu1  ;;  %v2250_v39 = vpop.f32.mrb[51].mxu0 }
 0x167   : > { %v1595_v41 = vadd.f32 %v1594_v14, %v1580_v32  ;;  %v1404_v56 = vadd.f32 %v2248_v33, %v2896_v4  ;;  %v2251_v43 = vadd.f32 %v2250_v39, %v2249_v54  ;;  %v2314_v44 = vpop.f32.mrb[51].mxu1 }
 0x168   : > { %v2315_v45 = vadd.f32 %v2314_v44, %v2313_v37 }
 0x169   : > { %v1501_v46 = vadd.f32 %v2312_v35, %v1404_v56  ;;  %v1407_v47 = vadd.f32 %v2251_v43, %v2898_v6 }
 0x16b   : > { %1540 = vst [vmem:[#allocation2 + $0x40] sm:$0xff] %v1501_v46  ;;  %v1556_v48 = vadd.f32 %v1555_v31, %v1501_v46  ;;  %v1581_v26 = vmul.f32 %v1501_v46, %v1501_v46  ;;  %v1504_v49 = vadd.f32 %v2315_v45, %v1407_v47  ;;  %v2252_v50 = vpop.f32.mrb[52].mxu0 }
 0x16c   : > { %v2316_v51 = vpop.f32.mrb[52].mxu1  ;;  %v2253_v53 = vpop.f32.mrb[53].mxu0 }
 0x16d   : > { %v1596_v28 = vadd.f32 %v1595_v41, %v1581_v26  ;;  %1541 = vst [vmem:[#allocation2 + $0x48] sm:$0xff] %v1504_v49  ;;  %v1557_v57 = vadd.f32 %v1556_v48, %v1504_v49  ;;  %v1582_v58 = vmul.f32 %v1504_v49, %v1504_v49  ;;  %v2254_v59 = vadd.f32 %v2253_v53, %v2252_v50  ;;  %v2317_v60 = vpop.f32.mrb[53].mxu1  ;;  %v2255_v4 = vpop.f32.mrb[54].mxu0 }
 0x16e   : > { %v2318_v61 = vadd.f32 %v2317_v60, %v2316_v51  ;;  %v2319_v62 = vpop.f32.mrb[54].mxu1  ;;  %v2256_v63 = vpop.f32.mrb[55].mxu0 }
 0x16f   : > { %v1597_v0 = vadd.f32 %v1596_v28, %v1582_v58  ;;  %v1412_v6 = vadd.f32 %v2254_v59, %v2900_v20  ;;  %v2257_v1 = vadd.f32 %v2256_v63, %v2255_v4  ;;  %v2320_v2 = vpop.f32.mrb[55].mxu1 }
 0x170   : > { %v2321_v3 = vadd.f32 %v2320_v2, %v2319_v62 }
 0x171   : > { %v1509_v5 = vadd.f32 %v2318_v61, %v1412_v6  ;;  %v1415_v7 = vadd.f32 %v2257_v1, %v2902_v22 }
 0x173   : > { %1542 = vst [vmem:[#allocation2 + $0x50] sm:$0xff] %v1509_v5  ;;  %v1558_v8 = vadd.f32 %v1557_v57, %v1509_v5  ;;  %v1583_v9 = vmul.f32 %v1509_v5, %v1509_v5  ;;  %v1512_v10 = vadd.f32 %v2321_v3, %v1415_v7  ;;  %v2258_v40 = vpop.f32.mrb[56].mxu0  ;;  %v1548_v3 = vld [vmem:[#allocation3] sm:$0x1]  ;;  %v1572_v7 = vld [vmem:[#allocation4] sm:$0x1] }
 0x174   : > { %v2322_v11 = vpop.f32.mrb[56].mxu1  ;;  %v2259_v13 = vpop.f32.mrb[57].mxu0 }
 0x175   : > { %v1598_v15 = vadd.f32 %v1597_v0, %v1583_v9  ;;  %1543 = vst [vmem:[#allocation2 + $0x58] sm:$0xff] %v1512_v10  ;;  %v1559_v16 = vadd.f32 %v1558_v8, %v1512_v10  ;;  %v1584_v42 = vmul.f32 %v1512_v10, %v1512_v10  ;;  %v2260_v17 = vadd.f32 %v2259_v13, %v2258_v40  ;;  %v2323_v18 = vpop.f32.mrb[57].mxu1  ;;  %v2261_v20 = vpop.f32.mrb[58].mxu0 }
 0x176   : > { %v2324_v19 = vadd.f32 %v2323_v18, %v2322_v11  ;;  %v2325_v21 = vpop.f32.mrb[58].mxu1  ;;  %v2262_v23 = vpop.f32.mrb[59].mxu0 }
 0x177   : > { %v1599_v24 = vadd.f32 %v1598_v15, %v1584_v42  ;;  %v1420_v22 = vadd.f32 %v2260_v17, %v2904_v36  ;;  %v2263_v12 = vadd.f32 %v2262_v23, %v2261_v20  ;;  %v2326_v25 = vpop.f32.mrb[59].mxu1 }
 0x178   : > { %v2327_v27 = vadd.f32 %v2326_v25, %v2325_v21 }
 0x179   : > { %v1517_v29 = vadd.f32 %v2324_v19, %v1420_v22  ;;  %v1423_v30 = vadd.f32 %v2263_v12, %v2906_v38 }
 0x17b   : > { %1544 = vst [vmem:[#allocation2 + $0x60] sm:$0xff] %v1517_v29  ;;  %v1560_v14 = vadd.f32 %v1559_v16, %v1517_v29  ;;  %v1585_v31 = vmul.f32 %v1517_v29, %v1517_v29  ;;  %v1520_v32 = vadd.f32 %v2327_v27, %v1423_v30  ;;  %v2264_v33 = vpop.f32.mrb[60].mxu0 }
 0x17c   : > { %v2328_v34 = vpop.f32.mrb[60].mxu1  ;;  %v2265_v54 = vpop.f32.mrb[61].mxu0 }
 0x17d   : > { %v1600_v35 = vadd.f32 %v1599_v24, %v1585_v31  ;;  %1545 = vst [vmem:[#allocation2 + $0x68] sm:$0xff] %v1520_v32  ;;  %v1561_v37 = vadd.f32 %v1560_v14, %v1520_v32  ;;  %v1586_v39 = vmul.f32 %v1520_v32, %v1520_v32  ;;  %v2266_v41 = vadd.f32 %v2265_v54, %v2264_v33  ;;  %v2329_v56 = vpop.f32.mrb[61].mxu1  ;;  %v2267_v36 = vpop.f32.mrb[62].mxu0 }
 0x17e   : > { %v2330_v43 = vadd.f32 %v2329_v56, %v2328_v34  ;;  %v2331_v44 = vpop.f32.mrb[62].mxu1  ;;  %v2268_v45 = vpop.f32.mrb[63].mxu0 }
 0x17f   : > { %v1601_v46 = vadd.f32 %v1600_v35, %v1586_v39  ;;  %v1428_v38 = vadd.f32 %v2266_v41, %v2908_v52  ;;  %v2269_v47 = vadd.f32 %v2268_v45, %v2267_v36  ;;  %v2332_v48 = vpop.f32.mrb[63].mxu1 }
 0x180   : > { %v2333_v26 = vadd.f32 %v2332_v48, %v2331_v44 }
 0x181   : > { %v1525_v49 = vadd.f32 %v2330_v43, %v1428_v38  ;;  %v1431_v50 = vadd.f32 %v2269_v47, %v2910_v55 }
 0x183   : > { %1546 = vst [vmem:[#allocation2 + $0x70] sm:$0xff] %v1525_v49  ;;  %v1562_v51 = vadd.f32 %v1561_v37, %v1525_v49  ;;  %v1587_v53 = vmul.f32 %v1525_v49, %v1525_v49  ;;  %v1528_v28 = vadd.f32 %v2333_v26, %v1431_v50 }
 0x185   : > { %v1602_v57 = vadd.f32 %v1601_v46, %v1587_v53  ;;  %1547 = vst [vmem:[#allocation2 + $0x78] sm:$0xff] %v1528_v28  ;;  %v1563_v58 = vadd.f32 %v1562_v51, %v1528_v28  ;;  %v1588_v59 = vmul.f32 %v1528_v28, %v1528_v28 }
 0x187   : > { %v1564_v60 = vrot.slane %v1563_v58, 4  ;;  %v1603_v4 = vadd.f32 %v1602_v57, %v1588_v59 }
 0x189   : > { %v1565_v61 = vadd.f32 %v1564_v60, %v1563_v58  ;;  %v1604_v62 = vrot.slane %v1603_v4, 4 }
 0x18b   : > { %v1566_v63 = vrot.slane %v1565_v61, 2  ;;  %v1605_v52 = vadd.f32 %v1604_v62, %v1603_v4 }
 0x18d   : > { %v1567_v0 = vadd.f32 %v1566_v63, %v1565_v61  ;;  %v1606_v6 = vrot.slane %v1605_v52, 2 }
 0x18f   : > { %v1568_v1 = vrot.slane %v1567_v0, 1  ;;  %v1607_v2 = vadd.f32 %v1606_v6, %v1605_v52 }
 0x191   : > { %v1569_v55 = vadd.f32 %v1568_v1, %v1567_v0  ;;  %v1608_v5 = vrot.slane %v1607_v2, 1 }
 0x193   : > { %v1570_v8 = vadd.f32 %v1569_v55, %v1548_v3  ;;  %v1609_v9 = vadd.f32 %v1608_v5, %v1607_v2 }
 0x195   : > { %1571 = vst [vmem:[#allocation3] sm:$0x1] %v1570_v8  ;;  %v1610_v10 = vadd.f32 %v1609_v9, %v1572_v7 }
 0x197   : > { %1611 = vst [vmem:[#allocation4] sm:$0x1] %v1610_v10 }
 0x198 PF: > { %p1994_p5 = scmp.ne.s32.totalorder %s2439_s15, 1 }
 0x199   : > { %v1648_v20 = vlaneseq (!%p1994_p5)  ;;  %v1623_v21 = vld [vmem:[%s2988_s2] sm:$0x1] (!%p1994_p5)  ;;  %v1632_v27 = vld [vmem:[#allocation2 + $0x8] sm:$0xff] (!%p1994_p5)  ;;  %v1633_v29 = vld [vmem:[#allocation2 + $0x10] sm:$0xff] (!%p1994_p5) }
 0x19a   : > { %1615 = sbr.rel (%p1994_p5) target bundleno = 458 (0x1ca), region = 48  ;;  %v1627_v12 = vld [vmem:[%s2989_s3] sm:$0x1] (!%p1994_p5)  ;;  %v1634_v30 = vld [vmem:[#allocation2 + $0x18] sm:$0xff] (!%p1994_p5)  ;;  %v1636_v33 = vld [vmem:[#allocation2 + $0x28] sm:$0xff] (!%p1994_p5) }
 0x19b   : > { %v1649_v19 = vshrl.u32 (!%p1994_p5), %v1648_v20, 7  ;;  %v1631_v25 = vld [vmem:[#allocation2] sm:$0xff] (!%p1994_p5)  ;;  %v1637_v34 = vld [vmem:[#allocation2 + $0x30] sm:$0xff] (!%p1994_p5)  ;;  %v1638_v54 = vld [vmem:[#allocation2 + $0x38] sm:$0xff] (!%p1994_p5) }
 0x19c   : > { %v1616_v40 = vld [vmem:[#allocation3] sm:$0x1] (!%p1994_p5)  ;;  %v1640_v37 = vld [vmem:[#allocation2 + $0x48] sm:$0xff] (!%p1994_p5)  ;;  %v1641_v39 = vld [vmem:[#allocation2 + $0x50] sm:$0xff] (!%p1994_p5) }
 0x19d   : > { %v1617_v13 = vmul.f32 (!%p1994_p5), 0.0078125, %v1616_v40  ;;  %v1650_v23 = vsub.s32 (!%p1994_p5), 0, %v1649_v19  ;;  %v1635_v14 = vld [vmem:[#allocation2 + $0x20] sm:$0xff] (!%p1994_p5)  ;;  %v1642_v44 = vld [vmem:[#allocation2 + $0x58] sm:$0xff] (!%p1994_p5)  ;;  %v1644_v46 = vld [vmem:[#allocation2 + $0x68] sm:$0xff] (!%p1994_p5) }
 0x19e   : > { %v1618_v11 = vld [vmem:[#allocation4] sm:$0x1] (!%p1994_p5) }
 0x19f   : > { %v1619_v15 = vmul.f32 (!%p1994_p5), 0.0078125, %v1618_v11  ;;  %v1620_v16 = vmul.f32 (!%p1994_p5), %v1617_v13, %v1617_v13  ;;  %v1639_v35 = vld [vmem:[#allocation2 + $0x40] sm:$0xff] (!%p1994_p5) }
 0x1a0   : > { %v1643_v45 = vld [vmem:[#allocation2 + $0x60] sm:$0xff] (!%p1994_p5) }
 0x1a1   : > { %v1621_v42 = vsub.f32 %v1619_v15, %v1620_v16  ;;  %v1645_v15 = vld [vmem:[#allocation2 + $0x70] sm:$0xff]  ;;  %v1646_v16 = vld [vmem:[#allocation2 + $0x78] sm:$0xff] }
 0x1a3   : > { %v1622_v17 = vmax.f32 %v1621_v42, 0.0 }
 0x1a5   : > { %v1624_v18 = vadd.f32 1e-05, %v1622_v17 }
 0x1a7   : > { %2423 = vrsqrt.f32 %v1624_v18 }
 0x1b1   : > { %v2424_v24 = vpop.eup %2423 }
 0x1b2   : > { %v1626_v22 = vmul.f32 %v2424_v24, %v1623_v21 }
 0x1b4   : > { %v1628_v31 = vmul.f32 %v1626_v22, %v1617_v13  ;;  %v2935_v32 = vrot.slane %v1626_v22, %v1650_v23 }
 0x1b6   : > { %v1629_v41 = vsub.f32 %v1627_v12, %v1628_v31  ;;  %v1653_v56 = vmul.f32 %v2935_v32, %v1631_v25  ;;  %v1654_v36 = vmul.f32 %v2935_v32, %v1632_v27  ;;  %v1655_v43 = vmul.f32 %v2935_v32, %v1633_v29 }
 0x1b7   : > { %v1656_v38 = vmul.f32 %v2935_v32, %v1634_v30  ;;  %v1657_v47 = vmul.f32 %v2935_v32, %v1635_v14  ;;  %v1658_v48 = vmul.f32 %v2935_v32, %v1636_v33  ;;  %v1659_v26 = vmul.f32 %v2935_v32, %v1637_v34 }
 0x1b8   : > { %v1673_v49 = vrot.slane %v1629_v41, %v1650_v23  ;;  %v1660_v50 = vmul.f32 %v2935_v32, %v1638_v54  ;;  %v1661_v51 = vmul.f32 %v2935_v32, %v1639_v35  ;;  %v1662_v53 = vmul.f32 %v2935_v32, %v1640_v37 }
 0x1b9   : > { %v1663_v28 = vmul.f32 %v2935_v32, %v1641_v39  ;;  %v1664_v57 = vmul.f32 %v2935_v32, %v1642_v44  ;;  %v1665_v58 = vmul.f32 %v2935_v32, %v1643_v45  ;;  %v1666_v59 = vmul.f32 %v2935_v32, %v1644_v46 }
 0x1ba   : > { %v1675_v60 = vadd.f32 %v1673_v49, %v1653_v56  ;;  %v1676_v4 = vadd.f32 %v1673_v49, %v1654_v36  ;;  %v1677_v61 = vadd.f32 %v1673_v49, %v1655_v43  ;;  %v1678_v62 = vadd.f32 %v1673_v49, %v1656_v38 }
 0x1bb   : > { %v1679_v63 = vadd.f32 %v1673_v49, %v1657_v47  ;;  %v1680_v52 = vadd.f32 %v1673_v49, %v1658_v48  ;;  %v1681_v0 = vadd.f32 %v1673_v49, %v1659_v26  ;;  %v1682_v6 = vadd.f32 %v1673_v49, %v1660_v50 }
 0x1bc   : > { %v1691_v1 = vmax.f32 %v1675_v60, 0.0  ;;  %v1692_v2 = vmax.f32 %v1676_v4, 0.0  ;;  %v1693_v3 = vmax.f32 %v1677_v61, 0.0  ;;  %v1694_v55 = vmax.f32 %v1678_v62, 0.0 }
 0x1bd   : > { %v1695_v5 = vmax.f32 %v1679_v63, 0.0  ;;  %v1696_v7 = vmax.f32 %v1680_v52, 0.0  ;;  %v1697_v8 = vmax.f32 %v1681_v0, 0.0  ;;  %v1698_v9 = vmax.f32 %v1682_v6, 0.0 }
 0x1be   : > { %v2034_v10 = vpack.c.bf16 %v1692_v2, %v1691_v1  ;;  %v2039_v40 = vpack.c.bf16 %v1694_v55, %v1693_v3  ;;  %v1683_v11 = vadd.f32 %v1673_v49, %v1661_v51  ;;  %v1684_v13 = vadd.f32 %v1673_v49, %v1662_v53 }
 0x1bf   : > { %v2044_v42 = vpack.c.bf16 %v1696_v7, %v1695_v5  ;;  %v2049_v17 = vpack.c.bf16 %v1698_v9, %v1697_v8  ;;  %v1685_v18 = vadd.f32 %v1673_v49, %v1663_v28  ;;  %v1686_v20 = vadd.f32 %v1673_v49, %v1664_v57 }
 0x1c0   : > { %2035 = vst [vmem:[%s2990_s4] sm:$0xff] %v2034_v10   ;;  %2071 = vst [vmem:[%s2990_s4 + $0x8] sm:$0xff] %v2039_v40   ;;  %v1699_v19 = vmax.f32 %v1683_v11, 0.0  ;;  %v1700_v21 = vmax.f32 %v1684_v13, 0.0  ;;  %v1687_v23 = vadd.f32 %v1673_v49, %v1665_v58  ;;  %v1688_v24 = vadd.f32 %v1673_v49, %v1666_v59 }
 0x1c1   : > { %2072 = vst [vmem:[%s2990_s4 + $0x10] sm:$0xff] %v2044_v42   ;;  %2073 = vst [vmem:[%s2990_s4 + $0x18] sm:$0xff] %v2049_v17   ;;  %v1701_v22 = vmax.f32 %v1685_v18, 0.0  ;;  %v1702_v12 = vmax.f32 %v1686_v20, 0.0  ;;  %v1667_v25 = vmul.f32 %v2935_v32, %v1645_v15  ;;  %v1668_v27 = vmul.f32 %v2935_v32, %v1646_v16 }
 0x1c2   : > { %v2054_v29 = vpack.c.bf16 %v1700_v21, %v1699_v19  ;;  %v1703_v30 = vmax.f32 %v1687_v23, 0.0  ;;  %v1704_v14 = vmax.f32 %v1688_v24, 0.0 }
 0x1c3   : > { %v2059_v31 = vpack.c.bf16 %v1702_v12, %v1701_v22  ;;  %v1689_v33 = vadd.f32 %v1673_v49, %v1667_v25  ;;  %v1690_v34 = vadd.f32 %v1673_v49, %v1668_v27 }
 0x1c4   : > { %2074 = vst [vmem:[%s2990_s4 + $0x20] sm:$0xff] %v2054_v29   ;;  %v2064_v54 = vpack.c.bf16 %v1704_v14, %v1703_v30 }
 0x1c5   : > { %2075 = vst [vmem:[%s2990_s4 + $0x28] sm:$0xff] %v2059_v31   ;;  %v1705_v35 = vmax.f32 %v1689_v33, 0.0  ;;  %v1706_v37 = vmax.f32 %v1690_v34, 0.0 }
 0x1c6   : > { %2076 = vst [vmem:[%s2990_s4 + $0x30] sm:$0xff] %v2064_v54  }
 0x1c7   : > { %v2069_v32 = vpack.c.bf16 %v1706_v37, %v1705_v35 }
 0x1c9   : > { %2077 = vst [vmem:[%s2990_s4 + $0x38] sm:$0xff] %v2069_v32  }
 0x1ca PF: > { %s14_s17 = sadd.s32 1, %s2447_s17   ;;  %s2991_s15 = smov %s2443_s16 }
 0x1cb   : > { %p11_p6 = scmp.ge.s32.totalorder %s14_s17, 4   ;;  %s2992_s16 = smov %s2994_s18 }
 0x1cd   :  { %13 = sbr.rel (!%p11_p6) target bundleno = 2 (0x2), region = 80 }

// kernel: a_call__.6
= control target key start
LH: loop header
LB: loop body
LE: loop exit
PB: predicated region body
PF: predicated region fallthrough
CT: control target
= control target key end

     0   :  { %s3513_s15 = smov 0   ;;  %s3515_s16 = smov 0   ;;  %s4488_s0 = inlined_call_operand.vmem [shape: bf16[32,2048], index: 0, kind: input, shape index: {}]   ;;  %s4489_s1 = inlined_call_operand.vmem [shape: bf16[2048,256], index: 1, kind: input, shape index: {}]   ;;  %s4490_s2 = inlined_call_operand.vmem [shape: f32[1,256], index: 2, kind: input, shape index: {}]   ;;  %s4491_s3 = inlined_call_operand.vmem [shape: f32[1,256], index: 3, kind: input, shape index: {}]   ;;  %s4492_s4 = inlined_call_operand.vmem [shape: bf16[32,256], index: 4, kind: output, shape index: {}]  }
   0x1   :  { %s3517_s17 = smov 0  }
   0x2 LB: > { %s26_s18 = sadd.s32 1, %s3480_s16  ;;  %p2691_p0 = scmp.ge.s32.totalorder %s3484_s17, 1  ;;  %s3484_s17 = sphi %s3517_s17, %s14_s17   ;;  %s3480_s16 = sphi %s3515_s16, %s4496_s16   ;;  %s3476_s15 = sphi %s3513_s15, %s4495_s15  }
   0x3   : > { %p28_p1 = scmp.ge.s32.totalorder %s26_s18, 2  ;;  %p186_p2 = scmp.lt.s32.totalorder %s3484_s17, 3 }
   0x5   : > { %s4498_s18 = smov (%p28_p1, %s26_s18), 0  ;;  %p187_p3 = pnand %p2691_p0, %p186_p2 }
   0x6   : > { %p2692_p4 = scmp.ne.s32.totalorder (!%p187_p3), %s3476_s15, 0 }
   0x7   : > { %190 = sbr.rel (%p187_p3) target bundleno = 564 (0x234), region = 36 }
   0xe   : > { %241 = sbr.rel (%p2692_p4) target bundleno = 522 (0x20a), region = 40  ;;  %v3076_v0 = vld [vmem:[%s4489_s1 + $0x4] ss:$8 sps:$4 sm:$0xff] (!%p2692_p4)   ;;  %v3080_v2 = vld [vmem:[%s4489_s1] ss:$8 sps:$4 sm:$0xff] (!%p2692_p4)  }
   0xf   : > { %v3078_v1 = vld [vmem:[%s4489_s1 + $0x404] ss:$8 sps:$4 sm:$0xff] (!%p2692_p4)   ;;  %1980 = vmatprep.subr.bf16.mxu1 (!%p2692_p4), %v3076_v0  ;;  %v3081_v3 = vld [vmem:[%s4489_s1 + $0x400] ss:$8 sps:$4 sm:$0xff] (!%p2692_p4)   ;;  %v3082_v4 = vld [vmem:[%s4489_s1 + $0x14] ss:$8 sps:$4 sm:$0xff] (!%p2692_p4)  }
  0x10   : > { %2192 = vmatprep.subr.bf16.mxu0 (!%p2692_p4), %v3078_v1  ;;  %1981 = vmatpush1.bf16.msra.mxu1 (!%p2692_p4), %v3080_v2  ;;  %v3084_v5 = vld [vmem:[%s4489_s1 + $0x414] ss:$8 sps:$4 sm:$0xff] (!%p2692_p4)   ;;  %v3086_v6 = vld [vmem:[%s4489_s1 + $0x10] ss:$8 sps:$4 sm:$0xff] (!%p2692_p4)   ;;  %v3088_v8 = vld [vmem:[%s4489_s1 + $0x24] ss:$8 sps:$4 sm:$0xff] (!%p2692_p4)  }
  0x11   : > { %2193 = vmatpush1.bf16.msra.mxu0 (!%p2692_p4), %v3081_v3  ;;  %1982 = vmatprep.subr.bf16.mxu1 (!%p2692_p4), %v3082_v4  ;;  %v3087_v7 = vld [vmem:[%s4489_s1 + $0x410] ss:$8 sps:$4 sm:$0xff] (!%p2692_p4)   ;;  %v3090_v9 = vld [vmem:[%s4489_s1 + $0x424] ss:$8 sps:$4 sm:$0xff] (!%p2692_p4)   ;;  %v3092_v10 = vld [vmem:[%s4489_s1 + $0x20] ss:$8 sps:$4 sm:$0xff] (!%p2692_p4)  }
  0x12   : > { %2194 = vmatprep.subr.bf16.mxu0 (!%p2692_p4), %v3084_v5  ;;  %v3093_v11 = vld [vmem:[%s4489_s1 + $0x420] ss:$8 sps:$4 sm:$0xff] (!%p2692_p4)   ;;  %v3094_v12 = vld [vmem:[%s4489_s1 + $0x34] ss:$8 sps:$4 sm:$0xff] (!%p2692_p4)   ;;  %v3098_v14 = vld [vmem:[%s4489_s1 + $0x30] ss:$8 sps:$4 sm:$0xff] (!%p2692_p4)  }
  0x13   : > { %v3096_v13 = vld [vmem:[%s4489_s1 + $0x434] ss:$8 sps:$4 sm:$0xff] (!%p2692_p4)   ;;  %v3099_v15 = vld [vmem:[%s4489_s1 + $0x430] ss:$8 sps:$4 sm:$0xff] (!%p2692_p4)   ;;  %v3100_v16 = vld [vmem:[%s4489_s1 + $0x44] ss:$8 sps:$4 sm:$0xff] (!%p2692_p4)  }
  0x14   : > { %1983 = vmatpush1.bf16.msra.mxu1 (!%p2692_p4), %v3086_v6  ;;  %v3102_v17 = vld [vmem:[%s4489_s1 + $0x444] ss:$8 sps:$4 sm:$0xff] (!%p2692_p4)   ;;  %v3104_v18 = vld [vmem:[%s4489_s1 + $0x40] ss:$8 sps:$4 sm:$0xff] (!%p2692_p4)   ;;  %v3106_v20 = vld [vmem:[%s4489_s1 + $0x54] ss:$8 sps:$4 sm:$0xff] (!%p2692_p4)  }
  0x15   : > { %2195 = vmatpush1.bf16.msra.mxu0 %v3087_v7  ;;  %1984 = vmatprep.subr.bf16.mxu1 %v3088_v8  ;;  %v3105_v19 = vld [vmem:[%s4489_s1 + $0x440] ss:$8 sps:$4 sm:$0xff]   ;;  %v3108_v21 = vld [vmem:[%s4489_s1 + $0x454] ss:$8 sps:$4 sm:$0xff]   ;;  %v3110_v22 = vld [vmem:[%s4489_s1 + $0x50] ss:$8 sps:$4 sm:$0xff]  }
  0x16   : > { %2196 = vmatprep.subr.bf16.mxu0 %v3090_v9  ;;  %v3111_v23 = vld [vmem:[%s4489_s1 + $0x450] ss:$8 sps:$4 sm:$0xff]   ;;  %v3112_v24 = vld [vmem:[%s4489_s1 + $0x64] ss:$8 sps:$4 sm:$0xff]   ;;  %v3116_v26 = vld [vmem:[%s4489_s1 + $0x60] ss:$8 sps:$4 sm:$0xff]  }
  0x17   : > { %v3114_v25 = vld [vmem:[%s4489_s1 + $0x464] ss:$8 sps:$4 sm:$0xff]   ;;  %v3117_v27 = vld [vmem:[%s4489_s1 + $0x460] ss:$8 sps:$4 sm:$0xff]   ;;  %v3118_v28 = vld [vmem:[%s4489_s1 + $0x74] ss:$8 sps:$4 sm:$0xff]  }
  0x18   : > { %1985 = vmatpush1.bf16.msra.mxu1 %v3092_v10  ;;  %v3120_v29 = vld [vmem:[%s4489_s1 + $0x474] ss:$8 sps:$4 sm:$0xff]   ;;  %v3122_v30 = vld [vmem:[%s4489_s1 + $0x70] ss:$8 sps:$4 sm:$0xff]   ;;  %v3124_v32 = vld [vmem:[%s4489_s1 + $0x84] ss:$8 sps:$4 sm:$0xff]  }
  0x19   : > { %2197 = vmatpush1.bf16.msra.mxu0 %v3093_v11  ;;  %1986 = vmatprep.subr.bf16.mxu1 %v3094_v12  ;;  %v3123_v31 = vld [vmem:[%s4489_s1 + $0x470] ss:$8 sps:$4 sm:$0xff]   ;;  %v3126_v33 = vld [vmem:[%s4489_s1 + $0x484] ss:$8 sps:$4 sm:$0xff]   ;;  %v3128_v34 = vld [vmem:[%s4489_s1 + $0x80] ss:$8 sps:$4 sm:$0xff]  }
  0x1a   : > { %2198 = vmatprep.subr.bf16.mxu0 %v3096_v13  ;;  %v3129_v35 = vld [vmem:[%s4489_s1 + $0x480] ss:$8 sps:$4 sm:$0xff]   ;;  %v3130_v36 = vld [vmem:[%s4489_s1 + $0x94] ss:$8 sps:$4 sm:$0xff]   ;;  %v3134_v38 = vld [vmem:[%s4489_s1 + $0x90] ss:$8 sps:$4 sm:$0xff]  }
  0x1b   : > { %v3132_v37 = vld [vmem:[%s4489_s1 + $0x494] ss:$8 sps:$4 sm:$0xff]   ;;  %v3135_v39 = vld [vmem:[%s4489_s1 + $0x490] ss:$8 sps:$4 sm:$0xff]   ;;  %v3136_v40 = vld [vmem:[%s4489_s1 + $0xa4] ss:$8 sps:$4 sm:$0xff]  }
  0x1c   : > { %1987 = vmatpush1.bf16.msra.mxu1 %v3098_v14  ;;  %v3138_v41 = vld [vmem:[%s4489_s1 + $0x4a4] ss:$8 sps:$4 sm:$0xff]   ;;  %v3140_v42 = vld [vmem:[%s4489_s1 + $0xa0] ss:$8 sps:$4 sm:$0xff]   ;;  %v3142_v44 = vld [vmem:[%s4489_s1 + $0xb4] ss:$8 sps:$4 sm:$0xff]  }
  0x1d   : > { %2199 = vmatpush1.bf16.msra.mxu0 %v3099_v15  ;;  %1988 = vmatprep.subr.bf16.mxu1 %v3100_v16  ;;  %v3141_v43 = vld [vmem:[%s4489_s1 + $0x4a0] ss:$8 sps:$4 sm:$0xff]   ;;  %v3144_v45 = vld [vmem:[%s4489_s1 + $0x4b4] ss:$8 sps:$4 sm:$0xff]   ;;  %v3146_v46 = vld [vmem:[%s4489_s1 + $0xb0] ss:$8 sps:$4 sm:$0xff]  }
  0x1e   : > { %2200 = vmatprep.subr.bf16.mxu0 %v3102_v17  ;;  %v3147_v47 = vld [vmem:[%s4489_s1 + $0x4b0] ss:$8 sps:$4 sm:$0xff]   ;;  %v252_v48 = vld [vmem:[%s4488_s0] sm:$0xff]  ;;  %v3154_v58 = vld [vmem:[%s4489_s1 + $0xd4] ss:$8 sps:$4 sm:$0xff]  }
  0x1f   : > { %v260_v49 = vld [vmem:[%s4488_s0 + $0x40] sm:$0xff]  ;;  %v3156_v59 = vld [vmem:[%s4489_s1 + $0x4d4] ss:$8 sps:$4 sm:$0xff]   ;;  %v3158_v60 = vld [vmem:[%s4489_s1 + $0xd0] ss:$8 sps:$4 sm:$0xff]  }
  0x20   : > { %1989 = vmatpush1.bf16.msra.mxu1 %v3104_v18  ;;  %v3148_v50 = vld [vmem:[%s4489_s1 + $0xc4] ss:$8 sps:$4 sm:$0xff]   ;;  %v2694_v52 = vcombine.high %v252_v48, %v260_v49  ;;  %v3152_v56 = vld [vmem:[%s4489_s1 + $0xc0] ss:$8 sps:$4 sm:$0xff]   ;;  %v3159_v61 = vld [vmem:[%s4489_s1 + $0x4d0] ss:$8 sps:$4 sm:$0xff]   ;;  %v2693_v8 = vcombine.low %v252_v48, %v260_v49 }
  0x21   : > { %2201 = vmatpush1.bf16.msra.mxu0 %v3105_v19  ;;  %1990 = vmatprep.subr.bf16.mxu1 %v3106_v20  ;;  %v3150_v51 = vld [vmem:[%s4489_s1 + $0x4c4] ss:$8 sps:$4 sm:$0xff]   ;;  %v3153_v57 = vld [vmem:[%s4489_s1 + $0x4c0] ss:$8 sps:$4 sm:$0xff]   ;;  %v3166_v2 = vld [vmem:[%s4489_s1 + $0xf4] ss:$8 sps:$4 sm:$0xff]  }
  0x22   : > { %2202 = vmatprep.subr.bf16.mxu0 %v3108_v21  ;;  %v256_v53 = vld [vmem:[%s4488_s0 + $0x20] sm:$0xff]  ;;  %2012 = vmatprep.mubr.bf16.mxu1 %v2694_v52  ;;  %v3168_v3 = vld [vmem:[%s4489_s1 + $0x4f4] ss:$8 sps:$4 sm:$0xff]   ;;  %v3170_v4 = vld [vmem:[%s4489_s1 + $0xf0] ss:$8 sps:$4 sm:$0xff]  }
  0x23   : > { %v264_v54 = vld [vmem:[%s4488_s0 + $0x60] sm:$0xff]  ;;  %v3171_v5 = vld [vmem:[%s4489_s1 + $0x4f0] ss:$8 sps:$4 sm:$0xff]   ;;  %v3180_v12 = vld [vmem:[%s4489_s1 + $0x114] ss:$8 sps:$4 sm:$0xff]  }
  0x24   : > { %1991 = vmatpush1.bf16.msra.mxu1 %v3110_v22  ;;  %v2702_v55 = vcombine.high %v256_v53, %v264_v54  ;;  %v3160_v62 = vld [vmem:[%s4489_s1 + $0xe4] ss:$8 sps:$4 sm:$0xff]   ;;  %v3164_v0 = vld [vmem:[%s4489_s1 + $0xe0] ss:$8 sps:$4 sm:$0xff]   ;;  %v2701_v10 = vcombine.low %v256_v53, %v264_v54  ;;  %v3183_v13 = vld [vmem:[%s4489_s1 + $0x514] ss:$8 sps:$4 sm:$0xff]  }
  0x25   : > { %2203 = vmatpush1.bf16.msra.mxu0 %v3111_v23  ;;  %1992 = vmatprep.subr.bf16.mxu1 %v3112_v24  ;;  %v3162_v63 = vld [vmem:[%s4489_s1 + $0x4e4] ss:$8 sps:$4 sm:$0xff]   ;;  %v3165_v1 = vld [vmem:[%s4489_s1 + $0x4e0] ss:$8 sps:$4 sm:$0xff]   ;;  %v3178_v14 = vld [vmem:[%s4489_s1 + $0x110] ss:$8 sps:$4 sm:$0xff]  }
  0x26   : > { %2204 = vmatprep.subr.bf16.mxu0 %v3114_v25  ;;  %2224 = vmatprep.mubr.bf16.mxu0 %v2702_v55  ;;  %v3174_v6 = vld [vmem:[%s4489_s1 + $0x104] ss:$8 sps:$4 sm:$0xff]   ;;  %v3172_v9 = vld [vmem:[%s4489_s1 + $0x100] ss:$8 sps:$4 sm:$0xff]   ;;  %v3181_v15 = vld [vmem:[%s4489_s1 + $0x510] ss:$8 sps:$4 sm:$0xff]  }
  0x27   : > { %v3177_v7 = vld [vmem:[%s4489_s1 + $0x504] ss:$8 sps:$4 sm:$0xff]   ;;  %v3175_v11 = vld [vmem:[%s4489_s1 + $0x500] ss:$8 sps:$4 sm:$0xff]   ;;  %v3192_v20 = vld [vmem:[%s4489_s1 + $0x134] ss:$8 sps:$4 sm:$0xff]  }
  0x28   : > { %1993 = vmatpush1.bf16.msra.mxu1 %v3116_v26  ;;  %v3186_v16 = vld [vmem:[%s4489_s1 + $0x124] ss:$8 sps:$4 sm:$0xff]   ;;  %v3184_v18 = vld [vmem:[%s4489_s1 + $0x120] ss:$8 sps:$4 sm:$0xff]   ;;  %v3195_v21 = vld [vmem:[%s4489_s1 + $0x534] ss:$8 sps:$4 sm:$0xff]  }
  0x29   : > { %2205 = vmatpush1.bf16.msra.mxu0 %v3117_v27  ;;  %1994 = vmatprep.subr.bf16.mxu1 %v3118_v28  ;;  %v3189_v17 = vld [vmem:[%s4489_s1 + $0x524] ss:$8 sps:$4 sm:$0xff]   ;;  %v3187_v19 = vld [vmem:[%s4489_s1 + $0x520] ss:$8 sps:$4 sm:$0xff]   ;;  %v3190_v22 = vld [vmem:[%s4489_s1 + $0x130] ss:$8 sps:$4 sm:$0xff]  }
  0x2a   : > { %2206 = vmatprep.subr.bf16.mxu0 %v3120_v29  ;;  %v3193_v23 = vld [vmem:[%s4489_s1 + $0x530] ss:$8 sps:$4 sm:$0xff]   ;;  %v3198_v24 = vld [vmem:[%s4489_s1 + $0x144] ss:$8 sps:$4 sm:$0xff]   ;;  %v3196_v26 = vld [vmem:[%s4489_s1 + $0x140] ss:$8 sps:$4 sm:$0xff]  }
  0x2b   : > { %v3201_v25 = vld [vmem:[%s4489_s1 + $0x544] ss:$8 sps:$4 sm:$0xff]   ;;  %v3199_v27 = vld [vmem:[%s4489_s1 + $0x540] ss:$8 sps:$4 sm:$0xff]   ;;  %v3204_v28 = vld [vmem:[%s4489_s1 + $0x154] ss:$8 sps:$4 sm:$0xff]  }
  0x2c   : > { %1995 = vmatpush1.bf16.msra.mxu1 %v3122_v30  ;;  %v3207_v29 = vld [vmem:[%s4489_s1 + $0x554] ss:$8 sps:$4 sm:$0xff]   ;;  %v268_v30 = vld [vmem:[%s4488_s0 + $0x80] sm:$0xff]  ;;  %v3855_v49 = vld [vmem:[%s4488_s0 + $0x28] sm:$0xff] }
  0x2d   : > { %2207 = vmatpush1.bf16.msra.mxu0 %v3123_v31  ;;  %1996 = vmatprep.subr.bf16.mxu1 %v3124_v32  ;;  %v276_v31 = vld [vmem:[%s4488_s0 + $0xc0] sm:$0xff]  ;;  %v3202_v32 = vld [vmem:[%s4489_s1 + $0x150] ss:$8 sps:$4 sm:$0xff]  }
  0x2e   : > { %2208 = vmatprep.subr.bf16.mxu0 %v3126_v33  ;;  %v2710_v33 = vcombine.high %v268_v30, %v276_v31  ;;  %v3217_v52 = vld [vmem:[%s4489_s1 + $0x570] ss:$8 sps:$4 sm:$0xff]   ;;  %v3222_v54 = vld [vmem:[%s4489_s1 + $0x184] ss:$8 sps:$4 sm:$0xff]  }
  0x2f   : > { %v3225_v55 = vld [vmem:[%s4489_s1 + $0x584] ss:$8 sps:$4 sm:$0xff]  }
  0x30   : > { %1997 = vmatpush1.bf16.msra.mxu1 %v3128_v34  ;;  %v3205_v34 = vld [vmem:[%s4489_s1 + $0x550] ss:$8 sps:$4 sm:$0xff]  }
  0x31   : > { %2209 = vmatpush1.bf16.msra.mxu0 %v3129_v35  ;;  %1998 = vmatprep.subr.bf16.mxu1 %v3130_v36  ;;  %v272_v35 = vld [vmem:[%s4488_s0 + $0xa0] sm:$0xff] }
  0x32   : > { %2210 = vmatprep.subr.bf16.mxu0 %v3132_v37  ;;  %v280_v36 = vld [vmem:[%s4488_s0 + $0xe0] sm:$0xff]  ;;  %v2709_v37 = vcombine.low %v268_v30, %v276_v31  ;;  %v3276_v30 = vld [vmem:[%s4489_s1 + $0x214] ss:$8 sps:$4 sm:$0xff]  }
  0x33   : > { %v3279_v31 = vld [vmem:[%s4489_s1 + $0x614] ss:$8 sps:$4 sm:$0xff]  }
  0x34   : > { %1999 = vmatpush1.bf16.msra.mxu1 %v3134_v38  ;;  %v3210_v38 = vld [vmem:[%s4489_s1 + $0x164] ss:$8 sps:$4 sm:$0xff]  }
  0x35   : > { %2211 = vmatpush1.bf16.msra.mxu0 %v3135_v39  ;;  %2000 = vmatprep.subr.bf16.mxu1 %v3136_v40  ;;  %v2718_v39 = vcombine.high %v272_v35, %v280_v36  ;;  %v2717_v40 = vcombine.low %v272_v35, %v280_v36  ;;  %v3274_v36 = vld [vmem:[%s4489_s1 + $0x210] ss:$8 sps:$4 sm:$0xff]  }
  0x36   : > { %2212 = vmatprep.subr.bf16.mxu0 %v3138_v41  ;;  %v3213_v41 = vld [vmem:[%s4489_s1 + $0x564] ss:$8 sps:$4 sm:$0xff]  }
  0x38   : > { %2001 = vmatpush1.bf16.msra.mxu1 %v3140_v42  ;;  %v3208_v42 = vld [vmem:[%s4489_s1 + $0x160] ss:$8 sps:$4 sm:$0xff]  }
  0x39   : > { %2213 = vmatpush1.bf16.msra.mxu0 %v3141_v43  ;;  %2002 = vmatprep.subr.bf16.mxu1 %v3142_v44  ;;  %v3211_v43 = vld [vmem:[%s4489_s1 + $0x560] ss:$8 sps:$4 sm:$0xff]  }
  0x3a   : > { %2214 = vmatprep.subr.bf16.mxu0 %v3144_v45  ;;  %v3837_v44 = vld [vmem:[%s4488_s0 + $0x8] sm:$0xff] }
  0x3b   : > { %v3842_v45 = vld [vmem:[%s4488_s0 + $0x48] sm:$0xff] }
  0x3c   : > { %2003 = vmatpush1.bf16.msra.mxu1 %v3146_v46  ;;  %v3216_v46 = vld [vmem:[%s4489_s1 + $0x174] ss:$8 sps:$4 sm:$0xff]   ;;  %v2696_v48 = vcombine.high %v3837_v44, %v3842_v45 }
  0x3d   : > { %2215 = vmatpush1.bf16.msra.mxu0 %v3147_v47  ;;  %2004 = vmatprep.subr.bf16.mxu1 %v3148_v50  ;;  %v3219_v47 = vld [vmem:[%s4489_s1 + $0x574] ss:$8 sps:$4 sm:$0xff]   ;;  %v3860_v50 = vld [vmem:[%s4488_s0 + $0x68] sm:$0xff] }
  0x3e   : > { %2216 = vmatprep.subr.bf16.mxu0 %v3150_v51  ;;  %v3214_v51 = vld [vmem:[%s4489_s1 + $0x170] ss:$8 sps:$4 sm:$0xff]   ;;  %v2704_v53 = vcombine.high %v3855_v49, %v3860_v50 }
  0x40   : > { %2005 = vmatpush1.bf16.msra.mxu1 %v3152_v56  ;;  %v3220_v56 = vld [vmem:[%s4489_s1 + $0x180] ss:$8 sps:$4 sm:$0xff]  }
  0x41   : > { %2217 = vmatpush1.bf16.msra.mxu0 %v3153_v57  ;;  %2006 = vmatprep.subr.bf16.mxu1 %v3154_v58  ;;  %v3223_v57 = vld [vmem:[%s4489_s1 + $0x580] ss:$8 sps:$4 sm:$0xff]   ;;  %v3228_v58 = vld [vmem:[%s4489_s1 + $0x194] ss:$8 sps:$4 sm:$0xff]  }
  0x42   : > { %2218 = vmatprep.subr.bf16.mxu0 %v3156_v59  ;;  %v3231_v59 = vld [vmem:[%s4489_s1 + $0x594] ss:$8 sps:$4 sm:$0xff]  }
  0x44   : > { %2007 = vmatpush1.bf16.msra.mxu1 %v3158_v60  ;;  %v3226_v60 = vld [vmem:[%s4489_s1 + $0x190] ss:$8 sps:$4 sm:$0xff]  }
  0x45   : > { %2219 = vmatpush1.bf16.msra.mxu0 %v3159_v61  ;;  %2008 = vmatprep.subr.bf16.mxu1 %v3160_v62  ;;  %v3229_v61 = vld [vmem:[%s4489_s1 + $0x590] ss:$8 sps:$4 sm:$0xff]   ;;  %v3234_v62 = vld [vmem:[%s4489_s1 + $0x1a4] ss:$8 sps:$4 sm:$0xff]  }
  0x46   : > { %2220 = vmatprep.subr.bf16.mxu0 %v3162_v63  ;;  %v3237_v63 = vld [vmem:[%s4489_s1 + $0x5a4] ss:$8 sps:$4 sm:$0xff]  }
  0x48   : > { %2009 = vmatpush1.bf16.msra.mxu1 %v3164_v0  ;;  %v3232_v0 = vld [vmem:[%s4489_s1 + $0x1a0] ss:$8 sps:$4 sm:$0xff]  }
  0x49   : > { %2221 = vmatpush1.bf16.msra.mxu0 %v3165_v1  ;;  %2010 = vmatprep.subr.bf16.mxu1 %v3166_v2  ;;  %v3235_v1 = vld [vmem:[%s4489_s1 + $0x5a0] ss:$8 sps:$4 sm:$0xff]   ;;  %v3240_v2 = vld [vmem:[%s4489_s1 + $0x1b4] ss:$8 sps:$4 sm:$0xff]  }
  0x4a   : > { %2222 = vmatprep.subr.bf16.mxu0 %v3168_v3  ;;  %v3243_v3 = vld [vmem:[%s4489_s1 + $0x5b4] ss:$8 sps:$4 sm:$0xff]  }
  0x4c   : > { %2011 = vmatpush1.bf16.msra.mxu1 %v3170_v4  ;;  %v3238_v4 = vld [vmem:[%s4489_s1 + $0x1b0] ss:$8 sps:$4 sm:$0xff]  }
  0x4d   : > { %2223 = vmatpush1.bf16.msra.mxu0 %v3171_v5  ;;  %2033 = vmatprep.subr.bf16.mxu1 %v3174_v6  ;;  %v3241_v5 = vld [vmem:[%s4489_s1 + $0x5b0] ss:$8 sps:$4 sm:$0xff]   ;;  %v3246_v6 = vld [vmem:[%s4489_s1 + $0x1c4] ss:$8 sps:$4 sm:$0xff]  }
  0x4e   : > { %2245 = vmatprep.subr.bf16.mxu0 %v3177_v7  ;;  %v3249_v7 = vld [vmem:[%s4489_s1 + $0x5c4] ss:$8 sps:$4 sm:$0xff]  }
  0x4f   : > { %2013 = vmatmul.mubr.bf16.vlgmr.msra.gmra.mrb[0].mxu1 %v2693_v8  ;;  %v3244_v8 = vld [vmem:[%s4489_s1 + $0x1c0] ss:$8 sps:$4 sm:$0xff]  }
  0x50   : > { %2225 = vmatmul.mubr.bf16.vlgmr.msra.gmra.mrb[0].mxu0 %v2701_v10  ;;  %2034 = vmatpush1.bf16.msra.mxu1 %v3172_v9  ;;  %v3247_v9 = vld [vmem:[%s4489_s1 + $0x5c0] ss:$8 sps:$4 sm:$0xff]   ;;  %v3252_v10 = vld [vmem:[%s4489_s1 + $0x1d4] ss:$8 sps:$4 sm:$0xff]  }
  0x51   : > { %2246 = vmatpush1.bf16.msra.mxu0 %v3175_v11  ;;  %2035 = vmatprep.subr.bf16.mxu1 %v3180_v12  ;;  %v3255_v11 = vld [vmem:[%s4489_s1 + $0x5d4] ss:$8 sps:$4 sm:$0xff]   ;;  %v3250_v12 = vld [vmem:[%s4489_s1 + $0x1d0] ss:$8 sps:$4 sm:$0xff]  }
  0x52   : > { %2247 = vmatprep.subr.bf16.mxu0 %v3183_v13  ;;  %2022 = vmatprep.mubr.bf16.mxu1 %v2710_v33  ;;  %v3253_v13 = vld [vmem:[%s4489_s1 + $0x5d0] ss:$8 sps:$4 sm:$0xff]   ;;  %v281_v33 = vld [vmem:[%s4488_s0 + $0xe8] sm:$0xff] }
  0x53   : > { %2234 = vmatprep.mubr.bf16.mxu0 %v2718_v39  ;;  %v3285_v39 = vld [vmem:[%s4489_s1 + $0x624] ss:$8 sps:$4 sm:$0xff]  }
  0x54   : > { %2036 = vmatpush1.bf16.msra.mxu1 %v3178_v14  ;;  %v3258_v14 = vld [vmem:[%s4489_s1 + $0x1e4] ss:$8 sps:$4 sm:$0xff]  }
  0x55   : > { %2248 = vmatpush1.bf16.msra.mxu0 %v3181_v15  ;;  %2037 = vmatprep.subr.bf16.mxu1 %v3186_v16  ;;  %v3261_v15 = vld [vmem:[%s4489_s1 + $0x5e4] ss:$8 sps:$4 sm:$0xff]   ;;  %v3256_v16 = vld [vmem:[%s4489_s1 + $0x1e0] ss:$8 sps:$4 sm:$0xff]  }
  0x56   : > { %2249 = vmatprep.subr.bf16.mxu0 %v3189_v17  ;;  %v3259_v17 = vld [vmem:[%s4489_s1 + $0x5e0] ss:$8 sps:$4 sm:$0xff]  }
  0x57   : > { %2023 = vmatmul.mubr.bf16.gmra.mrb[4].mxu1 %v2709_v37  ;;  %v3277_v37 = vld [vmem:[%s4489_s1 + $0x610] ss:$8 sps:$4 sm:$0xff]  }
  0x58   : > { %2038 = vmatpush1.bf16.msra.mxu1 %v3184_v18  ;;  %2235 = vmatmul.mubr.bf16.gmra.mrb[4].mxu0 %v2717_v40  ;;  %v3264_v18 = vld [vmem:[%s4489_s1 + $0x1f4] ss:$8 sps:$4 sm:$0xff]   ;;  %v3280_v40 = vld [vmem:[%s4489_s1 + $0x220] ss:$8 sps:$4 sm:$0xff]  }
  0x59   : > { %2250 = vmatpush1.bf16.msra.mxu0 %v3187_v19  ;;  %2039 = vmatprep.subr.bf16.mxu1 %v3192_v20  ;;  %v3267_v19 = vld [vmem:[%s4489_s1 + $0x5f4] ss:$8 sps:$4 sm:$0xff]   ;;  %v3262_v20 = vld [vmem:[%s4489_s1 + $0x1f0] ss:$8 sps:$4 sm:$0xff]  }
  0x5a   : > { %2251 = vmatprep.subr.bf16.mxu0 %v3195_v21  ;;  %2065 = vmatprep.mubr.bf16.mxu1 %v2696_v48  ;;  %v3265_v21 = vld [vmem:[%s4489_s1 + $0x5f0] ss:$8 sps:$4 sm:$0xff]   ;;  %v3288_v48 = vld [vmem:[%s4489_s1 + $0x234] ss:$8 sps:$4 sm:$0xff]  }
  0x5b   : > { %2277 = vmatprep.mubr.bf16.mxu0 %v2704_v53  ;;  %v3289_v53 = vld [vmem:[%s4489_s1 + $0x630] ss:$8 sps:$4 sm:$0xff]  }
  0x5c   : > { %2040 = vmatpush1.bf16.msra.mxu1 %v3190_v22  ;;  %v3270_v22 = vld [vmem:[%s4489_s1 + $0x204] ss:$8 sps:$4 sm:$0xff]  }
  0x5d   : > { %2252 = vmatpush1.bf16.msra.mxu0 %v3193_v23  ;;  %2041 = vmatprep.subr.bf16.mxu1 %v3198_v24  ;;  %v3273_v23 = vld [vmem:[%s4489_s1 + $0x604] ss:$8 sps:$4 sm:$0xff]   ;;  %v3268_v24 = vld [vmem:[%s4489_s1 + $0x200] ss:$8 sps:$4 sm:$0xff]  }
  0x5e   : > { %2253 = vmatprep.subr.bf16.mxu0 %v3201_v25  ;;  %v3271_v25 = vld [vmem:[%s4489_s1 + $0x600] ss:$8 sps:$4 sm:$0xff]  }
  0x60   : > { %2042 = vmatpush1.bf16.msra.mxu1 %v3196_v26  ;;  %v269_v26 = vld [vmem:[%s4488_s0 + $0x88] sm:$0xff] }
  0x61   : > { %2254 = vmatpush1.bf16.msra.mxu0 %v3199_v27  ;;  %2043 = vmatprep.subr.bf16.mxu1 %v3204_v28  ;;  %v2695_v27 = vcombine.low %v3837_v44, %v3842_v45  ;;  %v2703_v28 = vcombine.low %v3855_v49, %v3860_v50  ;;  %v4026_v45 = vld [vmem:[%s4488_s0 + $0x50] sm:$0xff] }
  0x62   : > { %2255 = vmatprep.subr.bf16.mxu0 %v3207_v29  ;;  %v277_v29 = vld [vmem:[%s4488_s0 + $0xc8] sm:$0xff]  ;;  %v3291_v49 = vld [vmem:[%s4489_s1 + $0x634] ss:$8 sps:$4 sm:$0xff]  }
  0x64   : > { %2044 = vmatpush1.bf16.msra.mxu1 %v3202_v32  ;;  %v273_v32 = vld [vmem:[%s4488_s0 + $0xa8] sm:$0xff] }
  0x65   : > { %2256 = vmatpush1.bf16.msra.mxu0 %v3205_v34  ;;  %2045 = vmatprep.subr.bf16.mxu1 %v3210_v38  ;;  %v2712_v34 = vcombine.high %v269_v26, %v277_v29  ;;  %v2720_v35 = vcombine.high %v273_v32, %v281_v33  ;;  %v3282_v38 = vld [vmem:[%s4489_s1 + $0x224] ss:$8 sps:$4 sm:$0xff]   ;;  %v2719_v44 = vcombine.low %v273_v32, %v281_v33  ;;  %v3352_v32 = vld [vmem:[%s4489_s1 + $0x2e0] ss:$8 sps:$4 sm:$0xff]  }
  0x66   : > { %2257 = vmatprep.subr.bf16.mxu0 %v3213_v41  ;;  %v3283_v41 = vld [vmem:[%s4489_s1 + $0x620] ss:$8 sps:$4 sm:$0xff]  }
  0x67   : > { %v3355_v33 = vld [vmem:[%s4489_s1 + $0x6e0] ss:$8 sps:$4 sm:$0xff]  }
  0x68   : > { %2046 = vmatpush1.bf16.msra.mxu1 %v3208_v42  ;;  %v4021_v42 = vld [vmem:[%s4488_s0 + $0x10] sm:$0xff] }
  0x69   : > { %2258 = vmatpush1.bf16.msra.mxu0 %v3211_v43  ;;  %2047 = vmatprep.subr.bf16.mxu1 %v3216_v46  ;;  %v2711_v43 = vcombine.low %v269_v26, %v277_v29  ;;  %v4031_v46 = vld [vmem:[%s4488_s0 + $0x30] sm:$0xff]  ;;  %v2698_v50 = vcombine.high %v4021_v42, %v4026_v45 }
  0x6a   : > { %2259 = vmatprep.subr.bf16.mxu0 %v3219_v47  ;;  %v4036_v47 = vld [vmem:[%s4488_s0 + $0x70] sm:$0xff] }
  0x6b   : > { %v3348_v26 = vld [vmem:[%s4489_s1 + $0x2d4] ss:$8 sps:$4 sm:$0xff]   ;;  %v3349_v29 = vld [vmem:[%s4489_s1 + $0x6d0] ss:$8 sps:$4 sm:$0xff]  }
  0x6c   : > { %2048 = vmatpush1.bf16.msra.mxu1 %v3214_v51  ;;  %v2706_v51 = vcombine.high %v4031_v46, %v4036_v47 }
  0x6d   : > { %2260 = vmatpush1.bf16.msra.mxu0 %v3217_v52  ;;  %2049 = vmatprep.subr.bf16.mxu1 %v3222_v54  ;;  %v3286_v52 = vld [vmem:[%s4489_s1 + $0x230] ss:$8 sps:$4 sm:$0xff]   ;;  %v3294_v54 = vld [vmem:[%s4489_s1 + $0x244] ss:$8 sps:$4 sm:$0xff]  }
  0x6e   : > { %2261 = vmatprep.subr.bf16.mxu0 %v3225_v55  ;;  %v3297_v55 = vld [vmem:[%s4489_s1 + $0x644] ss:$8 sps:$4 sm:$0xff]  }
  0x70   : > { %2050 = vmatpush1.bf16.msra.mxu1 %v3220_v56  ;;  %v3292_v56 = vld [vmem:[%s4489_s1 + $0x240] ss:$8 sps:$4 sm:$0xff]  }
  0x71   : > { %2262 = vmatpush1.bf16.msra.mxu0 %v3223_v57  ;;  %2051 = vmatprep.subr.bf16.mxu1 %v3228_v58  ;;  %v3295_v57 = vld [vmem:[%s4489_s1 + $0x640] ss:$8 sps:$4 sm:$0xff]   ;;  %v3300_v58 = vld [vmem:[%s4489_s1 + $0x254] ss:$8 sps:$4 sm:$0xff]  }
  0x72   : > { %2263 = vmatprep.subr.bf16.mxu0 %v3231_v59  ;;  %v3303_v59 = vld [vmem:[%s4489_s1 + $0x654] ss:$8 sps:$4 sm:$0xff]  }
  0x74   : > { %2052 = vmatpush1.bf16.msra.mxu1 %v3226_v60  ;;  %v3298_v60 = vld [vmem:[%s4489_s1 + $0x250] ss:$8 sps:$4 sm:$0xff]  }
  0x75   : > { %2264 = vmatpush1.bf16.msra.mxu0 %v3229_v61  ;;  %2053 = vmatprep.subr.bf16.mxu1 %v3234_v62  ;;  %v3301_v61 = vld [vmem:[%s4489_s1 + $0x650] ss:$8 sps:$4 sm:$0xff]   ;;  %v3306_v62 = vld [vmem:[%s4489_s1 + $0x264] ss:$8 sps:$4 sm:$0xff]  }
  0x76   : > { %2265 = vmatprep.subr.bf16.mxu0 %v3237_v63  ;;  %v3309_v63 = vld [vmem:[%s4489_s1 + $0x664] ss:$8 sps:$4 sm:$0xff]  }
  0x78   : > { %2054 = vmatpush1.bf16.msra.mxu1 %v3232_v0  ;;  %v3304_v0 = vld [vmem:[%s4489_s1 + $0x260] ss:$8 sps:$4 sm:$0xff]  }
  0x79   : > { %2266 = vmatpush1.bf16.msra.mxu0 %v3235_v1  ;;  %2055 = vmatprep.subr.bf16.mxu1 %v3240_v2  ;;  %v3307_v1 = vld [vmem:[%s4489_s1 + $0x660] ss:$8 sps:$4 sm:$0xff]   ;;  %v3312_v2 = vld [vmem:[%s4489_s1 + $0x274] ss:$8 sps:$4 sm:$0xff]  }
  0x7a   : > { %2267 = vmatprep.subr.bf16.mxu0 %v3243_v3  ;;  %v3315_v3 = vld [vmem:[%s4489_s1 + $0x674] ss:$8 sps:$4 sm:$0xff]  }
  0x7c   : > { %2056 = vmatpush1.bf16.msra.mxu1 %v3238_v4  ;;  %v3310_v4 = vld [vmem:[%s4489_s1 + $0x270] ss:$8 sps:$4 sm:$0xff]  }
  0x7d   : > { %2268 = vmatpush1.bf16.msra.mxu0 %v3241_v5  ;;  %2057 = vmatprep.subr.bf16.mxu1 %v3246_v6  ;;  %v3313_v5 = vld [vmem:[%s4489_s1 + $0x670] ss:$8 sps:$4 sm:$0xff]   ;;  %v3318_v6 = vld [vmem:[%s4489_s1 + $0x284] ss:$8 sps:$4 sm:$0xff]  }
  0x7e   : > { %2269 = vmatprep.subr.bf16.mxu0 %v3249_v7  ;;  %v3321_v7 = vld [vmem:[%s4489_s1 + $0x684] ss:$8 sps:$4 sm:$0xff]  }
  0x80   : > { %2058 = vmatpush1.bf16.msra.mxu1 %v3244_v8  ;;  %v3316_v8 = vld [vmem:[%s4489_s1 + $0x280] ss:$8 sps:$4 sm:$0xff]  }
  0x81   : > { %2270 = vmatpush1.bf16.msra.mxu0 %v3247_v9  ;;  %2059 = vmatprep.subr.bf16.mxu1 %v3252_v10  ;;  %v3319_v9 = vld [vmem:[%s4489_s1 + $0x680] ss:$8 sps:$4 sm:$0xff]   ;;  %v3324_v10 = vld [vmem:[%s4489_s1 + $0x294] ss:$8 sps:$4 sm:$0xff]  }
  0x82   : > { %2271 = vmatprep.subr.bf16.mxu0 %v3255_v11  ;;  %v3327_v11 = vld [vmem:[%s4489_s1 + $0x694] ss:$8 sps:$4 sm:$0xff]  }
  0x84   : > { %2060 = vmatpush1.bf16.msra.mxu1 %v3250_v12  ;;  %v3322_v12 = vld [vmem:[%s4489_s1 + $0x290] ss:$8 sps:$4 sm:$0xff]  }
  0x85   : > { %2272 = vmatpush1.bf16.msra.mxu0 %v3253_v13  ;;  %2061 = vmatprep.subr.bf16.mxu1 %v3258_v14  ;;  %v3325_v13 = vld [vmem:[%s4489_s1 + $0x690] ss:$8 sps:$4 sm:$0xff]   ;;  %v3330_v14 = vld [vmem:[%s4489_s1 + $0x2a4] ss:$8 sps:$4 sm:$0xff]  }
  0x86   : > { %2273 = vmatprep.subr.bf16.mxu0 %v3261_v15  ;;  %v3333_v15 = vld [vmem:[%s4489_s1 + $0x6a4] ss:$8 sps:$4 sm:$0xff]  }
  0x88   : > { %2062 = vmatpush1.bf16.msra.mxu1 %v3256_v16  ;;  %v3328_v16 = vld [vmem:[%s4489_s1 + $0x2a0] ss:$8 sps:$4 sm:$0xff]  }
  0x89   : > { %2274 = vmatpush1.bf16.msra.mxu0 %v3259_v17  ;;  %2063 = vmatprep.subr.bf16.mxu1 %v3264_v18  ;;  %v3331_v17 = vld [vmem:[%s4489_s1 + $0x6a0] ss:$8 sps:$4 sm:$0xff]   ;;  %v3336_v18 = vld [vmem:[%s4489_s1 + $0x2b4] ss:$8 sps:$4 sm:$0xff]  }
  0x8a   : > { %2275 = vmatprep.subr.bf16.mxu0 %v3267_v19  ;;  %v3339_v19 = vld [vmem:[%s4489_s1 + $0x6b4] ss:$8 sps:$4 sm:$0xff]  }
  0x8c   : > { %2064 = vmatpush1.bf16.msra.mxu1 %v3262_v20  ;;  %v3334_v20 = vld [vmem:[%s4489_s1 + $0x2b0] ss:$8 sps:$4 sm:$0xff]  }
  0x8d   : > { %2276 = vmatpush1.bf16.msra.mxu0 %v3265_v21  ;;  %2086 = vmatprep.subr.bf16.mxu1 %v3270_v22  ;;  %v3337_v21 = vld [vmem:[%s4489_s1 + $0x6b0] ss:$8 sps:$4 sm:$0xff]   ;;  %v3342_v22 = vld [vmem:[%s4489_s1 + $0x2c4] ss:$8 sps:$4 sm:$0xff]  }
  0x8e   : > { %2298 = vmatprep.subr.bf16.mxu0 %v3273_v23  ;;  %v3345_v23 = vld [vmem:[%s4489_s1 + $0x6c4] ss:$8 sps:$4 sm:$0xff]  }
  0x8f   : > { %2066 = vmatmul.mubr.bf16.vlgmr.msra.gmra.mrb[0].mxu1 %v2695_v27  ;;  %v3351_v27 = vld [vmem:[%s4489_s1 + $0x6d4] ss:$8 sps:$4 sm:$0xff]  }
  0x90   : > { %2278 = vmatmul.mubr.bf16.vlgmr.msra.gmra.mrb[0].mxu0 %v2703_v28  ;;  %2087 = vmatpush1.bf16.msra.mxu1 %v3268_v24  ;;  %v3340_v24 = vld [vmem:[%s4489_s1 + $0x2c0] ss:$8 sps:$4 sm:$0xff]   ;;  %v3346_v28 = vld [vmem:[%s4489_s1 + $0x2d0] ss:$8 sps:$4 sm:$0xff]  }
  0x91   : > { %2299 = vmatpush1.bf16.msra.mxu0 %v3271_v25  ;;  %2088 = vmatprep.subr.bf16.mxu1 %v3276_v30  ;;  %v3343_v25 = vld [vmem:[%s4489_s1 + $0x6c0] ss:$8 sps:$4 sm:$0xff]   ;;  %v3354_v30 = vld [vmem:[%s4489_s1 + $0x2e4] ss:$8 sps:$4 sm:$0xff]  }
  0x92   : > { %2300 = vmatprep.subr.bf16.mxu0 %v3279_v31  ;;  %2075 = vmatprep.mubr.bf16.mxu1 %v2712_v34  ;;  %v3357_v31 = vld [vmem:[%s4489_s1 + $0x6e4] ss:$8 sps:$4 sm:$0xff]   ;;  %v3360_v34 = vld [vmem:[%s4489_s1 + $0x2f4] ss:$8 sps:$4 sm:$0xff]  }
  0x93   : > { %2287 = vmatprep.mubr.bf16.mxu0 %v2720_v35  ;;  %v3363_v35 = vld [vmem:[%s4489_s1 + $0x6f4] ss:$8 sps:$4 sm:$0xff]  }
  0x94   : > { %2089 = vmatpush1.bf16.msra.mxu1 %v3274_v36  ;;  %v3358_v36 = vld [vmem:[%s4489_s1 + $0x2f0] ss:$8 sps:$4 sm:$0xff]  }
  0x95   : > { %2301 = vmatpush1.bf16.msra.mxu0 %v3277_v37  ;;  %2090 = vmatprep.subr.bf16.mxu1 %v3282_v38  ;;  %v3361_v37 = vld [vmem:[%s4489_s1 + $0x6f0] ss:$8 sps:$4 sm:$0xff]   ;;  %v3366_v38 = vld [vmem:[%s4489_s1 + $0x304] ss:$8 sps:$4 sm:$0xff]  }
  0x96   : > { %2302 = vmatprep.subr.bf16.mxu0 %v3285_v39  ;;  %v3369_v39 = vld [vmem:[%s4489_s1 + $0x704] ss:$8 sps:$4 sm:$0xff]  }
  0x97   : > { %2076 = vmatmul.mubr.bf16.gmra.mrb[4].mxu1 %v2711_v43  ;;  %v2705_v43 = vcombine.low %v4031_v46, %v4036_v47  ;;  %v3372_v46 = vld [vmem:[%s4489_s1 + $0x314] ss:$8 sps:$4 sm:$0xff]  }
  0x98   : > { %2288 = vmatmul.mubr.bf16.gmra.mrb[4].mxu0 %v2719_v44  ;;  %2091 = vmatpush1.bf16.msra.mxu1 %v3280_v40  ;;  %v270_v40 = vld [vmem:[%s4488_s0 + $0x90] sm:$0xff] }
  0x99   : > { %2303 = vmatpush1.bf16.msra.mxu0 %v3283_v41  ;;  %2092 = vmatprep.subr.bf16.mxu1 %v3288_v48  ;;  %v2697_v41 = vcombine.low %v4021_v42, %v4026_v45  ;;  %v278_v44 = vld [vmem:[%s4488_s0 + $0xd0] sm:$0xff]  ;;  %v3364_v42 = vld [vmem:[%s4489_s1 + $0x300] ss:$8 sps:$4 sm:$0xff]  }
  0x9a   : > { %2304 = vmatprep.subr.bf16.mxu0 %v3291_v49  ;;  %2118 = vmatprep.mubr.bf16.mxu1 %v2698_v50  ;;  %v274_v48 = vld [vmem:[%s4488_s0 + $0xb0] sm:$0xff]  ;;  %v3367_v45 = vld [vmem:[%s4489_s1 + $0x700] ss:$8 sps:$4 sm:$0xff]   ;;  %v2714_v50 = vcombine.high %v270_v40, %v278_v44 }
  0x9b   : > { %2330 = vmatprep.mubr.bf16.mxu0 %v2706_v51  ;;  %v282_v49 = vld [vmem:[%s4488_s0 + $0xf0] sm:$0xff] }
  0x9c   : > { %2093 = vmatpush1.bf16.msra.mxu1 %v3286_v52  ;;  %v3375_v47 = vld [vmem:[%s4489_s1 + $0x714] ss:$8 sps:$4 sm:$0xff]   ;;  %v2722_v51 = vcombine.high %v274_v48, %v282_v49  ;;  %v3370_v52 = vld [vmem:[%s4489_s1 + $0x310] ss:$8 sps:$4 sm:$0xff]  }
  0x9d   : > { %2305 = vmatpush1.bf16.msra.mxu0 %v3289_v53  ;;  %2094 = vmatprep.subr.bf16.mxu1 %v3294_v54  ;;  %v3373_v53 = vld [vmem:[%s4489_s1 + $0x710] ss:$8 sps:$4 sm:$0xff]   ;;  %v3378_v54 = vld [vmem:[%s4489_s1 + $0x324] ss:$8 sps:$4 sm:$0xff]  }
  0x9e   : > { %2306 = vmatprep.subr.bf16.mxu0 %v3297_v55  ;;  %v3381_v55 = vld [vmem:[%s4489_s1 + $0x724] ss:$8 sps:$4 sm:$0xff]  }
  0xa0   : > { %2095 = vmatpush1.bf16.msra.mxu1 %v3292_v56  ;;  %v4247_v56 = vld [vmem:[%s4488_s0 + $0x18] sm:$0xff] }
  0xa1   : > { %2307 = vmatpush1.bf16.msra.mxu0 %v3295_v57  ;;  %2096 = vmatprep.subr.bf16.mxu1 %v3300_v58  ;;  %v2713_v57 = vcombine.low %v270_v40, %v278_v44  ;;  %v2721_v58 = vcombine.low %v274_v48, %v282_v49  ;;  %v3436_v40 = vld [vmem:[%s4489_s1 + $0x3c0] ss:$8 sps:$4 sm:$0xff]   ;;  %v3447_v44 = vld [vmem:[%s4489_s1 + $0x7d4] ss:$8 sps:$4 sm:$0xff]   ;;  %v3442_v48 = vld [vmem:[%s4489_s1 + $0x3d0] ss:$8 sps:$4 sm:$0xff]  }
  0xa2   : > { %2308 = vmatprep.subr.bf16.mxu0 %v3303_v59  ;;  %v4252_v59 = vld [vmem:[%s4488_s0 + $0x58] sm:$0xff] }
  0xa3   : > { %v3445_v49 = vld [vmem:[%s4489_s1 + $0x7d0] ss:$8 sps:$4 sm:$0xff]  }
  0xa4   : > { %2097 = vmatpush1.bf16.msra.mxu1 %v3298_v60  ;;  %v4257_v60 = vld [vmem:[%s4488_s0 + $0x38] sm:$0xff] }
  0xa5   : > { %2309 = vmatpush1.bf16.msra.mxu0 %v3301_v61  ;;  %2098 = vmatprep.subr.bf16.mxu1 %v3306_v62  ;;  %v4262_v61 = vld [vmem:[%s4488_s0 + $0x78] sm:$0xff]  ;;  %v3376_v62 = vld [vmem:[%s4489_s1 + $0x320] ss:$8 sps:$4 sm:$0xff]  }
  0xa6   : > { %2310 = vmatprep.subr.bf16.mxu0 %v3309_v63  ;;  %v3379_v63 = vld [vmem:[%s4489_s1 + $0x720] ss:$8 sps:$4 sm:$0xff]  }
  0xa8   : > { %2099 = vmatpush1.bf16.msra.mxu1 %v3304_v0  ;;  %v3384_v0 = vld [vmem:[%s4489_s1 + $0x334] ss:$8 sps:$4 sm:$0xff]  }
  0xa9   : > { %2311 = vmatpush1.bf16.msra.mxu0 %v3307_v1  ;;  %2100 = vmatprep.subr.bf16.mxu1 %v3312_v2  ;;  %v3387_v1 = vld [vmem:[%s4489_s1 + $0x734] ss:$8 sps:$4 sm:$0xff]   ;;  %v2700_v2 = vcombine.high %v4247_v56, %v4252_v59 }
  0xaa   : > { %2312 = vmatprep.subr.bf16.mxu0 %v3315_v3  ;;  %v2708_v3 = vcombine.high %v4257_v60, %v4262_v61 }
  0xac   : > { %2101 = vmatpush1.bf16.msra.mxu1 %v3310_v4  ;;  %v3382_v4 = vld [vmem:[%s4489_s1 + $0x330] ss:$8 sps:$4 sm:$0xff]  }
  0xad   : > { %2313 = vmatpush1.bf16.msra.mxu0 %v3313_v5  ;;  %2102 = vmatprep.subr.bf16.mxu1 %v3318_v6  ;;  %v3385_v5 = vld [vmem:[%s4489_s1 + $0x730] ss:$8 sps:$4 sm:$0xff]   ;;  %v3390_v6 = vld [vmem:[%s4489_s1 + $0x344] ss:$8 sps:$4 sm:$0xff]  }
  0xae   : > { %2314 = vmatprep.subr.bf16.mxu0 %v3321_v7  ;;  %v3393_v7 = vld [vmem:[%s4489_s1 + $0x744] ss:$8 sps:$4 sm:$0xff]  }
  0xb0   : > { %2103 = vmatpush1.bf16.msra.mxu1 %v3316_v8  ;;  %v3388_v8 = vld [vmem:[%s4489_s1 + $0x340] ss:$8 sps:$4 sm:$0xff]  }
  0xb1   : > { %2315 = vmatpush1.bf16.msra.mxu0 %v3319_v9  ;;  %2104 = vmatprep.subr.bf16.mxu1 %v3324_v10  ;;  %v3391_v9 = vld [vmem:[%s4489_s1 + $0x740] ss:$8 sps:$4 sm:$0xff]   ;;  %v3396_v10 = vld [vmem:[%s4489_s1 + $0x354] ss:$8 sps:$4 sm:$0xff]  }
  0xb2   : > { %2316 = vmatprep.subr.bf16.mxu0 %v3327_v11  ;;  %v3399_v11 = vld [vmem:[%s4489_s1 + $0x754] ss:$8 sps:$4 sm:$0xff]  }
  0xb4   : > { %2105 = vmatpush1.bf16.msra.mxu1 %v3322_v12  ;;  %v3394_v12 = vld [vmem:[%s4489_s1 + $0x350] ss:$8 sps:$4 sm:$0xff]  }
  0xb5   : > { %2317 = vmatpush1.bf16.msra.mxu0 %v3325_v13  ;;  %2106 = vmatprep.subr.bf16.mxu1 %v3330_v14  ;;  %v3397_v13 = vld [vmem:[%s4489_s1 + $0x750] ss:$8 sps:$4 sm:$0xff]   ;;  %v3402_v14 = vld [vmem:[%s4489_s1 + $0x364] ss:$8 sps:$4 sm:$0xff]  }
  0xb6   : > { %2318 = vmatprep.subr.bf16.mxu0 %v3333_v15  ;;  %v3405_v15 = vld [vmem:[%s4489_s1 + $0x764] ss:$8 sps:$4 sm:$0xff]  }
  0xb8   : > { %2107 = vmatpush1.bf16.msra.mxu1 %v3328_v16  ;;  %v3400_v16 = vld [vmem:[%s4489_s1 + $0x360] ss:$8 sps:$4 sm:$0xff]  }
  0xb9   : > { %2319 = vmatpush1.bf16.msra.mxu0 %v3331_v17  ;;  %2108 = vmatprep.subr.bf16.mxu1 %v3336_v18  ;;  %v3403_v17 = vld [vmem:[%s4489_s1 + $0x760] ss:$8 sps:$4 sm:$0xff]   ;;  %v3408_v18 = vld [vmem:[%s4489_s1 + $0x374] ss:$8 sps:$4 sm:$0xff]  }
  0xba   : > { %2320 = vmatprep.subr.bf16.mxu0 %v3339_v19  ;;  %v3411_v19 = vld [vmem:[%s4489_s1 + $0x774] ss:$8 sps:$4 sm:$0xff]  }
  0xbc   : > { %2109 = vmatpush1.bf16.msra.mxu1 %v3334_v20  ;;  %v3406_v20 = vld [vmem:[%s4489_s1 + $0x370] ss:$8 sps:$4 sm:$0xff]  }
  0xbd   : > { %2321 = vmatpush1.bf16.msra.mxu0 %v3337_v21  ;;  %2110 = vmatprep.subr.bf16.mxu1 %v3342_v22  ;;  %v3409_v21 = vld [vmem:[%s4489_s1 + $0x770] ss:$8 sps:$4 sm:$0xff]   ;;  %v3414_v22 = vld [vmem:[%s4489_s1 + $0x384] ss:$8 sps:$4 sm:$0xff]  }
  0xbe   : > { %2322 = vmatprep.subr.bf16.mxu0 %v3345_v23  ;;  %v3417_v23 = vld [vmem:[%s4489_s1 + $0x784] ss:$8 sps:$4 sm:$0xff]  }
  0xc0   : > { %2111 = vmatpush1.bf16.msra.mxu1 %v3340_v24  ;;  %v3412_v24 = vld [vmem:[%s4489_s1 + $0x380] ss:$8 sps:$4 sm:$0xff]  }
  0xc1   : > { %2323 = vmatpush1.bf16.msra.mxu0 %v3343_v25  ;;  %2112 = vmatprep.subr.bf16.mxu1 %v3348_v26  ;;  %v3415_v25 = vld [vmem:[%s4489_s1 + $0x780] ss:$8 sps:$4 sm:$0xff]   ;;  %v3420_v26 = vld [vmem:[%s4489_s1 + $0x394] ss:$8 sps:$4 sm:$0xff]  }
  0xc2   : > { %2324 = vmatprep.subr.bf16.mxu0 %v3351_v27  ;;  %v3423_v27 = vld [vmem:[%s4489_s1 + $0x794] ss:$8 sps:$4 sm:$0xff]  }
  0xc4   : > { %2113 = vmatpush1.bf16.msra.mxu1 %v3346_v28  ;;  %v3418_v28 = vld [vmem:[%s4489_s1 + $0x390] ss:$8 sps:$4 sm:$0xff]  }
  0xc5   : > { %2325 = vmatpush1.bf16.msra.mxu0 %v3349_v29  ;;  %2114 = vmatprep.subr.bf16.mxu1 %v3354_v30  ;;  %v3421_v29 = vld [vmem:[%s4489_s1 + $0x790] ss:$8 sps:$4 sm:$0xff]   ;;  %v3426_v30 = vld [vmem:[%s4489_s1 + $0x3a4] ss:$8 sps:$4 sm:$0xff]  }
  0xc6   : > { %2326 = vmatprep.subr.bf16.mxu0 %v3357_v31  ;;  %v3429_v31 = vld [vmem:[%s4489_s1 + $0x7a4] ss:$8 sps:$4 sm:$0xff]  }
  0xc8   : > { %2115 = vmatpush1.bf16.msra.mxu1 %v3352_v32  ;;  %v3424_v32 = vld [vmem:[%s4489_s1 + $0x3a0] ss:$8 sps:$4 sm:$0xff]  }
  0xc9   : > { %2327 = vmatpush1.bf16.msra.mxu0 %v3355_v33  ;;  %2116 = vmatprep.subr.bf16.mxu1 %v3360_v34  ;;  %v3427_v33 = vld [vmem:[%s4489_s1 + $0x7a0] ss:$8 sps:$4 sm:$0xff]   ;;  %v3432_v34 = vld [vmem:[%s4489_s1 + $0x3b4] ss:$8 sps:$4 sm:$0xff]  }
  0xca   : > { %2328 = vmatprep.subr.bf16.mxu0 %v3363_v35  ;;  %v3435_v35 = vld [vmem:[%s4489_s1 + $0x7b4] ss:$8 sps:$4 sm:$0xff]  }
  0xcc   : > { %2117 = vmatpush1.bf16.msra.mxu1 %v3358_v36  ;;  %v3430_v36 = vld [vmem:[%s4489_s1 + $0x3b0] ss:$8 sps:$4 sm:$0xff]  }
  0xcd   : > { %2329 = vmatpush1.bf16.msra.mxu0 %v3361_v37  ;;  %2139 = vmatprep.subr.bf16.mxu1 %v3366_v38  ;;  %v3433_v37 = vld [vmem:[%s4489_s1 + $0x7b0] ss:$8 sps:$4 sm:$0xff]   ;;  %v3438_v38 = vld [vmem:[%s4489_s1 + $0x3c4] ss:$8 sps:$4 sm:$0xff]  }
  0xce   : > { %2351 = vmatprep.subr.bf16.mxu0 %v3369_v39  ;;  %v3441_v39 = vld [vmem:[%s4489_s1 + $0x7c4] ss:$8 sps:$4 sm:$0xff]  }
  0xcf   : > { %2119 = vmatmul.mubr.bf16.vlgmr.msra.gmra.mrb[0].mxu1 %v2697_v41  ;;  %v3439_v41 = vld [vmem:[%s4489_s1 + $0x7c0] ss:$8 sps:$4 sm:$0xff]  }
  0xd0   : > { %2331 = vmatmul.mubr.bf16.vlgmr.msra.gmra.mrb[0].mxu0 %v2705_v43  ;;  %2140 = vmatpush1.bf16.msra.mxu1 %v3364_v42  ;;  %v3444_v43 = vld [vmem:[%s4489_s1 + $0x3d4] ss:$8 sps:$4 sm:$0xff]   ;;  %v3450_v42 = vld [vmem:[%s4489_s1 + $0x3e4] ss:$8 sps:$4 sm:$0xff]  }
  0xd1   : > { %2352 = vmatpush1.bf16.msra.mxu0 %v3367_v45  ;;  %2141 = vmatprep.subr.bf16.mxu1 %v3372_v46  ;;  %v3453_v45 = vld [vmem:[%s4489_s1 + $0x7e4] ss:$8 sps:$4 sm:$0xff]   ;;  %v3448_v46 = vld [vmem:[%s4489_s1 + $0x3e0] ss:$8 sps:$4 sm:$0xff]  }
  0xd2   : > { %2353 = vmatprep.subr.bf16.mxu0 %v3375_v47  ;;  %2128 = vmatprep.mubr.bf16.mxu1 %v2714_v50  ;;  %v3451_v47 = vld [vmem:[%s4489_s1 + $0x7e0] ss:$8 sps:$4 sm:$0xff]   ;;  %v3456_v50 = vld [vmem:[%s4489_s1 + $0x3f4] ss:$8 sps:$4 sm:$0xff]  }
  0xd3   : > { %2340 = vmatprep.mubr.bf16.mxu0 %v2722_v51  ;;  %v3459_v51 = vld [vmem:[%s4489_s1 + $0x7f4] ss:$8 sps:$4 sm:$0xff]  }
  0xd4   : > { %2142 = vmatpush1.bf16.msra.mxu1 %v3370_v52  ;;  %v3454_v52 = vld [vmem:[%s4489_s1 + $0x3f0] ss:$8 sps:$4 sm:$0xff]  }
  0xd5   : > { %2354 = vmatpush1.bf16.msra.mxu0 %v3373_v53  ;;  %2143 = vmatprep.subr.bf16.mxu1 %v3378_v54  ;;  %v3457_v53 = vld [vmem:[%s4489_s1 + $0x7f0] ss:$8 sps:$4 sm:$0xff]  }
  0xd6   : > { %2355 = vmatprep.subr.bf16.mxu0 %v3381_v55  ;;  %v271_v54 = vld [vmem:[%s4488_s0 + $0x98] sm:$0xff] }
  0xd7   : > { %2129 = vmatmul.mubr.bf16.gmra.mrb[4].mxu1 %v2713_v57  ;;  %v279_v55 = vld [vmem:[%s4488_s0 + $0xd8] sm:$0xff] }
  0xd8   : > { %2341 = vmatmul.mubr.bf16.gmra.mrb[4].mxu0 %v2721_v58  ;;  %2144 = vmatpush1.bf16.msra.mxu1 %v3376_v62  ;;  %v275_v57 = vld [vmem:[%s4488_s0 + $0xb8] sm:$0xff]  ;;  %v2699_v62 = vcombine.low %v4247_v56, %v4252_v59  ;;  %v3486_v56 = vmov 0.0  }
  0xd9   : > { %2356 = vmatpush1.bf16.msra.mxu0 %v3379_v63  ;;  %2145 = vmatprep.subr.bf16.mxu1 %v3384_v0  ;;  %v283_v58 = vld [vmem:[%s4488_s0 + $0xf8] sm:$0xff]  ;;  %v2707_v63 = vcombine.low %v4257_v60, %v4262_v61  ;;  %v2716_v0 = vcombine.high %v271_v54, %v279_v55 }
  0xda   : > { %2357 = vmatprep.subr.bf16.mxu0 %v3387_v1  ;;  %2171 = vmatprep.mubr.bf16.mxu1 %v2700_v2  ;;  %v2724_v1 = vcombine.high %v275_v57, %v283_v58  ;;  %v2715_v2 = vcombine.low %v271_v54, %v279_v55 }
  0xdb   : > { %2383 = vmatprep.mubr.bf16.mxu0 %v2708_v3  ;;  %v2723_v3 = vcombine.low %v275_v57, %v283_v58 }
  0xdc   : > { %2146 = vmatpush1.bf16.msra.mxu1 %v3382_v4  ;;  %v246_v4 = vlaneseq }
  0xdd   : > { %2358 = vmatpush1.bf16.msra.mxu0 %v3385_v5  ;;  %2147 = vmatprep.subr.bf16.mxu1 %v3390_v6 }
  0xde   : > { %2359 = vmatprep.subr.bf16.mxu0 %v3393_v7  ;;  %vm4447_vm0 = vcmp.lt.s32.totalorder %v246_v4, 256 }
  0xdf   : > { %250 = vst.msk [vmem:[#allocation3] sm:$0x3] %vm4447_vm0, %v3486_v56  ;;  %251 = vst.msk [vmem:[#allocation4] sm:$0x3] %vm4447_vm0, %v3486_v56 }
  0xe0   : > { %2148 = vmatpush1.bf16.msra.mxu1 %v3388_v8 }
  0xe1   : > { %2360 = vmatpush1.bf16.msra.mxu0 %v3391_v9  ;;  %2149 = vmatprep.subr.bf16.mxu1 %v3396_v10 }
  0xe2   : > { %2361 = vmatprep.subr.bf16.mxu0 %v3399_v11 }
  0xe4   : > { %2150 = vmatpush1.bf16.msra.mxu1 %v3394_v12 }
  0xe5   : > { %2362 = vmatpush1.bf16.msra.mxu0 %v3397_v13  ;;  %2151 = vmatprep.subr.bf16.mxu1 %v3402_v14 }
  0xe6   : > { %2363 = vmatprep.subr.bf16.mxu0 %v3405_v15 }
  0xe8   : > { %2152 = vmatpush1.bf16.msra.mxu1 %v3400_v16 }
  0xe9   : > { %2364 = vmatpush1.bf16.msra.mxu0 %v3403_v17  ;;  %2153 = vmatprep.subr.bf16.mxu1 %v3408_v18 }
  0xea   : > { %2365 = vmatprep.subr.bf16.mxu0 %v3411_v19 }
  0xec   : > { %2154 = vmatpush1.bf16.msra.mxu1 %v3406_v20 }
  0xed   : > { %2366 = vmatpush1.bf16.msra.mxu0 %v3409_v21  ;;  %2155 = vmatprep.subr.bf16.mxu1 %v3414_v22 }
  0xee   : > { %2367 = vmatprep.subr.bf16.mxu0 %v3417_v23 }
  0xf0   : > { %2156 = vmatpush1.bf16.msra.mxu1 %v3412_v24 }
  0xf1   : > { %2368 = vmatpush1.bf16.msra.mxu0 %v3415_v25  ;;  %2157 = vmatprep.subr.bf16.mxu1 %v3420_v26 }
  0xf2   : > { %2369 = vmatprep.subr.bf16.mxu0 %v3423_v27 }
  0xf4   : > { %2158 = vmatpush1.bf16.msra.mxu1 %v3418_v28 }
  0xf5   : > { %2370 = vmatpush1.bf16.msra.mxu0 %v3421_v29  ;;  %2159 = vmatprep.subr.bf16.mxu1 %v3426_v30 }
  0xf6   : > { %2371 = vmatprep.subr.bf16.mxu0 %v3429_v31 }
  0xf8   : > { %2160 = vmatpush1.bf16.msra.mxu1 %v3424_v32 }
  0xf9   : > { %2372 = vmatpush1.bf16.msra.mxu0 %v3427_v33  ;;  %2161 = vmatprep.subr.bf16.mxu1 %v3432_v34 }
  0xfa   : > { %2373 = vmatprep.subr.bf16.mxu0 %v3435_v35 }
  0xfc   : > { %2162 = vmatpush1.bf16.msra.mxu1 %v3430_v36 }
  0xfd   : > { %2374 = vmatpush1.bf16.msra.mxu0 %v3433_v37  ;;  %2163 = vmatprep.subr.bf16.mxu1 %v3438_v38 }
  0xfe   : > { %2375 = vmatprep.subr.bf16.mxu0 %v3441_v39 }
 0x100   : > { %2164 = vmatpush1.bf16.msra.mxu1 %v3436_v40 }
 0x101   : > { %2376 = vmatpush1.bf16.msra.mxu0 %v3439_v41  ;;  %2165 = vmatprep.subr.bf16.mxu1 %v3444_v43 }
 0x102   : > { %2377 = vmatprep.subr.bf16.mxu0 %v3447_v44 }
 0x104   : > { %2166 = vmatpush1.bf16.msra.mxu1 %v3442_v48 }
 0x105   : > { %2378 = vmatpush1.bf16.msra.mxu0 %v3445_v49  ;;  %2167 = vmatprep.subr.bf16.mxu1 %v3450_v42 }
 0x106   : > { %2379 = vmatprep.subr.bf16.mxu0 %v3453_v45 }
 0x108   : > { %2168 = vmatpush1.bf16.msra.mxu1 %v3448_v46 }
 0x109   : > { %2380 = vmatpush1.bf16.msra.mxu0 %v3451_v47  ;;  %2169 = vmatprep.subr.bf16.mxu1 %v3456_v50 }
 0x10a   : > { %2381 = vmatprep.subr.bf16.mxu0 %v3459_v51 }
 0x10c   : > { %2170 = vmatpush1.bf16.msra.mxu1 %v3454_v52  ;;  %v3487_v52 = vmov 1966171168  }
 0x10d   : > { %2382 = vmatpush1.bf16.msra.mxu0 %v3457_v53  ;;  %v2440_v53 = vunpack.c.l.s4 %v3487_v52 }
 0x10f   : > { %2172 = vmatmul.mubr.bf16.vlgmr.msra.gmra.mrb[0].mxu1 %v2699_v62 }
 0x110   : > { %2384 = vmatmul.mubr.bf16.vlgmr.msra.gmra.mrb[0].mxu0 %v2707_v63  ;;  %2181 = vmatprep.mubr.bf16.mxu1 %v2716_v0 }
 0x111   : > { %2393 = vmatprep.mubr.bf16.mxu0 %v2724_v1 }
 0x117   : > { %2182 = vmatmul.mubr.bf16.gmra.mrb[4].mxu1 %v2715_v2  ;;  %v2441_v2 = vunpack.c.0.s8 %v2440_v53 }
 0x118   : > { %2394 = vmatmul.mubr.bf16.gmra.mrb[4].mxu0 %v2723_v3  ;;  %v2443_v3 = vshrl.u32 %v246_v4, 7 }
 0x1e2   : > { %v2173_v59 = vpop.f32.mrb[0].mxu1 }
 0x1e3   : > { %v2385_v60 = vpop.f32.mrb[0].mxu0  ;;  %v2175_v6 = vpop.f32.mrb[1].mxu1 }
 0x1e4   : > { %v2994_v61 = vadd.f32 %v2385_v60, %v2173_v59  ;;  %v2387_v7 = vpop.f32.mrb[1].mxu0  ;;  %v2177_v9 = vpop.f32.mrb[2].mxu1 }
 0x1e5   : > { %v2995_v8 = vadd.f32 %v2387_v7, %v2175_v6  ;;  %v2389_v10 = vpop.f32.mrb[2].mxu0  ;;  %v2179_v12 = vpop.f32.mrb[3].mxu1 }
 0x1e6   : > { %2409 = vst [vmem:[#allocation2] sm:$0xff] %v2994_v61  ;;  %v2996_v11 = vadd.f32 %v2389_v10, %v2177_v9  ;;  %v2391_v13 = vpop.f32.mrb[3].mxu0  ;;  %v2461_v15 = vmul.f32 %v2994_v61, %v2994_v61  ;;  %v2444_v10 = vsub.s32 %v2441_v2, %v2443_v3 }
 0x1e7   : > { %2410 = vst [vmem:[#allocation2 + $0x8] sm:$0xff] %v2995_v8  ;;  %v2997_v14 = vadd.f32 %v2391_v13, %v2179_v12  ;;  %v2462_v18 = vmul.f32 %v2995_v8, %v2995_v8 }
 0x1e8   : > { %2411 = vst [vmem:[#allocation2 + $0x10] sm:$0xff] %v2996_v11  ;;  %v2418_v16 = vadd.f32 %v2996_v11, %v2994_v61  ;;  %v2463_v17 = vmul.f32 %v2996_v11, %v2996_v11 }
 0x1e9   : > { %2412 = vst [vmem:[#allocation2 + $0x18] sm:$0xff] %v2997_v14  ;;  %v2427_v19 = vadd.f32 %v2997_v14, %v2995_v8  ;;  %v2464_v20 = vmul.f32 %v2997_v14, %v2997_v14 }
 0x1ea   : > { %v2469_v21 = vadd.f32 %v2463_v17, %v2461_v15  ;;  %v2183_v23 = vpop.f32.mrb[4].mxu1  ;;  %v2417_v17 = vld [vmem:[#allocation3] sm:$0x3] }
 0x1eb   : > { %v2478_v22 = vadd.f32 %v2464_v20, %v2462_v18  ;;  %v2395_v24 = vpop.f32.mrb[4].mxu0  ;;  %v2185_v26 = vpop.f32.mrb[5].mxu1  ;;  %v2460_v20 = vld [vmem:[#allocation4] sm:$0x3] }
 0x1ec   : > { %v2998_v25 = vadd.f32 %v2395_v24, %v2183_v23  ;;  %v2397_v27 = vpop.f32.mrb[5].mxu0  ;;  %v2187_v29 = vpop.f32.mrb[6].mxu1 }
 0x1ed   : > { %v2999_v28 = vadd.f32 %v2397_v27, %v2185_v26  ;;  %v2399_v30 = vpop.f32.mrb[6].mxu0  ;;  %v2189_v34 = vpop.f32.mrb[7].mxu1 }
 0x1ee   : > { %2413 = vst [vmem:[#allocation2 + $0x20] sm:$0xff] %v2998_v25  ;;  %v2419_v31 = vadd.f32 %v2998_v25, %v2418_v16  ;;  %v2465_v32 = vmul.f32 %v2998_v25, %v2998_v25  ;;  %v3000_v33 = vadd.f32 %v2399_v30, %v2187_v29  ;;  %v2401_v35 = vpop.f32.mrb[7].mxu0 }
 0x1ef   : > { %2414 = vst [vmem:[#allocation2 + $0x28] sm:$0xff] %v2999_v28  ;;  %v2428_v36 = vadd.f32 %v2999_v28, %v2427_v19  ;;  %v2466_v37 = vmul.f32 %v2999_v28, %v2999_v28  ;;  %v3001_v38 = vadd.f32 %v2401_v35, %v2189_v34 }
 0x1f0   : > { %v2470_v39 = vadd.f32 %v2469_v21, %v2465_v32  ;;  %2415 = vst [vmem:[#allocation2 + $0x30] sm:$0xff] %v3000_v33  ;;  %v2420_v40 = vadd.f32 %v3000_v33, %v2419_v31  ;;  %v2467_v41 = vmul.f32 %v3000_v33, %v3000_v33 }
 0x1f1   : > { %v2479_v43 = vadd.f32 %v2478_v22, %v2466_v37  ;;  %2416 = vst [vmem:[#allocation2 + $0x38] sm:$0xff] %v3001_v38  ;;  %v2429_v44 = vadd.f32 %v3001_v38, %v2428_v36  ;;  %v2468_v48 = vmul.f32 %v3001_v38, %v3001_v38 }
 0x1f2   : > { %v2421_v49 = vrot.slane %v2420_v40, 4  ;;  %v2471_v42 = vadd.f32 %v2470_v39, %v2467_v41 }
 0x1f3   : > { %v2430_v45 = vrot.slane %v2429_v44, 4  ;;  %v2480_v46 = vadd.f32 %v2479_v43, %v2468_v48 }
 0x1f4   : > { %v2422_v47 = vadd.f32 %v2421_v49, %v2420_v40  ;;  %v2472_v50 = vrot.slane %v2471_v42, 4 }
 0x1f5   : > { %v2431_v51 = vadd.f32 %v2430_v45, %v2429_v44  ;;  %v2481_v54 = vrot.slane %v2480_v46, 4 }
 0x1f6   : > { %v2423_v55 = vrot.slane %v2422_v47, 2  ;;  %v2473_v57 = vadd.f32 %v2472_v50, %v2471_v42 }
 0x1f7   : > { %v2432_v58 = vrot.slane %v2431_v51, 2  ;;  %v2482_v62 = vadd.f32 %v2481_v54, %v2480_v46 }
 0x1f8   : > { %v2424_v63 = vadd.f32 %v2423_v55, %v2422_v47  ;;  %v2474_v0 = vrot.slane %v2473_v57, 2 }
 0x1f9   : > { %v2433_v1 = vadd.f32 %v2432_v58, %v2431_v51  ;;  %v2483_v56 = vrot.slane %v2482_v62, 2 }
 0x1fa   : > { %v2425_v59 = vrot.slane %v2424_v63, 1  ;;  %v2475_v60 = vadd.f32 %v2474_v0, %v2473_v57 }
 0x1fb   : > { %v2434_v61 = vrot.slane %v2433_v1, 1  ;;  %v2484_v6 = vadd.f32 %v2483_v56, %v2482_v62 }
 0x1fc   : > { %v2426_v7 = vadd.f32 %v2425_v59, %v2424_v63  ;;  %v2476_v8 = vrot.slane %v2475_v60, 1 }
 0x1fd   : > { %v2435_v9 = vadd.f32 %v2434_v61, %v2433_v1  ;;  %v2485_v11 = vrot.slane %v2484_v6, 1 }
 0x1fe   : > { %v2477_v12 = vadd.f32 %v2476_v8, %v2475_v60 }
 0x1ff   : > { %v2438_v13 = vcombine.low %v2426_v7, %v2435_v9  ;;  %v2486_v14 = vadd.f32 %v2485_v11, %v2484_v6 }
 0x201   : > { %v2445_v15 = vrot.slane %v2438_v13, %v2444_v10  ;;  %v2489_v16 = vcombine.low %v2477_v12, %v2486_v14 }
 0x203   : > { %v2452_v18 = vrot.slane %v2445_v15, %v2444_v10  ;;  %v2496_v19 = vrot.slane %v2489_v16, %v2444_v10 }
 0x205   : > { %v2454_v4 = vadd.f32 %v2452_v18, %v2417_v17  ;;  %v2503_v21 = vrot.slane %v2496_v19, %v2444_v10 }
 0x207   : > { %2459 = vst.msk [vmem:[#allocation3] sm:$0x3] %vm4447_vm0, %v2454_v4  ;;  %v2505_v22 = vadd.f32 %v2503_v21, %v2460_v20 }
 0x209   : > { %2506 = vst.msk [vmem:[#allocation4] sm:$0x3] %vm4447_vm0, %v2505_v22 }
 0x20a PF: > { %p2981_p5 = scmp.ne.s32.totalorder %s3476_s15, 1 }
 0x20b   : > { %v2539_v31 = vlaneseq (!%p2981_p5)  ;;  %v2518_v5 = vld [vmem:[%s4490_s2] sm:$0x3] (!%p2981_p5)  ;;  %v2531_v39 = vld [vmem:[#allocation2 + $0x8] sm:$0xff] (!%p2981_p5)  ;;  %v2532_v40 = vld [vmem:[#allocation2 + $0x10] sm:$0xff] (!%p2981_p5) }
 0x20c   : > { %2510 = sbr.rel (%p2981_p5) target bundleno = 564 (0x234), region = 48  ;;  %v2522_v37 = vld [vmem:[%s4491_s3] sm:$0x3] (!%p2981_p5)  ;;  %v2533_v41 = vld [vmem:[#allocation2 + $0x18] sm:$0xff] (!%p2981_p5)  ;;  %v2535_v42 = vld [vmem:[#allocation2 + $0x28] sm:$0xff] (!%p2981_p5) }
 0x20d   : > { %v2540_v32 = vshrl.u32 (!%p2981_p5), %v2539_v31, 7  ;;  %v2530_v38 = vld [vmem:[#allocation2] sm:$0xff] (!%p2981_p5)  ;;  %v2536_v45 = vld [vmem:[#allocation2 + $0x30] sm:$0xff] (!%p2981_p5)  ;;  %v2537_v46 = vld [vmem:[#allocation2 + $0x38] sm:$0xff] (!%p2981_p5) }
 0x20e   : > { %v2511_v23 = vld [vmem:[#allocation3] sm:$0x3] (!%p2981_p5) }
 0x20f   : > { %v2512_v25 = vmul.f32 (!%p2981_p5), 0.03125, %v2511_v23  ;;  %v2541_v33 = vsub.s32 (!%p2981_p5), 0, %v2540_v32  ;;  %v2545_v34 = vsub.s32 (!%p2981_p5), 1, %v2540_v32  ;;  %v2534_v49 = vld [vmem:[#allocation2 + $0x20] sm:$0xff] (!%p2981_p5) }
 0x210   : > { %v2513_v24 = vld [vmem:[#allocation4] sm:$0x3] (!%p2981_p5) }
 0x211   : > { %v2514_v26 = vmul.f32 (!%p2981_p5), 0.03125, %v2513_v24  ;;  %v2515_v27 = vmul.f32 (!%p2981_p5), %v2512_v25, %v2512_v25 }
 0x213   : > { %v2516_v28 = vsub.f32 %v2514_v26, %v2515_v27 }
 0x215   : > { %v2517_v29 = vmax.f32 %v2516_v28, 0.0 }
 0x217   : > { %v2519_v30 = vadd.f32 1e-05, %v2517_v29 }
 0x219   : > { %3460 = vrsqrt.f32 %v2519_v30 }
 0x223   : > { %v3461_v35 = vpop.eup %3460 }
 0x224   : > { %v2521_v36 = vmul.f32 %v3461_v35, %v2518_v5 }
 0x226   : > { %v2523_v43 = vmul.f32 %v2521_v36, %v2512_v25  ;;  %v2542_v44 = vrot.slane %v2521_v36, %v2541_v33  ;;  %v2546_v48 = vrot.slane %v2521_v36, %v2545_v34 }
 0x228   : > { %v2524_v47 = vsub.f32 %v2522_v37, %v2523_v43  ;;  %v2549_v50 = vmul.f32 %v2542_v44, %v2530_v38  ;;  %v2550_v51 = vmul.f32 %v2546_v48, %v2531_v39  ;;  %v2551_v52 = vmul.f32 %v2542_v44, %v2532_v40 }
 0x229   : > { %v2552_v53 = vmul.f32 %v2546_v48, %v2533_v41  ;;  %v2553_v54 = vmul.f32 %v2542_v44, %v2534_v49  ;;  %v2554_v55 = vmul.f32 %v2546_v48, %v2535_v42  ;;  %v2555_v57 = vmul.f32 %v2542_v44, %v2536_v45 }
 0x22a   : > { %v2561_v58 = vrot.slane %v2524_v47, %v2541_v33  ;;  %v2565_v62 = vrot.slane %v2524_v47, %v2545_v34  ;;  %v2556_v63 = vmul.f32 %v2546_v48, %v2537_v46 }
 0x22c   : > { %v2568_v0 = vadd.f32 %v2561_v58, %v2549_v50  ;;  %v2569_v1 = vadd.f32 %v2565_v62, %v2550_v51  ;;  %v2570_v2 = vadd.f32 %v2561_v58, %v2551_v52  ;;  %v2571_v3 = vadd.f32 %v2565_v62, %v2552_v53 }
 0x22d   : > { %v2572_v56 = vadd.f32 %v2561_v58, %v2553_v54  ;;  %v2573_v59 = vadd.f32 %v2565_v62, %v2554_v55  ;;  %v2574_v60 = vadd.f32 %v2561_v58, %v2555_v57  ;;  %v2575_v61 = vadd.f32 %v2565_v62, %v2556_v63 }
 0x22e   : > { %v2576_v6 = vmax.f32 %v2568_v0, 0.0  ;;  %v2577_v7 = vmax.f32 %v2569_v1, 0.0  ;;  %v2578_v8 = vmax.f32 %v2570_v2, 0.0  ;;  %v2579_v9 = vmax.f32 %v2571_v3, 0.0 }
 0x22f   : > { %v2580_v10 = vmax.f32 %v2572_v56, 0.0  ;;  %v2581_v11 = vmax.f32 %v2573_v59, 0.0  ;;  %v2582_v12 = vmax.f32 %v2574_v60, 0.0  ;;  %v2583_v13 = vmax.f32 %v2575_v61, 0.0 }
 0x230   : > { %v2990_v14 = vpack.c.bf16 %v2577_v7, %v2576_v6  ;;  %v2991_v15 = vpack.c.bf16 %v2579_v9, %v2578_v8 }
 0x231   : > { %v2992_v16 = vpack.c.bf16 %v2581_v11, %v2580_v10  ;;  %v2993_v17 = vpack.c.bf16 %v2583_v13, %v2582_v12 }
 0x232   : > { %2608 = vst [vmem:[%s4492_s4] sm:$0xff] %v2990_v14  ;;  %2609 = vst [vmem:[%s4492_s4 + $0x8] sm:$0xff] %v2991_v15 }
 0x233   : > { %2610 = vst [vmem:[%s4492_s4 + $0x10] sm:$0xff] %v2992_v16  ;;  %2611 = vst [vmem:[%s4492_s4 + $0x18] sm:$0xff] %v2993_v17 }
 0x234 PF: > { %s14_s17 = sadd.s32 1, %s3484_s17   ;;  %s4495_s15 = smov %s3480_s16 }
 0x235   : > { %p11_p6 = scmp.ge.s32.totalorder %s14_s17, 4   ;;  %s4496_s16 = smov %s4498_s18 }
 0x237   :  { %13 = sbr.rel (!%p11_p6) target bundleno = 2 (0x2), region = 80 }

// kernel: a_call__.7
= control target key start
LH: loop header
LB: loop body
LE: loop exit
PB: predicated region body
PF: predicated region fallthrough
CT: control target
= control target key end

     0   :  { %s4695_s1 = inlined_call_operand.vmem [shape: bf16[4096,128], index: 1, kind: input, shape index: {}]   ;;  %s4696_s0 = inlined_call_operand.vmem [shape: bf16[16,4096], index: 0, kind: input, shape index: {}]   ;;  %s4697_s2 = inlined_call_operand.vmem [shape: f32[16,128], index: 2, kind: output, shape index: {}]  }
   0x1   :  { %v3554_v0 = vld [vmem:[%s4695_s1 + $0x40] sm:$0xff]   ;;  %v3558_v4 = vld [vmem:[%s4695_s1 + $0x48] sm:$0xff]   ;;  %v3562_v8 = vld [vmem:[%s4695_s1 + $0x50] sm:$0xff]  }
   0x2   :  { %v3555_v1 = vld [vmem:[%s4695_s1 + $0xc0] sm:$0xff]   ;;  %3202 = vmatprep.subr.bf16.mxu0 %v3554_v0  ;;  %v3559_v5 = vld [vmem:[%s4695_s1 + $0xc8] sm:$0xff]   ;;  %v3563_v9 = vld [vmem:[%s4695_s1 + $0xd0] sm:$0xff]  }
   0x3   :  { %v3556_v2 = vld [vmem:[%s4695_s1] sm:$0xff]   ;;  %3224 = vmatprep.subr.bf16.mxu1 %v3555_v1  ;;  %v3560_v6 = vld [vmem:[%s4695_s1 + $0x8] sm:$0xff]   ;;  %v3564_v10 = vld [vmem:[%s4695_s1 + $0x10] sm:$0xff]  }
   0x4   :  { %v3557_v3 = vld [vmem:[%s4695_s1 + $0x80] sm:$0xff]   ;;  %3203 = vmatpush3.bf16.msra.mxu0 %v3556_v2  ;;  %v3561_v7 = vld [vmem:[%s4695_s1 + $0x88] sm:$0xff]   ;;  %v3565_v11 = vld [vmem:[%s4695_s1 + $0x90] sm:$0xff]  }
   0x5   :  { %3225 = vmatpush3.bf16.msra.mxu1 %v3557_v3  ;;  %3204 = vmatprep.subr.bf16.mxu0 %v3558_v4  ;;  %v3566_v12 = vld [vmem:[%s4695_s1 + $0x58] sm:$0xff]   ;;  %v3570_v16 = vld [vmem:[%s4695_s1 + $0x60] sm:$0xff]   ;;  %v3574_v20 = vld [vmem:[%s4695_s1 + $0x68] sm:$0xff]  }
   0x6   :  { %3226 = vmatprep.subr.bf16.mxu1 %v3559_v5  ;;  %v3567_v13 = vld [vmem:[%s4695_s1 + $0xd8] sm:$0xff]   ;;  %v3571_v17 = vld [vmem:[%s4695_s1 + $0xe0] sm:$0xff]   ;;  %v3575_v21 = vld [vmem:[%s4695_s1 + $0xe8] sm:$0xff]  }
   0x7   :  { %v3568_v14 = vld [vmem:[%s4695_s1 + $0x18] sm:$0xff]   ;;  %v3572_v18 = vld [vmem:[%s4695_s1 + $0x20] sm:$0xff]   ;;  %v3576_v22 = vld [vmem:[%s4695_s1 + $0x28] sm:$0xff]  }
   0x8   :  { %3205 = vmatpush3.bf16.msra.mxu0 %v3560_v6  ;;  %v3569_v15 = vld [vmem:[%s4695_s1 + $0x98] sm:$0xff]   ;;  %v3573_v19 = vld [vmem:[%s4695_s1 + $0xa0] sm:$0xff]   ;;  %v3577_v23 = vld [vmem:[%s4695_s1 + $0xa8] sm:$0xff]  }
   0x9   :  { %3227 = vmatpush3.bf16.msra.mxu1 %v3561_v7  ;;  %3206 = vmatprep.subr.bf16.mxu0 %v3562_v8  ;;  %v3578_v24 = vld [vmem:[%s4695_s1 + $0x70] sm:$0xff]   ;;  %v3582_v28 = vld [vmem:[%s4695_s1 + $0x78] sm:$0xff]   ;;  %v12_v32 = vld [vmem:[%s4696_s0] sm:$0xff] }
   0xa   :  { %3228 = vmatprep.subr.bf16.mxu1 %v3563_v9  ;;  %v3579_v25 = vld [vmem:[%s4695_s1 + $0xf0] sm:$0xff]   ;;  %v3583_v29 = vld [vmem:[%s4695_s1 + $0xf8] sm:$0xff]   ;;  %v28_v33 = vld [vmem:[%s4696_s0 + $0x80] sm:$0xff] }
   0xb   :  { %v3580_v26 = vld [vmem:[%s4695_s1 + $0x30] sm:$0xff]   ;;  %v3584_v30 = vld [vmem:[%s4695_s1 + $0x38] sm:$0xff]   ;;  %v13_v34 = vld [vmem:[%s4696_s0 + $0x8] sm:$0xff]  ;;  %v2914_v35 = vcombine.low %v12_v32, %v28_v33  ;;  %v2915_v36 = vcombine.high %v12_v32, %v28_v33 }
   0xc   :  { %3207 = vmatpush3.bf16.msra.mxu0 %v3564_v10  ;;  %v3581_v27 = vld [vmem:[%s4695_s1 + $0xb0] sm:$0xff]   ;;  %v3585_v31 = vld [vmem:[%s4695_s1 + $0xb8] sm:$0xff]   ;;  %v29_v37 = vld [vmem:[%s4696_s0 + $0x88] sm:$0xff] }
   0xd   :  { %3229 = vmatpush3.bf16.msra.mxu1 %v3565_v11  ;;  %3208 = vmatprep.subr.bf16.mxu0 %v3566_v12  ;;  %v2916_v38 = vcombine.low %v13_v34, %v29_v37  ;;  %v2917_v39 = vcombine.high %v13_v34, %v29_v37  ;;  %v3586_v40 = vld [vmem:[%s4695_s1 + $0x140] sm:$0xff]   ;;  %v3590_v44 = vld [vmem:[%s4695_s1 + $0x148] sm:$0xff]   ;;  %v3594_v48 = vld [vmem:[%s4695_s1 + $0x150] sm:$0xff]  }
   0xe   :  { %3230 = vmatprep.subr.bf16.mxu1 %v3567_v13  ;;  %2284 = vmatprep.mubr.bf16.mxu0 %v2915_v36  ;;  %v3587_v41 = vld [vmem:[%s4695_s1 + $0x1c0] sm:$0xff]   ;;  %v3591_v45 = vld [vmem:[%s4695_s1 + $0x1c8] sm:$0xff]   ;;  %v3595_v49 = vld [vmem:[%s4695_s1 + $0x1d0] sm:$0xff]  }
   0xf   :  { %2325 = vmatprep.mubr.bf16.mxu1 %v2917_v39  ;;  %v3588_v42 = vld [vmem:[%s4695_s1 + $0x100] sm:$0xff]   ;;  %v3592_v46 = vld [vmem:[%s4695_s1 + $0x108] sm:$0xff]   ;;  %v3596_v50 = vld [vmem:[%s4695_s1 + $0x110] sm:$0xff]  }
  0x10   :  { %3209 = vmatpush3.bf16.msra.mxu0 %v3568_v14  ;;  %v3589_v43 = vld [vmem:[%s4695_s1 + $0x180] sm:$0xff]   ;;  %v3593_v47 = vld [vmem:[%s4695_s1 + $0x188] sm:$0xff]   ;;  %v3597_v51 = vld [vmem:[%s4695_s1 + $0x190] sm:$0xff]  }
  0x11   :  { %3231 = vmatpush3.bf16.msra.mxu1 %v3569_v15  ;;  %3210 = vmatprep.subr.bf16.mxu0 %v3570_v16  ;;  %v3598_v52 = vld [vmem:[%s4695_s1 + $0x158] sm:$0xff]   ;;  %v3602_v56 = vld [vmem:[%s4695_s1 + $0x160] sm:$0xff]   ;;  %v3606_v60 = vld [vmem:[%s4695_s1 + $0x168] sm:$0xff]  }
  0x12   :  { %3232 = vmatprep.subr.bf16.mxu1 %v3571_v17  ;;  %v3599_v53 = vld [vmem:[%s4695_s1 + $0x1d8] sm:$0xff]   ;;  %v3603_v57 = vld [vmem:[%s4695_s1 + $0x1e0] sm:$0xff]   ;;  %v3607_v61 = vld [vmem:[%s4695_s1 + $0x1e8] sm:$0xff]  }
  0x13   :  { %v3600_v54 = vld [vmem:[%s4695_s1 + $0x118] sm:$0xff]   ;;  %v3604_v58 = vld [vmem:[%s4695_s1 + $0x120] sm:$0xff]   ;;  %v3608_v62 = vld [vmem:[%s4695_s1 + $0x128] sm:$0xff]  }
  0x14   :  { %3211 = vmatpush3.bf16.msra.mxu0 %v3572_v18  ;;  %v3601_v55 = vld [vmem:[%s4695_s1 + $0x198] sm:$0xff]   ;;  %v3605_v59 = vld [vmem:[%s4695_s1 + $0x1a0] sm:$0xff]   ;;  %v3609_v63 = vld [vmem:[%s4695_s1 + $0x1a8] sm:$0xff]  }
  0x15   :  { %3233 = vmatpush3.bf16.msra.mxu1 %v3573_v19  ;;  %3212 = vmatprep.subr.bf16.mxu0 %v3574_v20  ;;  %v3610_v0 = vld [vmem:[%s4695_s1 + $0x170] sm:$0xff]   ;;  %v3614_v4 = vld [vmem:[%s4695_s1 + $0x178] sm:$0xff]   ;;  %v3618_v16 = vld [vmem:[%s4695_s1 + $0x240] sm:$0xff]  }
  0x16   :  { %3234 = vmatprep.subr.bf16.mxu1 %v3575_v21  ;;  %v3611_v1 = vld [vmem:[%s4695_s1 + $0x1f0] sm:$0xff]   ;;  %v3615_v5 = vld [vmem:[%s4695_s1 + $0x1f8] sm:$0xff]   ;;  %v3619_v17 = vld [vmem:[%s4695_s1 + $0x2c0] sm:$0xff]  }
  0x17   :  { %v3612_v2 = vld [vmem:[%s4695_s1 + $0x130] sm:$0xff]   ;;  %v3616_v6 = vld [vmem:[%s4695_s1 + $0x138] sm:$0xff]   ;;  %v3620_v18 = vld [vmem:[%s4695_s1 + $0x200] sm:$0xff]  }
  0x18   :  { %3213 = vmatpush3.bf16.msra.mxu0 %v3576_v22  ;;  %v3613_v3 = vld [vmem:[%s4695_s1 + $0x1b0] sm:$0xff]   ;;  %v3617_v7 = vld [vmem:[%s4695_s1 + $0x1b8] sm:$0xff]   ;;  %v3621_v19 = vld [vmem:[%s4695_s1 + $0x280] sm:$0xff]  }
  0x19   :  { %3235 = vmatpush3.bf16.msra.mxu1 %v3577_v23  ;;  %3214 = vmatprep.subr.bf16.mxu0 %v3578_v24  ;;  %v14_v8 = vld [vmem:[%s4696_s0 + $0x10] sm:$0xff]  ;;  %v15_v12 = vld [vmem:[%s4696_s0 + $0x18] sm:$0xff]  ;;  %v3622_v20 = vld [vmem:[%s4695_s1 + $0x248] sm:$0xff]  }
  0x1a   :  { %3236 = vmatprep.subr.bf16.mxu1 %v3579_v25  ;;  %v30_v9 = vld [vmem:[%s4696_s0 + $0x90] sm:$0xff]  ;;  %v31_v13 = vld [vmem:[%s4696_s0 + $0x98] sm:$0xff]  ;;  %v3623_v21 = vld [vmem:[%s4695_s1 + $0x2c8] sm:$0xff]  }
  0x1b   :  { %v2918_v10 = vcombine.low %v14_v8, %v30_v9  ;;  %v2919_v11 = vcombine.high %v14_v8, %v30_v9  ;;  %v2920_v14 = vcombine.low %v15_v12, %v31_v13  ;;  %v2921_v15 = vcombine.high %v15_v12, %v31_v13  ;;  %v3624_v22 = vld [vmem:[%s4695_s1 + $0x208] sm:$0xff]   ;;  %v3626_v24 = vld [vmem:[%s4695_s1 + $0x250] sm:$0xff]   ;;  %v3634_v32 = vld [vmem:[%s4695_s1 + $0x260] sm:$0xff]  }
  0x1c   :  { %3215 = vmatpush3.bf16.msra.mxu0 %v3580_v26  ;;  %v3625_v23 = vld [vmem:[%s4695_s1 + $0x288] sm:$0xff]   ;;  %v3627_v25 = vld [vmem:[%s4695_s1 + $0x2d0] sm:$0xff]   ;;  %v3635_v33 = vld [vmem:[%s4695_s1 + $0x2e0] sm:$0xff]  }
  0x1d   :  { %3237 = vmatpush3.bf16.msra.mxu1 %v3581_v27  ;;  %3216 = vmatprep.subr.bf16.mxu0 %v3582_v28  ;;  %v3628_v26 = vld [vmem:[%s4695_s1 + $0x210] sm:$0xff]   ;;  %v3630_v28 = vld [vmem:[%s4695_s1 + $0x258] sm:$0xff]   ;;  %v3636_v34 = vld [vmem:[%s4695_s1 + $0x220] sm:$0xff]  }
  0x1e   :  { %3238 = vmatprep.subr.bf16.mxu1 %v3583_v29  ;;  %v3629_v27 = vld [vmem:[%s4695_s1 + $0x290] sm:$0xff]   ;;  %v3631_v29 = vld [vmem:[%s4695_s1 + $0x2d8] sm:$0xff]   ;;  %v3638_v36 = vld [vmem:[%s4695_s1 + $0x268] sm:$0xff]  }
  0x1f   :  { %v3639_v37 = vld [vmem:[%s4695_s1 + $0x2e8] sm:$0xff]   ;;  %v3666_v8 = vld [vmem:[%s4695_s1 + $0x360] sm:$0xff]  }
  0x20   :  { %3217 = vmatpush3.bf16.msra.mxu0 %v3584_v30  ;;  %v3632_v30 = vld [vmem:[%s4695_s1 + $0x218] sm:$0xff]   ;;  %v3641_v39 = vld [vmem:[%s4695_s1 + $0x2a8] sm:$0xff]   ;;  %v3667_v9 = vld [vmem:[%s4695_s1 + $0x3e0] sm:$0xff]  }
  0x21   :  { %3239 = vmatpush3.bf16.msra.mxu1 %v3585_v31  ;;  %3246 = vmatprep.subr.bf16.mxu0 %v3586_v40  ;;  %v3633_v31 = vld [vmem:[%s4695_s1 + $0x298] sm:$0xff]   ;;  %v3642_v40 = vld [vmem:[%s4695_s1 + $0x270] sm:$0xff]   ;;  %v3670_v12 = vld [vmem:[%s4695_s1 + $0x368] sm:$0xff]  }
  0x22   :  { %3268 = vmatprep.subr.bf16.mxu1 %v3587_v41  ;;  %v3643_v41 = vld [vmem:[%s4695_s1 + $0x2f0] sm:$0xff]   ;;  %v3671_v13 = vld [vmem:[%s4695_s1 + $0x3e8] sm:$0xff]  }
  0x23   :  { %2285 = vmatmul.mubr.bf16.vlgmr.msra.gmra.mrb[0].mxu0 %v2914_v35  ;;  %v3637_v35 = vld [vmem:[%s4695_s1 + $0x2a0] sm:$0xff]  }
  0x24   :  { %2326 = vmatmul.mubr.bf16.vlgmr.msra.gmra.mrb[0].mxu1 %v2916_v38  ;;  %3247 = vmatpush3.bf16.msra.mxu0 %v3588_v42  ;;  %v3640_v38 = vld [vmem:[%s4695_s1 + $0x228] sm:$0xff]   ;;  %v3644_v42 = vld [vmem:[%s4695_s1 + $0x230] sm:$0xff]  }
  0x25   :  { %3269 = vmatpush3.bf16.msra.mxu1 %v3589_v43  ;;  %3248 = vmatprep.subr.bf16.mxu0 %v3590_v44  ;;  %v3645_v43 = vld [vmem:[%s4695_s1 + $0x2b0] sm:$0xff]   ;;  %v3646_v44 = vld [vmem:[%s4695_s1 + $0x278] sm:$0xff]  }
  0x26   :  { %3270 = vmatprep.subr.bf16.mxu1 %v3591_v45  ;;  %2366 = vmatprep.mubr.bf16.mxu0 %v2919_v11  ;;  %v3647_v45 = vld [vmem:[%s4695_s1 + $0x2f8] sm:$0xff]   ;;  %v3669_v11 = vld [vmem:[%s4695_s1 + $0x3a0] sm:$0xff]  }
  0x27   :  { %2407 = vmatprep.mubr.bf16.mxu1 %v2921_v15  ;;  %v3673_v15 = vld [vmem:[%s4695_s1 + $0x3a8] sm:$0xff]  }
  0x28   :  { %3249 = vmatpush3.bf16.msra.mxu0 %v3592_v46  ;;  %v3648_v46 = vld [vmem:[%s4695_s1 + $0x238] sm:$0xff]  }
  0x29   :  { %3271 = vmatpush3.bf16.msra.mxu1 %v3593_v47  ;;  %3250 = vmatprep.subr.bf16.mxu0 %v3594_v48  ;;  %v3649_v47 = vld [vmem:[%s4695_s1 + $0x2b8] sm:$0xff]   ;;  %v16_v48 = vld [vmem:[%s4696_s0 + $0x20] sm:$0xff] }
  0x2a   :  { %3272 = vmatprep.subr.bf16.mxu1 %v3595_v49  ;;  %v32_v49 = vld [vmem:[%s4696_s0 + $0xa0] sm:$0xff] }
  0x2c   :  { %3251 = vmatpush3.bf16.msra.mxu0 %v3596_v50  ;;  %v17_v50 = vld [vmem:[%s4696_s0 + $0x28] sm:$0xff] }
  0x2d   :  { %3273 = vmatpush3.bf16.msra.mxu1 %v3597_v51  ;;  %3252 = vmatprep.subr.bf16.mxu0 %v3598_v52  ;;  %v33_v51 = vld [vmem:[%s4696_s0 + $0xa8] sm:$0xff]  ;;  %v2922_v52 = vcombine.low %v16_v48, %v32_v49 }
  0x2e   :  { %3274 = vmatprep.subr.bf16.mxu1 %v3599_v53  ;;  %v2923_v53 = vcombine.high %v16_v48, %v32_v49  ;;  %v3698_v48 = vld [vmem:[%s4695_s1 + $0x460] sm:$0xff]  }
  0x2f   :  { %v3699_v49 = vld [vmem:[%s4695_s1 + $0x4e0] sm:$0xff]  }
  0x30   :  { %3253 = vmatpush3.bf16.msra.mxu0 %v3600_v54  ;;  %v2924_v54 = vcombine.low %v17_v50, %v33_v51 }
  0x31   :  { %3275 = vmatpush3.bf16.msra.mxu1 %v3601_v55  ;;  %3254 = vmatprep.subr.bf16.mxu0 %v3602_v56  ;;  %v2925_v55 = vcombine.high %v17_v50, %v33_v51  ;;  %v3650_v56 = vld [vmem:[%s4695_s1 + $0x340] sm:$0xff]  }
  0x32   :  { %3276 = vmatprep.subr.bf16.mxu1 %v3603_v57  ;;  %v3651_v57 = vld [vmem:[%s4695_s1 + $0x3c0] sm:$0xff]  }
  0x33   :  { %v3700_v50 = vld [vmem:[%s4695_s1 + $0x420] sm:$0xff]  }
  0x34   :  { %3255 = vmatpush3.bf16.msra.mxu0 %v3604_v58  ;;  %v3652_v58 = vld [vmem:[%s4695_s1 + $0x300] sm:$0xff]  }
  0x35   :  { %3277 = vmatpush3.bf16.msra.mxu1 %v3605_v59  ;;  %3256 = vmatprep.subr.bf16.mxu0 %v3606_v60  ;;  %v3653_v59 = vld [vmem:[%s4695_s1 + $0x380] sm:$0xff]   ;;  %v3654_v60 = vld [vmem:[%s4695_s1 + $0x348] sm:$0xff]  }
  0x36   :  { %3278 = vmatprep.subr.bf16.mxu1 %v3607_v61  ;;  %v3655_v61 = vld [vmem:[%s4695_s1 + $0x3c8] sm:$0xff]   ;;  %v3701_v51 = vld [vmem:[%s4695_s1 + $0x4a0] sm:$0xff]  }
  0x38   :  { %3257 = vmatpush3.bf16.msra.mxu0 %v3608_v62  ;;  %v3656_v62 = vld [vmem:[%s4695_s1 + $0x308] sm:$0xff]  }
  0x39   :  { %3279 = vmatpush3.bf16.msra.mxu1 %v3609_v63  ;;  %3258 = vmatprep.subr.bf16.mxu0 %v3610_v0  ;;  %v3657_v63 = vld [vmem:[%s4695_s1 + $0x388] sm:$0xff]   ;;  %v3658_v0 = vld [vmem:[%s4695_s1 + $0x350] sm:$0xff]  }
  0x3a   :  { %3280 = vmatprep.subr.bf16.mxu1 %v3611_v1  ;;  %v3659_v1 = vld [vmem:[%s4695_s1 + $0x3d0] sm:$0xff]  }
  0x3c   :  { %3259 = vmatpush3.bf16.msra.mxu0 %v3612_v2  ;;  %v3660_v2 = vld [vmem:[%s4695_s1 + $0x310] sm:$0xff]  }
  0x3d   :  { %3281 = vmatpush3.bf16.msra.mxu1 %v3613_v3  ;;  %3260 = vmatprep.subr.bf16.mxu0 %v3614_v4  ;;  %v3661_v3 = vld [vmem:[%s4695_s1 + $0x390] sm:$0xff]   ;;  %v3662_v4 = vld [vmem:[%s4695_s1 + $0x358] sm:$0xff]  }
  0x3e   :  { %3282 = vmatprep.subr.bf16.mxu1 %v3615_v5  ;;  %v3663_v5 = vld [vmem:[%s4695_s1 + $0x3d8] sm:$0xff]  }
  0x40   :  { %3261 = vmatpush3.bf16.msra.mxu0 %v3616_v6  ;;  %v3664_v6 = vld [vmem:[%s4695_s1 + $0x318] sm:$0xff]  }
  0x41   :  { %3283 = vmatpush3.bf16.msra.mxu1 %v3617_v7  ;;  %3290 = vmatprep.subr.bf16.mxu0 %v3618_v16  ;;  %v3665_v7 = vld [vmem:[%s4695_s1 + $0x398] sm:$0xff]   ;;  %v3674_v16 = vld [vmem:[%s4695_s1 + $0x370] sm:$0xff]  }
  0x42   :  { %3312 = vmatprep.subr.bf16.mxu1 %v3619_v17  ;;  %v3675_v17 = vld [vmem:[%s4695_s1 + $0x3f0] sm:$0xff]  }
  0x43   :  { %2367 = vmatmul.mubr.bf16.vlgmr.msra.gmra.mrb[4].mxu0 %v2918_v10  ;;  %v3668_v10 = vld [vmem:[%s4695_s1 + $0x320] sm:$0xff]  }
  0x44   :  { %2408 = vmatmul.mubr.bf16.vlgmr.msra.gmra.mrb[4].mxu1 %v2920_v14  ;;  %3291 = vmatpush3.bf16.msra.mxu0 %v3620_v18  ;;  %v3672_v14 = vld [vmem:[%s4695_s1 + $0x328] sm:$0xff]   ;;  %v3676_v18 = vld [vmem:[%s4695_s1 + $0x330] sm:$0xff]  }
  0x45   :  { %3313 = vmatpush3.bf16.msra.mxu1 %v3621_v19  ;;  %3292 = vmatprep.subr.bf16.mxu0 %v3622_v20  ;;  %v3677_v19 = vld [vmem:[%s4695_s1 + $0x3b0] sm:$0xff]   ;;  %v3678_v20 = vld [vmem:[%s4695_s1 + $0x378] sm:$0xff]  }
  0x46   :  { %3314 = vmatprep.subr.bf16.mxu1 %v3623_v21  ;;  %2448 = vmatprep.mubr.bf16.mxu0 %v2923_v53  ;;  %v3679_v21 = vld [vmem:[%s4695_s1 + $0x3f8] sm:$0xff]   ;;  %v3703_v53 = vld [vmem:[%s4695_s1 + $0x4e8] sm:$0xff]  }
  0x47   :  { %2489 = vmatprep.mubr.bf16.mxu1 %v2925_v55  ;;  %v3705_v55 = vld [vmem:[%s4695_s1 + $0x4a8] sm:$0xff]  }
  0x48   :  { %3293 = vmatpush3.bf16.msra.mxu0 %v3624_v22  ;;  %v3680_v22 = vld [vmem:[%s4695_s1 + $0x338] sm:$0xff]  }
  0x49   :  { %3315 = vmatpush3.bf16.msra.mxu1 %v3625_v23  ;;  %3294 = vmatprep.subr.bf16.mxu0 %v3626_v24  ;;  %v3681_v23 = vld [vmem:[%s4695_s1 + $0x3b8] sm:$0xff]   ;;  %v18_v24 = vld [vmem:[%s4696_s0 + $0x30] sm:$0xff] }
  0x4a   :  { %3316 = vmatprep.subr.bf16.mxu1 %v3627_v25  ;;  %v34_v25 = vld [vmem:[%s4696_s0 + $0xb0] sm:$0xff] }
  0x4c   :  { %3295 = vmatpush3.bf16.msra.mxu0 %v3628_v26  ;;  %v19_v26 = vld [vmem:[%s4696_s0 + $0x38] sm:$0xff] }
  0x4d   :  { %3317 = vmatpush3.bf16.msra.mxu1 %v3629_v27  ;;  %3296 = vmatprep.subr.bf16.mxu0 %v3630_v28  ;;  %v2926_v27 = vcombine.low %v18_v24, %v34_v25  ;;  %v2927_v28 = vcombine.high %v18_v24, %v34_v25  ;;  %v3730_v24 = vld [vmem:[%s4695_s1 + $0x560] sm:$0xff]  }
  0x4e   :  { %3318 = vmatprep.subr.bf16.mxu1 %v3631_v29  ;;  %v35_v29 = vld [vmem:[%s4696_s0 + $0xb8] sm:$0xff]  ;;  %v3731_v25 = vld [vmem:[%s4695_s1 + $0x5e0] sm:$0xff]  }
  0x50   :  { %3297 = vmatpush3.bf16.msra.mxu0 %v3632_v30  ;;  %v2928_v30 = vcombine.low %v19_v26, %v35_v29 }
  0x51   :  { %3319 = vmatpush3.bf16.msra.mxu1 %v3633_v31  ;;  %3298 = vmatprep.subr.bf16.mxu0 %v3634_v32  ;;  %v2929_v31 = vcombine.high %v19_v26, %v35_v29  ;;  %v3682_v32 = vld [vmem:[%s4695_s1 + $0x440] sm:$0xff]   ;;  %v3735_v29 = vld [vmem:[%s4695_s1 + $0x5e8] sm:$0xff]  }
  0x52   :  { %3320 = vmatprep.subr.bf16.mxu1 %v3635_v33  ;;  %v3683_v33 = vld [vmem:[%s4695_s1 + $0x4c0] sm:$0xff]  }
  0x53   :  { %v3732_v26 = vld [vmem:[%s4695_s1 + $0x520] sm:$0xff]  }
  0x54   :  { %3299 = vmatpush3.bf16.msra.mxu0 %v3636_v34  ;;  %v3684_v34 = vld [vmem:[%s4695_s1 + $0x400] sm:$0xff]  }
  0x55   :  { %3321 = vmatpush3.bf16.msra.mxu1 %v3637_v35  ;;  %3300 = vmatprep.subr.bf16.mxu0 %v3638_v36  ;;  %v3685_v35 = vld [vmem:[%s4695_s1 + $0x480] sm:$0xff]   ;;  %v3686_v36 = vld [vmem:[%s4695_s1 + $0x448] sm:$0xff]  }
  0x56   :  { %3322 = vmatprep.subr.bf16.mxu1 %v3639_v37  ;;  %v3687_v37 = vld [vmem:[%s4695_s1 + $0x4c8] sm:$0xff]  }
  0x58   :  { %3301 = vmatpush3.bf16.msra.mxu0 %v3640_v38  ;;  %v3688_v38 = vld [vmem:[%s4695_s1 + $0x408] sm:$0xff]  }
  0x59   :  { %3323 = vmatpush3.bf16.msra.mxu1 %v3641_v39  ;;  %3302 = vmatprep.subr.bf16.mxu0 %v3642_v40  ;;  %v3689_v39 = vld [vmem:[%s4695_s1 + $0x488] sm:$0xff]   ;;  %v3690_v40 = vld [vmem:[%s4695_s1 + $0x450] sm:$0xff]  }
  0x5a   :  { %3324 = vmatprep.subr.bf16.mxu1 %v3643_v41  ;;  %v3691_v41 = vld [vmem:[%s4695_s1 + $0x4d0] sm:$0xff]  }
  0x5c   :  { %3303 = vmatpush3.bf16.msra.mxu0 %v3644_v42  ;;  %v3692_v42 = vld [vmem:[%s4695_s1 + $0x410] sm:$0xff]  }
  0x5d   :  { %3325 = vmatpush3.bf16.msra.mxu1 %v3645_v43  ;;  %3304 = vmatprep.subr.bf16.mxu0 %v3646_v44  ;;  %v3693_v43 = vld [vmem:[%s4695_s1 + $0x490] sm:$0xff]   ;;  %v3694_v44 = vld [vmem:[%s4695_s1 + $0x458] sm:$0xff]  }
  0x5e   :  { %3326 = vmatprep.subr.bf16.mxu1 %v3647_v45  ;;  %v3695_v45 = vld [vmem:[%s4695_s1 + $0x4d8] sm:$0xff]  }
  0x60   :  { %3305 = vmatpush3.bf16.msra.mxu0 %v3648_v46  ;;  %v3696_v46 = vld [vmem:[%s4695_s1 + $0x418] sm:$0xff]  }
  0x61   :  { %3327 = vmatpush3.bf16.msra.mxu1 %v3649_v47  ;;  %3334 = vmatprep.subr.bf16.mxu0 %v3650_v56  ;;  %v3697_v47 = vld [vmem:[%s4695_s1 + $0x498] sm:$0xff]   ;;  %v3706_v56 = vld [vmem:[%s4695_s1 + $0x470] sm:$0xff]  }
  0x62   :  { %3356 = vmatprep.subr.bf16.mxu1 %v3651_v57  ;;  %v3707_v57 = vld [vmem:[%s4695_s1 + $0x4f0] sm:$0xff]  }
  0x63   :  { %2449 = vmatmul.mubr.bf16.vlgmr.msra.gmra.mrb[8].mxu0 %v2922_v52  ;;  %v3702_v52 = vld [vmem:[%s4695_s1 + $0x468] sm:$0xff]  }
  0x64   :  { %2490 = vmatmul.mubr.bf16.vlgmr.msra.gmra.mrb[8].mxu1 %v2924_v54  ;;  %3335 = vmatpush3.bf16.msra.mxu0 %v3652_v58  ;;  %v3704_v54 = vld [vmem:[%s4695_s1 + $0x428] sm:$0xff]   ;;  %v3708_v58 = vld [vmem:[%s4695_s1 + $0x430] sm:$0xff]  }
  0x65   :  { %3357 = vmatpush3.bf16.msra.mxu1 %v3653_v59  ;;  %3336 = vmatprep.subr.bf16.mxu0 %v3654_v60  ;;  %v3709_v59 = vld [vmem:[%s4695_s1 + $0x4b0] sm:$0xff]   ;;  %v3710_v60 = vld [vmem:[%s4695_s1 + $0x478] sm:$0xff]  }
  0x66   :  { %3358 = vmatprep.subr.bf16.mxu1 %v3655_v61  ;;  %2530 = vmatprep.mubr.bf16.mxu0 %v2927_v28  ;;  %v3711_v61 = vld [vmem:[%s4695_s1 + $0x4f8] sm:$0xff]   ;;  %v3734_v28 = vld [vmem:[%s4695_s1 + $0x568] sm:$0xff]  }
  0x67   :  { %2571 = vmatprep.mubr.bf16.mxu1 %v2929_v31  ;;  %v3737_v31 = vld [vmem:[%s4695_s1 + $0x5a8] sm:$0xff]  }
  0x68   :  { %3337 = vmatpush3.bf16.msra.mxu0 %v3656_v62  ;;  %v3712_v62 = vld [vmem:[%s4695_s1 + $0x438] sm:$0xff]  }
  0x69   :  { %3359 = vmatpush3.bf16.msra.mxu1 %v3657_v63  ;;  %3338 = vmatprep.subr.bf16.mxu0 %v3658_v0  ;;  %v3713_v63 = vld [vmem:[%s4695_s1 + $0x4b8] sm:$0xff]   ;;  %v20_v0 = vld [vmem:[%s4696_s0 + $0x40] sm:$0xff] }
  0x6a   :  { %3360 = vmatprep.subr.bf16.mxu1 %v3659_v1  ;;  %v36_v1 = vld [vmem:[%s4696_s0 + $0xc0] sm:$0xff] }
  0x6c   :  { %3339 = vmatpush3.bf16.msra.mxu0 %v3660_v2  ;;  %v2930_v2 = vcombine.low %v20_v0, %v36_v1 }
  0x6d   :  { %3361 = vmatpush3.bf16.msra.mxu1 %v3661_v3  ;;  %3340 = vmatprep.subr.bf16.mxu0 %v3662_v4  ;;  %v2931_v3 = vcombine.high %v20_v0, %v36_v1  ;;  %v21_v4 = vld [vmem:[%s4696_s0 + $0x48] sm:$0xff]  ;;  %v3762_v0 = vld [vmem:[%s4695_s1 + $0x660] sm:$0xff]  }
  0x6e   :  { %3362 = vmatprep.subr.bf16.mxu1 %v3663_v5  ;;  %v37_v5 = vld [vmem:[%s4696_s0 + $0xc8] sm:$0xff]  ;;  %v3763_v1 = vld [vmem:[%s4695_s1 + $0x6e0] sm:$0xff]  }
  0x70   :  { %3341 = vmatpush3.bf16.msra.mxu0 %v3664_v6  ;;  %v2932_v6 = vcombine.low %v21_v4, %v37_v5 }
  0x71   :  { %3363 = vmatpush3.bf16.msra.mxu1 %v3665_v7  ;;  %3342 = vmatprep.subr.bf16.mxu0 %v3666_v8  ;;  %v2933_v7 = vcombine.high %v21_v4, %v37_v5  ;;  %v3714_v8 = vld [vmem:[%s4695_s1 + $0x540] sm:$0xff]   ;;  %v3766_v4 = vld [vmem:[%s4695_s1 + $0x668] sm:$0xff]  }
  0x72   :  { %3364 = vmatprep.subr.bf16.mxu1 %v3667_v9  ;;  %v3715_v9 = vld [vmem:[%s4695_s1 + $0x5c0] sm:$0xff]   ;;  %v3767_v5 = vld [vmem:[%s4695_s1 + $0x6e8] sm:$0xff]  }
  0x74   :  { %3343 = vmatpush3.bf16.msra.mxu0 %v3668_v10  ;;  %v3716_v10 = vld [vmem:[%s4695_s1 + $0x500] sm:$0xff]  }
  0x75   :  { %3365 = vmatpush3.bf16.msra.mxu1 %v3669_v11  ;;  %3344 = vmatprep.subr.bf16.mxu0 %v3670_v12  ;;  %v3717_v11 = vld [vmem:[%s4695_s1 + $0x580] sm:$0xff]   ;;  %v3718_v12 = vld [vmem:[%s4695_s1 + $0x548] sm:$0xff]  }
  0x76   :  { %3366 = vmatprep.subr.bf16.mxu1 %v3671_v13  ;;  %v3719_v13 = vld [vmem:[%s4695_s1 + $0x5c8] sm:$0xff]  }
  0x78   :  { %3345 = vmatpush3.bf16.msra.mxu0 %v3672_v14  ;;  %v3720_v14 = vld [vmem:[%s4695_s1 + $0x508] sm:$0xff]  }
  0x79   :  { %3367 = vmatpush3.bf16.msra.mxu1 %v3673_v15  ;;  %3346 = vmatprep.subr.bf16.mxu0 %v3674_v16  ;;  %v3721_v15 = vld [vmem:[%s4695_s1 + $0x588] sm:$0xff]   ;;  %v3722_v16 = vld [vmem:[%s4695_s1 + $0x550] sm:$0xff]  }
  0x7a   :  { %3368 = vmatprep.subr.bf16.mxu1 %v3675_v17  ;;  %v3723_v17 = vld [vmem:[%s4695_s1 + $0x5d0] sm:$0xff]  }
  0x7c   :  { %3347 = vmatpush3.bf16.msra.mxu0 %v3676_v18  ;;  %v3724_v18 = vld [vmem:[%s4695_s1 + $0x510] sm:$0xff]  }
  0x7d   :  { %3369 = vmatpush3.bf16.msra.mxu1 %v3677_v19  ;;  %3348 = vmatprep.subr.bf16.mxu0 %v3678_v20  ;;  %v3725_v19 = vld [vmem:[%s4695_s1 + $0x590] sm:$0xff]   ;;  %v3726_v20 = vld [vmem:[%s4695_s1 + $0x558] sm:$0xff]  }
  0x7e   :  { %3370 = vmatprep.subr.bf16.mxu1 %v3679_v21  ;;  %v3727_v21 = vld [vmem:[%s4695_s1 + $0x5d8] sm:$0xff]  }
  0x80   :  { %3349 = vmatpush3.bf16.msra.mxu0 %v3680_v22  ;;  %v3728_v22 = vld [vmem:[%s4695_s1 + $0x518] sm:$0xff]  }
  0x81   :  { %3371 = vmatpush3.bf16.msra.mxu1 %v3681_v23  ;;  %3378 = vmatprep.subr.bf16.mxu0 %v3682_v32  ;;  %v3729_v23 = vld [vmem:[%s4695_s1 + $0x598] sm:$0xff]   ;;  %v3738_v32 = vld [vmem:[%s4695_s1 + $0x570] sm:$0xff]  }
  0x82   :  { %3400 = vmatprep.subr.bf16.mxu1 %v3683_v33  ;;  %v3739_v33 = vld [vmem:[%s4695_s1 + $0x5f0] sm:$0xff]  }
  0x83   :  { %2531 = vmatmul.mubr.bf16.vlgmr.msra.gmra.mrb[12].mxu0 %v2926_v27  ;;  %v3733_v27 = vld [vmem:[%s4695_s1 + $0x5a0] sm:$0xff]  }
  0x84   :  { %2572 = vmatmul.mubr.bf16.vlgmr.msra.gmra.mrb[12].mxu1 %v2928_v30  ;;  %3379 = vmatpush3.bf16.msra.mxu0 %v3684_v34  ;;  %v3736_v30 = vld [vmem:[%s4695_s1 + $0x528] sm:$0xff]   ;;  %v3740_v34 = vld [vmem:[%s4695_s1 + $0x530] sm:$0xff]  }
  0x85   :  { %3401 = vmatpush3.bf16.msra.mxu1 %v3685_v35  ;;  %3380 = vmatprep.subr.bf16.mxu0 %v3686_v36  ;;  %v3741_v35 = vld [vmem:[%s4695_s1 + $0x5b0] sm:$0xff]   ;;  %v3742_v36 = vld [vmem:[%s4695_s1 + $0x578] sm:$0xff]  }
  0x86   :  { %3402 = vmatprep.subr.bf16.mxu1 %v3687_v37  ;;  %2612 = vmatprep.mubr.bf16.mxu0 %v2931_v3  ;;  %v3743_v37 = vld [vmem:[%s4695_s1 + $0x5f8] sm:$0xff]   ;;  %v3765_v3 = vld [vmem:[%s4695_s1 + $0x6a0] sm:$0xff]  }
  0x87   :  { %2653 = vmatprep.mubr.bf16.mxu1 %v2933_v7  ;;  %v3769_v7 = vld [vmem:[%s4695_s1 + $0x6a8] sm:$0xff]  }
  0x88   :  { %3381 = vmatpush3.bf16.msra.mxu0 %v3688_v38  ;;  %v3744_v38 = vld [vmem:[%s4695_s1 + $0x538] sm:$0xff]  }
  0x89   :  { %3403 = vmatpush3.bf16.msra.mxu1 %v3689_v39  ;;  %3382 = vmatprep.subr.bf16.mxu0 %v3690_v40  ;;  %v3745_v39 = vld [vmem:[%s4695_s1 + $0x5b8] sm:$0xff]   ;;  %v22_v40 = vld [vmem:[%s4696_s0 + $0x50] sm:$0xff] }
  0x8a   :  { %3404 = vmatprep.subr.bf16.mxu1 %v3691_v41  ;;  %v38_v41 = vld [vmem:[%s4696_s0 + $0xd0] sm:$0xff] }
  0x8c   :  { %3383 = vmatpush3.bf16.msra.mxu0 %v3692_v42  ;;  %v23_v42 = vld [vmem:[%s4696_s0 + $0x58] sm:$0xff] }
  0x8d   :  { %3405 = vmatpush3.bf16.msra.mxu1 %v3693_v43  ;;  %3384 = vmatprep.subr.bf16.mxu0 %v3694_v44  ;;  %v39_v43 = vld [vmem:[%s4696_s0 + $0xd8] sm:$0xff]  ;;  %v2934_v44 = vcombine.low %v22_v40, %v38_v41 }
  0x8e   :  { %3406 = vmatprep.subr.bf16.mxu1 %v3695_v45  ;;  %v2935_v45 = vcombine.high %v22_v40, %v38_v41  ;;  %v3793_v41 = vld [vmem:[%s4695_s1 + $0x798] sm:$0xff]  }
  0x90   :  { %3385 = vmatpush3.bf16.msra.mxu0 %v3696_v46  ;;  %v2936_v46 = vcombine.low %v23_v42, %v39_v43 }
  0x91   :  { %3407 = vmatpush3.bf16.msra.mxu1 %v3697_v47  ;;  %3386 = vmatprep.subr.bf16.mxu0 %v3698_v48  ;;  %v2937_v47 = vcombine.high %v23_v42, %v39_v43  ;;  %v3746_v48 = vld [vmem:[%s4695_s1 + $0x640] sm:$0xff]  }
  0x92   :  { %3408 = vmatprep.subr.bf16.mxu1 %v3699_v49  ;;  %v3747_v49 = vld [vmem:[%s4695_s1 + $0x6c0] sm:$0xff]  }
  0x93   :  { %v3794_v43 = vld [vmem:[%s4695_s1 + $0x760] sm:$0xff]  }
  0x94   :  { %3387 = vmatpush3.bf16.msra.mxu0 %v3700_v50  ;;  %v3748_v50 = vld [vmem:[%s4695_s1 + $0x600] sm:$0xff]  }
  0x95   :  { %3409 = vmatpush3.bf16.msra.mxu1 %v3701_v51  ;;  %3388 = vmatprep.subr.bf16.mxu0 %v3702_v52  ;;  %v3749_v51 = vld [vmem:[%s4695_s1 + $0x680] sm:$0xff]   ;;  %v3750_v52 = vld [vmem:[%s4695_s1 + $0x648] sm:$0xff]  }
  0x96   :  { %3410 = vmatprep.subr.bf16.mxu1 %v3703_v53  ;;  %v3751_v53 = vld [vmem:[%s4695_s1 + $0x6c8] sm:$0xff]  }
  0x98   :  { %3389 = vmatpush3.bf16.msra.mxu0 %v3704_v54  ;;  %v3752_v54 = vld [vmem:[%s4695_s1 + $0x608] sm:$0xff]  }
  0x99   :  { %3411 = vmatpush3.bf16.msra.mxu1 %v3705_v55  ;;  %3390 = vmatprep.subr.bf16.mxu0 %v3706_v56  ;;  %v3753_v55 = vld [vmem:[%s4695_s1 + $0x688] sm:$0xff]   ;;  %v3754_v56 = vld [vmem:[%s4695_s1 + $0x650] sm:$0xff]  }
  0x9a   :  { %3412 = vmatprep.subr.bf16.mxu1 %v3707_v57  ;;  %v3755_v57 = vld [vmem:[%s4695_s1 + $0x6d0] sm:$0xff]  }
  0x9c   :  { %3391 = vmatpush3.bf16.msra.mxu0 %v3708_v58  ;;  %v3756_v58 = vld [vmem:[%s4695_s1 + $0x610] sm:$0xff]  }
  0x9d   :  { %3413 = vmatpush3.bf16.msra.mxu1 %v3709_v59  ;;  %3392 = vmatprep.subr.bf16.mxu0 %v3710_v60  ;;  %v3757_v59 = vld [vmem:[%s4695_s1 + $0x690] sm:$0xff]   ;;  %v3758_v60 = vld [vmem:[%s4695_s1 + $0x658] sm:$0xff]  }
  0x9e   :  { %3414 = vmatprep.subr.bf16.mxu1 %v3711_v61  ;;  %v3759_v61 = vld [vmem:[%s4695_s1 + $0x6d8] sm:$0xff]  }
  0xa0   :  { %3393 = vmatpush3.bf16.msra.mxu0 %v3712_v62  ;;  %v3760_v62 = vld [vmem:[%s4695_s1 + $0x618] sm:$0xff]  }
  0xa1   :  { %3415 = vmatpush3.bf16.msra.mxu1 %v3713_v63  ;;  %3422 = vmatprep.subr.bf16.mxu0 %v3714_v8  ;;  %v3761_v63 = vld [vmem:[%s4695_s1 + $0x698] sm:$0xff]   ;;  %v3770_v8 = vld [vmem:[%s4695_s1 + $0x670] sm:$0xff]  }
  0xa2   :  { %3444 = vmatprep.subr.bf16.mxu1 %v3715_v9  ;;  %v3771_v9 = vld [vmem:[%s4695_s1 + $0x6f0] sm:$0xff]  }
  0xa3   :  { %2613 = vmatmul.mubr.bf16.vlgmr.msra.gmra.mrb[16].mxu0 %v2930_v2  ;;  %v3764_v2 = vld [vmem:[%s4695_s1 + $0x620] sm:$0xff]  }
  0xa4   :  { %2654 = vmatmul.mubr.bf16.vlgmr.msra.gmra.mrb[16].mxu1 %v2932_v6  ;;  %3423 = vmatpush3.bf16.msra.mxu0 %v3716_v10  ;;  %v3768_v6 = vld [vmem:[%s4695_s1 + $0x628] sm:$0xff]   ;;  %v3772_v10 = vld [vmem:[%s4695_s1 + $0x630] sm:$0xff]  }
  0xa5   :  { %3445 = vmatpush3.bf16.msra.mxu1 %v3717_v11  ;;  %3424 = vmatprep.subr.bf16.mxu0 %v3718_v12  ;;  %v3773_v11 = vld [vmem:[%s4695_s1 + $0x6b0] sm:$0xff]   ;;  %v3774_v12 = vld [vmem:[%s4695_s1 + $0x678] sm:$0xff]  }
  0xa6   :  { %3446 = vmatprep.subr.bf16.mxu1 %v3719_v13  ;;  %2694 = vmatprep.mubr.bf16.mxu0 %v2935_v45  ;;  %v3775_v13 = vld [vmem:[%s4695_s1 + $0x6f8] sm:$0xff]  }
  0xa7   :  { %2735 = vmatprep.mubr.bf16.mxu1 %v2937_v47 }
  0xa8   :  { %3425 = vmatpush3.bf16.msra.mxu0 %v3720_v14  ;;  %v3776_v14 = vld [vmem:[%s4695_s1 + $0x638] sm:$0xff]  }
  0xa9   :  { %3447 = vmatpush3.bf16.msra.mxu1 %v3721_v15  ;;  %3426 = vmatprep.subr.bf16.mxu0 %v3722_v16  ;;  %v3777_v15 = vld [vmem:[%s4695_s1 + $0x6b8] sm:$0xff]   ;;  %v24_v16 = vld [vmem:[%s4696_s0 + $0x60] sm:$0xff] }
  0xaa   :  { %3448 = vmatprep.subr.bf16.mxu1 %v3723_v17  ;;  %v40_v17 = vld [vmem:[%s4696_s0 + $0xe0] sm:$0xff] }
  0xac   :  { %3427 = vmatpush3.bf16.msra.mxu0 %v3724_v18  ;;  %v25_v18 = vld [vmem:[%s4696_s0 + $0x68] sm:$0xff] }
  0xad   :  { %3449 = vmatpush3.bf16.msra.mxu1 %v3725_v19  ;;  %3428 = vmatprep.subr.bf16.mxu0 %v3726_v20  ;;  %v2938_v19 = vcombine.low %v24_v16, %v40_v17  ;;  %v2939_v20 = vcombine.high %v24_v16, %v40_v17 }
  0xae   :  { %3450 = vmatprep.subr.bf16.mxu1 %v3727_v21  ;;  %v41_v21 = vld [vmem:[%s4696_s0 + $0xe8] sm:$0xff] }
  0xb0   :  { %3429 = vmatpush3.bf16.msra.mxu0 %v3728_v22  ;;  %v2940_v22 = vcombine.low %v25_v18, %v41_v21 }
  0xb1   :  { %3451 = vmatpush3.bf16.msra.mxu1 %v3729_v23  ;;  %3430 = vmatprep.subr.bf16.mxu0 %v3730_v24  ;;  %v2941_v23 = vcombine.high %v25_v18, %v41_v21  ;;  %v3778_v24 = vld [vmem:[%s4695_s1 + $0x740] sm:$0xff]  }
  0xb2   :  { %3452 = vmatprep.subr.bf16.mxu1 %v3731_v25  ;;  %v3779_v25 = vld [vmem:[%s4695_s1 + $0x7c0] sm:$0xff]  }
  0xb4   :  { %3431 = vmatpush3.bf16.msra.mxu0 %v3732_v26  ;;  %v3780_v26 = vld [vmem:[%s4695_s1 + $0x700] sm:$0xff]  }
  0xb5   :  { %3453 = vmatpush3.bf16.msra.mxu1 %v3733_v27  ;;  %3432 = vmatprep.subr.bf16.mxu0 %v3734_v28  ;;  %v3781_v27 = vld [vmem:[%s4695_s1 + $0x780] sm:$0xff]   ;;  %v3782_v28 = vld [vmem:[%s4695_s1 + $0x748] sm:$0xff]  }
  0xb6   :  { %3454 = vmatprep.subr.bf16.mxu1 %v3735_v29  ;;  %v3783_v29 = vld [vmem:[%s4695_s1 + $0x7c8] sm:$0xff]  }
  0xb8   :  { %3433 = vmatpush3.bf16.msra.mxu0 %v3736_v30  ;;  %v3784_v30 = vld [vmem:[%s4695_s1 + $0x708] sm:$0xff]  }
  0xb9   :  { %3455 = vmatpush3.bf16.msra.mxu1 %v3737_v31  ;;  %3434 = vmatprep.subr.bf16.mxu0 %v3738_v32  ;;  %v3785_v31 = vld [vmem:[%s4695_s1 + $0x788] sm:$0xff]   ;;  %v3786_v32 = vld [vmem:[%s4695_s1 + $0x750] sm:$0xff]  }
  0xba   :  { %3456 = vmatprep.subr.bf16.mxu1 %v3739_v33  ;;  %v3787_v33 = vld [vmem:[%s4695_s1 + $0x7d0] sm:$0xff]  }
  0xbc   :  { %3435 = vmatpush3.bf16.msra.mxu0 %v3740_v34  ;;  %v3788_v34 = vld [vmem:[%s4695_s1 + $0x710] sm:$0xff]  }
  0xbd   :  { %3457 = vmatpush3.bf16.msra.mxu1 %v3741_v35  ;;  %3436 = vmatprep.subr.bf16.mxu0 %v3742_v36  ;;  %v3789_v35 = vld [vmem:[%s4695_s1 + $0x790] sm:$0xff]   ;;  %v3790_v36 = vld [vmem:[%s4695_s1 + $0x758] sm:$0xff]  }
  0xbe   :  { %3458 = vmatprep.subr.bf16.mxu1 %v3743_v37  ;;  %v3791_v37 = vld [vmem:[%s4695_s1 + $0x7d8] sm:$0xff]  }
  0xc0   :  { %3437 = vmatpush3.bf16.msra.mxu0 %v3744_v38 }
  0xc1   :  { %3459 = vmatpush3.bf16.msra.mxu1 %v3745_v39  ;;  %3466 = vmatprep.subr.bf16.mxu0 %v3746_v48  ;;  %v3792_v39 = vld [vmem:[%s4695_s1 + $0x718] sm:$0xff]  }
  0xc2   :  { %3488 = vmatprep.subr.bf16.mxu1 %v3747_v49  ;;  %v3796_v49 = vld [vmem:[%s4695_s1 + $0x720] sm:$0xff]  }
  0xc3   :  { %2695 = vmatmul.mubr.bf16.vlgmr.msra.gmra.mrb[20].mxu0 %v2934_v44 }
  0xc4   :  { %2736 = vmatmul.mubr.bf16.vlgmr.msra.gmra.mrb[20].mxu1 %v2936_v46  ;;  %3467 = vmatpush3.bf16.msra.mxu0 %v3748_v50  ;;  %v3795_v46 = vld [vmem:[%s4695_s1 + $0x7e0] sm:$0xff]  }
  0xc5   :  { %3489 = vmatpush3.bf16.msra.mxu1 %v3749_v51  ;;  %3468 = vmatprep.subr.bf16.mxu0 %v3750_v52  ;;  %v3797_v51 = vld [vmem:[%s4695_s1 + $0x7a0] sm:$0xff]  }
  0xc6   :  { %3490 = vmatprep.subr.bf16.mxu1 %v3751_v53  ;;  %2776 = vmatprep.mubr.bf16.mxu0 %v2939_v20 }
  0xc7   :  { %2817 = vmatprep.mubr.bf16.mxu1 %v2941_v23 }
  0xc8   :  { %3469 = vmatpush3.bf16.msra.mxu0 %v3752_v54  ;;  %v3798_v54 = vld [vmem:[%s4695_s1 + $0x768] sm:$0xff]  }
  0xc9   :  { %3491 = vmatpush3.bf16.msra.mxu1 %v3753_v55  ;;  %3470 = vmatprep.subr.bf16.mxu0 %v3754_v56 }
  0xca   :  { %3492 = vmatprep.subr.bf16.mxu1 %v3755_v57  ;;  %v3799_v57 = vld [vmem:[%s4695_s1 + $0x7e8] sm:$0xff]  }
  0xcc   :  { %3471 = vmatpush3.bf16.msra.mxu0 %v3756_v58 }
  0xcd   :  { %3493 = vmatpush3.bf16.msra.mxu1 %v3757_v59  ;;  %3472 = vmatprep.subr.bf16.mxu0 %v3758_v60  ;;  %v3800_v59 = vld [vmem:[%s4695_s1 + $0x728] sm:$0xff]  }
  0xce   :  { %3494 = vmatprep.subr.bf16.mxu1 %v3759_v61  ;;  %v3801_v60 = vld [vmem:[%s4695_s1 + $0x7a8] sm:$0xff]  }
  0xd0   :  { %3473 = vmatpush3.bf16.msra.mxu0 %v3760_v62  ;;  %v3802_v62 = vld [vmem:[%s4695_s1 + $0x770] sm:$0xff]  }
  0xd1   :  { %3495 = vmatpush3.bf16.msra.mxu1 %v3761_v63  ;;  %3474 = vmatprep.subr.bf16.mxu0 %v3762_v0  ;;  %v3803_v63 = vld [vmem:[%s4695_s1 + $0x7f0] sm:$0xff]  }
  0xd2   :  { %3496 = vmatprep.subr.bf16.mxu1 %v3763_v1  ;;  %v3804_v0 = vld [vmem:[%s4695_s1 + $0x730] sm:$0xff]  }
  0xd3   :  { %v3805_v1 = vld [vmem:[%s4695_s1 + $0x7b0] sm:$0xff]  }
  0xd4   :  { %3475 = vmatpush3.bf16.msra.mxu0 %v3764_v2  ;;  %v3806_v2 = vld [vmem:[%s4695_s1 + $0x778] sm:$0xff]  }
  0xd5   :  { %3497 = vmatpush3.bf16.msra.mxu1 %v3765_v3  ;;  %3476 = vmatprep.subr.bf16.mxu0 %v3766_v4  ;;  %v3807_v3 = vld [vmem:[%s4695_s1 + $0x7f8] sm:$0xff]  }
  0xd6   :  { %3498 = vmatprep.subr.bf16.mxu1 %v3767_v5  ;;  %v3808_v4 = vld [vmem:[%s4695_s1 + $0x738] sm:$0xff]  }
  0xd7   :  { %v3809_v5 = vld [vmem:[%s4695_s1 + $0x7b8] sm:$0xff]  }
  0xd8   :  { %3477 = vmatpush3.bf16.msra.mxu0 %v3768_v6  ;;  %v26_v6 = vld [vmem:[%s4696_s0 + $0x70] sm:$0xff] }
  0xd9   :  { %3499 = vmatpush3.bf16.msra.mxu1 %v3769_v7  ;;  %3478 = vmatprep.subr.bf16.mxu0 %v3770_v8  ;;  %v42_v7 = vld [vmem:[%s4696_s0 + $0xf0] sm:$0xff] }
  0xda   :  { %3500 = vmatprep.subr.bf16.mxu1 %v3771_v9  ;;  %v2942_v8 = vcombine.low %v26_v6, %v42_v7  ;;  %v2943_v9 = vcombine.high %v26_v6, %v42_v7 }
  0xdc   :  { %3479 = vmatpush3.bf16.msra.mxu0 %v3772_v10  ;;  %v27_v10 = vld [vmem:[%s4696_s0 + $0x78] sm:$0xff] }
  0xdd   :  { %3501 = vmatpush3.bf16.msra.mxu1 %v3773_v11  ;;  %3480 = vmatprep.subr.bf16.mxu0 %v3774_v12  ;;  %v43_v11 = vld [vmem:[%s4696_s0 + $0xf8] sm:$0xff] }
  0xde   :  { %3502 = vmatprep.subr.bf16.mxu1 %v3775_v13  ;;  %v2944_v12 = vcombine.low %v27_v10, %v43_v11  ;;  %v2945_v13 = vcombine.high %v27_v10, %v43_v11 }
  0xe0   :  { %3481 = vmatpush3.bf16.msra.mxu0 %v3776_v14 }
  0xe1   :  { %3503 = vmatpush3.bf16.msra.mxu1 %v3777_v15  ;;  %3510 = vmatprep.subr.bf16.mxu0 %v3778_v24 }
  0xe2   :  { %3532 = vmatprep.subr.bf16.mxu1 %v3779_v25 }
  0xe3   :  { %2777 = vmatmul.mubr.bf16.vlgmr.msra.gmra.mrb[24].mxu0 %v2938_v19 }
  0xe4   :  { %2818 = vmatmul.mubr.bf16.vlgmr.msra.gmra.mrb[24].mxu1 %v2940_v22  ;;  %3511 = vmatpush3.bf16.msra.mxu0 %v3780_v26 }
  0xe5   :  { %3533 = vmatpush3.bf16.msra.mxu1 %v3781_v27  ;;  %3512 = vmatprep.subr.bf16.mxu0 %v3782_v28 }
  0xe6   :  { %3534 = vmatprep.subr.bf16.mxu1 %v3783_v29  ;;  %2858 = vmatprep.mubr.bf16.mxu0 %v2943_v9 }
  0xe7   :  { %2899 = vmatprep.mubr.bf16.mxu1 %v2945_v13 }
  0xe8   :  { %3513 = vmatpush3.bf16.msra.mxu0 %v3784_v30 }
  0xe9   :  { %3535 = vmatpush3.bf16.msra.mxu1 %v3785_v31  ;;  %3514 = vmatprep.subr.bf16.mxu0 %v3786_v32 }
  0xea   :  { %3536 = vmatprep.subr.bf16.mxu1 %v3787_v33 }
  0xec   :  { %3515 = vmatpush3.bf16.msra.mxu0 %v3788_v34 }
  0xed   :  { %3537 = vmatpush3.bf16.msra.mxu1 %v3789_v35  ;;  %3516 = vmatprep.subr.bf16.mxu0 %v3790_v36 }
  0xee   :  { %3538 = vmatprep.subr.bf16.mxu1 %v3791_v37 }
  0xf0   :  { %3517 = vmatpush3.bf16.msra.mxu0 %v3792_v39 }
  0xf1   :  { %3539 = vmatpush3.bf16.msra.mxu1 %v3793_v41  ;;  %3518 = vmatprep.subr.bf16.mxu0 %v3794_v43 }
  0xf2   :  { %3540 = vmatprep.subr.bf16.mxu1 %v3795_v46 }
  0xf4   :  { %3519 = vmatpush3.bf16.msra.mxu0 %v3796_v49 }
  0xf5   :  { %3541 = vmatpush3.bf16.msra.mxu1 %v3797_v51  ;;  %3520 = vmatprep.subr.bf16.mxu0 %v3798_v54 }
  0xf6   :  { %v3218_v38 = vpop.f32.mrb[0].mxu0  ;;  %3542 = vmatprep.subr.bf16.mxu1 %v3799_v57 }
  0xf7   :  { %v3240_v40 = vpop.f32.mrb[0].mxu1  ;;  %v3219_v42 = vpop.f32.mrb[1].mxu0 }
  0xf8   :  { %v3220_v44 = vadd.f32 %v3219_v42, %v3218_v38  ;;  %v3241_v45 = vpop.f32.mrb[1].mxu1  ;;  %v3221_v48 = vpop.f32.mrb[2].mxu0  ;;  %3521 = vmatpush3.bf16.msra.mxu0 %v3800_v59 }
  0xf9   :  { %v3242_v47 = vadd.f32 %v3241_v45, %v3240_v40  ;;  %v3243_v50 = vpop.f32.mrb[2].mxu1  ;;  %v3222_v53 = vpop.f32.mrb[3].mxu0  ;;  %3543 = vmatpush3.bf16.msra.mxu1 %v3801_v60  ;;  %3522 = vmatprep.subr.bf16.mxu0 %v3802_v62 }
  0xfa   :  { %v3223_v55 = vadd.f32 %v3222_v53, %v3221_v48  ;;  %v3244_v56 = vpop.f32.mrb[3].mxu1  ;;  %3544 = vmatprep.subr.bf16.mxu1 %v3803_v63 }
  0xfb   :  { %v2328_v52 = vadd.f32 %v3242_v47, %v3220_v44  ;;  %v3245_v58 = vadd.f32 %v3244_v56, %v3243_v50 }
  0xfc   :  { %3523 = vmatpush3.bf16.msra.mxu0 %v3804_v0 }
  0xfd   :  { %v2331_v61 = vadd.f32 %v3245_v58, %v3223_v55  ;;  %3545 = vmatpush3.bf16.msra.mxu1 %v3805_v1  ;;  %3524 = vmatprep.subr.bf16.mxu0 %v3806_v2 }
  0xfe   :  { %3546 = vmatprep.subr.bf16.mxu1 %v3807_v3 }
 0x100   :  { %3525 = vmatpush3.bf16.msra.mxu0 %v3808_v4 }
 0x101   :  { %3547 = vmatpush3.bf16.msra.mxu1 %v3809_v5 }
 0x103   :  { %2859 = vmatmul.mubr.bf16.vlgmr.msra.gmra.mrb[28].mxu0 %v2942_v8 }
 0x104   :  { %2900 = vmatmul.mubr.bf16.vlgmr.msra.gmra.mrb[28].mxu1 %v2944_v12 }
 0x116   :  { %v3262_v14 = vpop.f32.mrb[4].mxu0 }
 0x117   :  { %v3284_v15 = vpop.f32.mrb[4].mxu1  ;;  %v3263_v16 = vpop.f32.mrb[5].mxu0 }
 0x118   :  { %v3264_v17 = vadd.f32 %v3263_v16, %v3262_v14  ;;  %v3285_v18 = vpop.f32.mrb[5].mxu1  ;;  %v3265_v19 = vpop.f32.mrb[6].mxu0 }
 0x119   :  { %v3286_v20 = vadd.f32 %v3285_v18, %v3284_v15  ;;  %v3287_v21 = vpop.f32.mrb[6].mxu1  ;;  %v3266_v22 = vpop.f32.mrb[7].mxu0 }
 0x11a   :  { %v2369_v23 = vadd.f32 %v3264_v17, %v2328_v52  ;;  %v3267_v24 = vadd.f32 %v3266_v22, %v3265_v19  ;;  %v3288_v25 = vpop.f32.mrb[7].mxu1 }
 0x11b   :  { %v3289_v26 = vadd.f32 %v3288_v25, %v3287_v21 }
 0x11c   :  { %v2410_v27 = vadd.f32 %v3286_v20, %v2369_v23  ;;  %v2372_v28 = vadd.f32 %v3267_v24, %v2331_v61 }
 0x11e   :  { %v2413_v29 = vadd.f32 %v3289_v26, %v2372_v28 }
 0x136   :  { %v3306_v30 = vpop.f32.mrb[8].mxu0 }
 0x137   :  { %v3328_v31 = vpop.f32.mrb[8].mxu1  ;;  %v3307_v32 = vpop.f32.mrb[9].mxu0 }
 0x138   :  { %v3329_v33 = vpop.f32.mrb[9].mxu1  ;;  %v3308_v34 = vadd.f32 %v3307_v32, %v3306_v30  ;;  %v3309_v36 = vpop.f32.mrb[10].mxu0 }
 0x139   :  { %v3330_v35 = vadd.f32 %v3329_v33, %v3328_v31  ;;  %v3331_v37 = vpop.f32.mrb[10].mxu1  ;;  %v3310_v38 = vpop.f32.mrb[11].mxu0 }
 0x13a   :  { %v3332_v39 = vpop.f32.mrb[11].mxu1  ;;  %v2451_v40 = vadd.f32 %v3308_v34, %v2410_v27  ;;  %v3311_v41 = vadd.f32 %v3310_v38, %v3309_v36 }
 0x13b   :  { %v3333_v42 = vadd.f32 %v3332_v39, %v3331_v37 }
 0x13c   :  { %v2492_v43 = vadd.f32 %v3330_v35, %v2451_v40  ;;  %v2454_v44 = vadd.f32 %v3311_v41, %v2413_v29 }
 0x13e   :  { %v2495_v45 = vadd.f32 %v3333_v42, %v2454_v44 }
 0x156   :  { %v3350_v46 = vpop.f32.mrb[12].mxu0 }
 0x157   :  { %v3372_v47 = vpop.f32.mrb[12].mxu1  ;;  %v3351_v48 = vpop.f32.mrb[13].mxu0 }
 0x158   :  { %v3352_v49 = vadd.f32 %v3351_v48, %v3350_v46  ;;  %v3373_v50 = vpop.f32.mrb[13].mxu1  ;;  %v3353_v51 = vpop.f32.mrb[14].mxu0 }
 0x159   :  { %v3374_v52 = vadd.f32 %v3373_v50, %v3372_v47  ;;  %v3375_v53 = vpop.f32.mrb[14].mxu1  ;;  %v3354_v54 = vpop.f32.mrb[15].mxu0 }
 0x15a   :  { %v2533_v55 = vadd.f32 %v3352_v49, %v2492_v43  ;;  %v3355_v56 = vadd.f32 %v3354_v54, %v3353_v51  ;;  %v3376_v57 = vpop.f32.mrb[15].mxu1 }
 0x15b   :  { %v3377_v58 = vadd.f32 %v3376_v57, %v3375_v53 }
 0x15c   :  { %v2574_v59 = vadd.f32 %v3374_v52, %v2533_v55  ;;  %v2536_v60 = vadd.f32 %v3355_v56, %v2495_v45 }
 0x15e   :  { %v2577_v61 = vadd.f32 %v3377_v58, %v2536_v60 }
 0x176   :  { %v3394_v62 = vpop.f32.mrb[16].mxu0 }
 0x177   :  { %v3416_v63 = vpop.f32.mrb[16].mxu1  ;;  %v3395_v0 = vpop.f32.mrb[17].mxu0 }
 0x178   :  { %v3396_v1 = vadd.f32 %v3395_v0, %v3394_v62  ;;  %v3417_v2 = vpop.f32.mrb[17].mxu1  ;;  %v3397_v3 = vpop.f32.mrb[18].mxu0 }
 0x179   :  { %v3418_v4 = vadd.f32 %v3417_v2, %v3416_v63  ;;  %v3419_v5 = vpop.f32.mrb[18].mxu1  ;;  %v3398_v6 = vpop.f32.mrb[19].mxu0 }
 0x17a   :  { %v2615_v7 = vadd.f32 %v3396_v1, %v2574_v59  ;;  %v3399_v8 = vadd.f32 %v3398_v6, %v3397_v3  ;;  %v3420_v9 = vpop.f32.mrb[19].mxu1 }
 0x17b   :  { %v3421_v10 = vadd.f32 %v3420_v9, %v3419_v5 }
 0x17c   :  { %v2656_v11 = vadd.f32 %v3418_v4, %v2615_v7  ;;  %v2618_v12 = vadd.f32 %v3399_v8, %v2577_v61 }
 0x17e   :  { %v2659_v13 = vadd.f32 %v3421_v10, %v2618_v12 }
 0x196   :  { %v3438_v14 = vpop.f32.mrb[20].mxu0 }
 0x197   :  { %v3460_v15 = vpop.f32.mrb[20].mxu1  ;;  %v3439_v16 = vpop.f32.mrb[21].mxu0 }
 0x198   :  { %v3461_v17 = vpop.f32.mrb[21].mxu1  ;;  %v3440_v18 = vadd.f32 %v3439_v16, %v3438_v14  ;;  %v3441_v20 = vpop.f32.mrb[22].mxu0 }
 0x199   :  { %v3462_v19 = vadd.f32 %v3461_v17, %v3460_v15  ;;  %v3463_v21 = vpop.f32.mrb[22].mxu1  ;;  %v3442_v22 = vpop.f32.mrb[23].mxu0 }
 0x19a   :  { %v3464_v23 = vpop.f32.mrb[23].mxu1  ;;  %v2697_v24 = vadd.f32 %v3440_v18, %v2656_v11  ;;  %v3443_v25 = vadd.f32 %v3442_v22, %v3441_v20 }
 0x19b   :  { %v3465_v26 = vadd.f32 %v3464_v23, %v3463_v21 }
 0x19c   :  { %v2738_v27 = vadd.f32 %v3462_v19, %v2697_v24  ;;  %v2700_v28 = vadd.f32 %v3443_v25, %v2659_v13 }
 0x19e   :  { %v2741_v29 = vadd.f32 %v3465_v26, %v2700_v28 }
 0x1b6   :  { %v3482_v30 = vpop.f32.mrb[24].mxu0 }
 0x1b7   :  { %v3504_v31 = vpop.f32.mrb[24].mxu1  ;;  %v3483_v32 = vpop.f32.mrb[25].mxu0 }
 0x1b8   :  { %v3484_v33 = vadd.f32 %v3483_v32, %v3482_v30  ;;  %v3505_v34 = vpop.f32.mrb[25].mxu1  ;;  %v3485_v35 = vpop.f32.mrb[26].mxu0 }
 0x1b9   :  { %v3506_v36 = vadd.f32 %v3505_v34, %v3504_v31  ;;  %v3507_v37 = vpop.f32.mrb[26].mxu1  ;;  %v3486_v38 = vpop.f32.mrb[27].mxu0 }
 0x1ba   :  { %v2779_v39 = vadd.f32 %v3484_v33, %v2738_v27  ;;  %v3487_v40 = vadd.f32 %v3486_v38, %v3485_v35  ;;  %v3508_v41 = vpop.f32.mrb[27].mxu1 }
 0x1bb   :  { %v3509_v42 = vadd.f32 %v3508_v41, %v3507_v37 }
 0x1bc   :  { %v2820_v43 = vadd.f32 %v3506_v36, %v2779_v39  ;;  %v2782_v44 = vadd.f32 %v3487_v40, %v2741_v29 }
 0x1be   :  { %v2823_v45 = vadd.f32 %v3509_v42, %v2782_v44 }
 0x1d6   :  { %v3526_v46 = vpop.f32.mrb[28].mxu0 }
 0x1d7   :  { %v3548_v47 = vpop.f32.mrb[28].mxu1  ;;  %v3527_v48 = vpop.f32.mrb[29].mxu0 }
 0x1d8   :  { %v3528_v49 = vadd.f32 %v3527_v48, %v3526_v46  ;;  %v3549_v50 = vpop.f32.mrb[29].mxu1  ;;  %v3529_v51 = vpop.f32.mrb[30].mxu0 }
 0x1d9   :  { %v3550_v52 = vadd.f32 %v3549_v50, %v3548_v47  ;;  %v3551_v53 = vpop.f32.mrb[30].mxu1  ;;  %v3530_v54 = vpop.f32.mrb[31].mxu0 }
 0x1da   :  { %v2861_v55 = vadd.f32 %v3528_v49, %v2820_v43  ;;  %v3531_v56 = vadd.f32 %v3530_v54, %v3529_v51  ;;  %v3552_v57 = vpop.f32.mrb[31].mxu1 }
 0x1db   :  { %v3553_v58 = vadd.f32 %v3552_v57, %v3551_v53 }
 0x1dc   :  { %v2902_v59 = vadd.f32 %v3550_v52, %v2861_v55  ;;  %v2864_v60 = vadd.f32 %v3531_v56, %v2823_v45 }
 0x1de   :  { %2908 = vst [vmem:[%s4697_s2] sm:$0xff] %v2902_v59  ;;  %v2905_v61 = vadd.f32 %v3553_v58, %v2864_v60 }
 0x1e0   :  { %2909 = vst [vmem:[%s4697_s2 + $0x8] sm:$0xff] %v2905_v61 }

</bundles_post_ra>
